<compile_context>
chip_gen: v5e
topology: v5e:2x2
jax: 0.10.0
libtpu: 0.0.40
codegen_flags: <defaults>
</compile_context>

<pallas_src>
import functools

import jax
import jax.numpy as jnp
from jax.experimental import pallas as pl
from jax.experimental.pallas import tpu as pltpu


def _round_up(x, m):
    return (x + m - 1) // m * m


def _log_sigmoid(x):
    # numerically stable log(sigmoid(x)); inputs are already clamped to [-10, 10]
    return jnp.minimum(x, 0.0) - jnp.log(1.0 + jnp.exp(-jnp.abs(x)))


def skipgram_loss_kernel(w_ref, info_ref, pn_ref, out_ref, *, batch_size, tile_b):
    """One lane-dense batch tile.

    w_ref    : [S+1]            f32 SMEM scalars (embedding_weight)
    info_ref : [S+1, D, TB]     bf16 center + side-information embeddings
    pn_ref   : [N+1, D, TB]     bf16 neighbor (row 0) + negative embeddings
    out_ref  : [1, TB]          f32 masked per-column loss
    """
    b = pl.program_id(0)

    # weighted-sum pooling over (center + side information); f32 accumulate
    n_src = info_ref.shape[0]
    center = w_ref[0] * info_ref[0].astype(jnp.float32)            # [D, TB]
    for s in range(1, n_src):
        center = center + w_ref[s] * info_ref[s].astype(jnp.float32)

    # positive (row 0, sign +1) and negatives (rows 1..N, sign -1) share one
    # multiply / sublane-reduce / log-sigmoid pass.  Static unrolled loop keeps
    # only `center` plus one [D, TB] slice live (per review; N+1 is small).
    n_pn = pn_ref.shape[0]
    loss = jnp.zeros((1, tile_b), jnp.float32)
    for n in range(n_pn):
        x = pn_ref[n].astype(jnp.float32)                          # [D, TB]
        score = jnp.sum(center * x, axis=0, keepdims=True)         # [1, TB]
        score = jnp.clip(score, -10.0, 10.0)
        sign = 1.0 if n == 0 else -1.0
        loss = loss - _log_sigmoid(sign * score)

    # mask padded batch columns, write lane-dense per-column partial loss
    col = b * tile_b + jax.lax.broadcasted_iota(jnp.int32, (1, tile_b), 1)
    out_ref[...] = jnp.where(col < batch_size, loss, 0.0)          # [1, TB]


def init_params(key, embedding_size, embedding_dim, side_information):
    """Deterministic stand-in for SkigGram.__init__ (nn.Embedding default ~ N(0,1),
    embedding_weight ~ U[0,1))."""
    n_side = len(side_information)
    keys = jax.random.split(key, n_side + 3)
    params = {
        "center_word_embed": jax.random.normal(
            keys[0], (embedding_size, embedding_dim), jnp.float32),
        "neighbor_word_embed": jax.random.normal(
            keys[1], (embedding_size, embedding_dim), jnp.float32),
    }
    for i, (name, vocab) in enumerate(side_information.items()):
        params[name + "_embed"] = jax.random.normal(
            keys[2 + i], (vocab, embedding_dim), jnp.float32)
    params["embedding_weight"] = jax.random.uniform(
        keys[-1], (n_side + 1, 1), jnp.float32)
    return params


def _gather_information(params, side_information, center_word):
    """Mirrors the PyTorch forward's information_list construction ([S+1, B, D]).

    NOTE: the 'str(i) in key' substring match mirrors the original PyTorch code
    and is fragile for >= 10 side features ('1' also matches 'side_10')."""
    info_list = [params["center_word_embed"][center_word[:, 0]]]
    for key in side_information:
        for i in range(1, center_word.shape[1]):
            if str(i) in key:
                info_list.append(params[key + "_embed"][center_word[:, i]])
    return jnp.stack(info_list, axis=0)  # [S+1, B, D]


def _gather_information_lane_dense(params, side_information, center_word):
    """Lane-dense variant: pre-transpose the tiny tables to [D, V] and gather
    along axis=1 so batch lands on the (minor) lane axis — no standalone
    transpose of the gathered [S+1, B, D] activations."""
    info_list = [jnp.take(params["center_word_embed"].T, center_word[:, 0], axis=1)]
    for key in side_information:
        for i in range(1, center_word.shape[1]):
            if str(i) in key:
                info_list.append(
                    jnp.take(params[key + "_embed"].T, center_word[:, i], axis=1))
    return jnp.stack(info_list, axis=0)  # [S+1, D, B]


def reference_loss(params, side_information, center_word, neighbor_word, neg_word):
    """Pure-JAX mirror of the PyTorch forward for verification / tiny batches."""
    info = _gather_information(params, side_information, center_word)  # [S+1,B,D]
    nbr = params["neighbor_word_embed"][neighbor_word[:, 0]]           # [B, D]
    neg = params["neighbor_word_embed"][neg_word]                      # [B, N, D]
    w = params["embedding_weight"]                                     # [S+1, 1]

    center = jnp.sum(info * w[:, :, None], axis=0)                     # [B, D]
    score = jnp.sum(center * nbr, axis=1)                              # [B]
    score = jnp.clip(score, -10.0, 10.0)
    pos = -jax.nn.log_sigmoid(score)
    neg_score = jnp.einsum("bnd,bd->bn", neg, center)
    neg_score = jnp.clip(neg_score, -10.0, 10.0)
    negl = -jnp.sum(jax.nn.log_sigmoid(-neg_score), axis=1)
    return jnp.mean(pos + negl)


def _select_tile(batch_size, tb_target=1024):
    """Pick a lane-tile size (multiple of 128).  Prefer >= 2 grid steps so both
    v7x TensorCores get work; cap at tb_target (vreg/VMEM friendly)."""
    units = pl.cdiv(batch_size, 128)           # 128-lane units of real batch
    max_units = tb_target // 128
    if units <= 2 * max_units:
        units_per_tile = max(1, pl.cdiv(units, 2))
    else:
        units_per_tile = max_units
    tb = units_per_tile * 128
    bp = _round_up(batch_size, tb)
    return tb, bp


def skipgram_forward(params, side_information, center_word, neighbor_word,
                     neg_word, *, min_pallas_batch=256):
    B = center_word.shape[0]
    if B < min_pallas_batch:
        # launch + pipeline prologue dominate a single mostly-padded tile
        return reference_loss(params, side_information, center_word,
                              neighbor_word, neg_word)

    D = params["center_word_embed"].shape[1]
    N = neg_word.shape[1]

    # lane-dense gathers (batch on the last axis; no minor-dim transposes of
    # the gathered activations)
    info_t = _gather_information_lane_dense(
        params, side_information, center_word)                        # [S+1, D, B]
    nbr_T = params["neighbor_word_embed"].T                           # [D, V]
    pn_idx = jnp.concatenate(
        [neighbor_word[:, 0][None, :], neg_word.T], axis=0)           # [N+1, B]
    pn_t = jax.vmap(lambda idx: jnp.take(nbr_T, idx, axis=1))(pn_idx)  # [N+1, D, B]
    w = params["embedding_weight"][:, 0]                              # [S+1] f32

    # bf16 activations into the kernel; f32 accumulation inside
    info_b16 = info_t.astype(jnp.bfloat16)
    pn_b16 = pn_t.astype(jnp.bfloat16)

    n_src = info_b16.shape[0]
    n_pn = pn_b16.shape[0]

    tb, bp = _select_tile(B)
    pad = bp - B
    if pad:
        info_b16 = jnp.pad(info_b16, ((0, 0), (0, 0), (0, pad)))
        pn_b16 = jnp.pad(pn_b16, ((0, 0), (0, 0), (0, pad)))

    kernel = functools.partial(skipgram_loss_kernel, batch_size=B, tile_b=tb)
    out = pl.pallas_call(
        kernel,
        out_shape=jax.ShapeDtypeStruct((1, bp), jnp.float32),
        grid=(bp // tb,),
        in_specs=[
            pl.BlockSpec(memory_space=pltpu.MemorySpace.SMEM),        # w (scalars)
            pl.BlockSpec((n_src, D, tb), lambda b: (0, 0, b)),        # info
            pl.BlockSpec((n_pn, D, tb), lambda b: (0, 0, b)),         # pos+neg
        ],
        out_specs=pl.BlockSpec((1, tb), lambda b: (0, b)),
        compiler_params=pltpu.CompilerParams(
            dimension_semantics=("parallel",),
            # usage ~1-2 MiB double-buffered at tb<=1024; 16 MiB is safe even
            # against v5e's 16 MiB scoped-VMEM default (v7x: 32 MiB scoped/TC)
            vmem_limit_bytes=16 * 1024 * 1024),
    )(w, info_b16, pn_b16)

    # padded columns were masked to zero inside the kernel
    return jnp.sum(out[0]) / B


if __name__ == "__main__":
    embedding_size = 50
    embedding_dim = 32
    side_information = {
        "item_attribute_side_1": 20,
        "item_attribute_side_2": 12,
        "item_attribute_side_3": 30,
        "item_attribute_side_4": 16,
    }
    B, N_NEG = 1024, 8   # large enough to exercise the Pallas path (2 tiles)

    key = jax.random.PRNGKey(0)
    pkey, kc, kn, kg = jax.random.split(key, 4)
    params = init_params(pkey, embedding_size, embedding_dim, side_information)

    # center_word: column 0 indexes the word vocab, column i indexes side_i's vocab
    cols = [jax.random.randint(kc, (B, 1), 0, embedding_size, jnp.int32)]
    for i, (_, vocab) in enumerate(side_information.items()):
        cols.append(jax.random.randint(
            jax.random.fold_in(kc, i + 1), (B, 1), 0, vocab, jnp.int32))
    center_word = jnp.concatenate(cols, axis=1)                         # [B, S+1]
    neighbor_word = jax.random.randint(kn, (B, 1), 0, embedding_size, jnp.int32)
    neg_word = jax.random.randint(kg, (B, N_NEG), 0, embedding_size, jnp.int32)

    fwd = jax.jit(lambda p, cw, nw, ng: skipgram_forward(
        p, side_information, cw, nw, ng))
    loss = jax.block_until_ready(fwd(params, center_word, neighbor_word, neg_word))

    ref = reference_loss(params, side_information, center_word,
                         neighbor_word, neg_word)
    # bf16 activations in the kernel (f32 accumulate) -> loosened tolerance
    assert jnp.allclose(loss, ref, atol=3e-2, rtol=3e-2), (loss, ref)
    print("KERNEL_OK")
</pallas_src>

<mosaic_0001>
module attributes {stable_mosaic.version = 11 : i64} {
  func.func @skipgram_loss_kernel(%arg0: i32, %arg1: memref<5xf32, #tpu.memory_space<smem>>, %arg2: memref<5x32x512xbf16, #tpu.memory_space<vmem>>, %arg3: memref<9x32x512xbf16, #tpu.memory_space<vmem>>, %arg4: memref<1x512xf32, #tpu.memory_space<vmem>>) attributes {dimension_semantics = [#tpu.dimension_semantics<parallel>], iteration_bounds = array<i64: 2>, scalar_prefetch = 0 : i64, scratch_operands = 0 : i64, tpu.core_type = #tpu.core_type<tc>, window_params = [{transform_indices = @transform_0, window_bounds = array<i64: 5>}, {transform_indices = @transform_1, window_bounds = array<i64: 5, 32, 512>}, {transform_indices = @transform_2, window_bounds = array<i64: 9, 32, 512>}, {transform_indices = @transform_3, window_bounds = array<i64: 1, 512>}]} {
    %c0 = arith.constant 0 : index
    %0 = memref.load %arg1[%c0] : memref<5xf32, #tpu.memory_space<smem>>
    %c0_0 = arith.constant 0 : index
    %c0_1 = arith.constant 0 : index
    %c0_2 = arith.constant 0 : index
    %1 = vector.load %arg2[%c0_0, %c0_1, %c0_2] : memref<5x32x512xbf16, #tpu.memory_space<vmem>>, vector<1x32x512xbf16>
    %2 = vector.shape_cast %1 : vector<1x32x512xbf16> to vector<32x512xbf16>
    %3 = arith.extf %2 : vector<32x512xbf16> to vector<32x512xf32>
    %4 = vector.broadcast %0 : f32 to vector<32x512xf32>
    %5 = arith.mulf %4, %3 : vector<32x512xf32>
    %c1 = arith.constant 1 : index
    %6 = memref.load %arg1[%c1] : memref<5xf32, #tpu.memory_space<smem>>
    %c1_3 = arith.constant 1 : index
    %c0_4 = arith.constant 0 : index
    %c0_5 = arith.constant 0 : index
    %7 = vector.load %arg2[%c1_3, %c0_4, %c0_5] : memref<5x32x512xbf16, #tpu.memory_space<vmem>>, vector<1x32x512xbf16>
    %8 = vector.shape_cast %7 : vector<1x32x512xbf16> to vector<32x512xbf16>
    %9 = arith.extf %8 : vector<32x512xbf16> to vector<32x512xf32>
    %10 = vector.broadcast %6 : f32 to vector<32x512xf32>
    %11 = arith.mulf %10, %9 : vector<32x512xf32>
    %12 = arith.addf %5, %11 : vector<32x512xf32>
    %c2 = arith.constant 2 : index
    %13 = memref.load %arg1[%c2] : memref<5xf32, #tpu.memory_space<smem>>
    %c2_6 = arith.constant 2 : index
    %c0_7 = arith.constant 0 : index
    %c0_8 = arith.constant 0 : index
    %14 = vector.load %arg2[%c2_6, %c0_7, %c0_8] : memref<5x32x512xbf16, #tpu.memory_space<vmem>>, vector<1x32x512xbf16>
    %15 = vector.shape_cast %14 : vector<1x32x512xbf16> to vector<32x512xbf16>
    %16 = arith.extf %15 : vector<32x512xbf16> to vector<32x512xf32>
    %17 = vector.broadcast %13 : f32 to vector<32x512xf32>
    %18 = arith.mulf %17, %16 : vector<32x512xf32>
    %19 = arith.addf %12, %18 : vector<32x512xf32>
    %c3 = arith.constant 3 : index
    %20 = memref.load %arg1[%c3] : memref<5xf32, #tpu.memory_space<smem>>
    %c3_9 = arith.constant 3 : index
    %c0_10 = arith.constant 0 : index
    %c0_11 = arith.constant 0 : index
    %21 = vector.load %arg2[%c3_9, %c0_10, %c0_11] : memref<5x32x512xbf16, #tpu.memory_space<vmem>>, vector<1x32x512xbf16>
    %22 = vector.shape_cast %21 : vector<1x32x512xbf16> to vector<32x512xbf16>
    %23 = arith.extf %22 : vector<32x512xbf16> to vector<32x512xf32>
    %24 = vector.broadcast %20 : f32 to vector<32x512xf32>
    %25 = arith.mulf %24, %23 : vector<32x512xf32>
    %26 = arith.addf %19, %25 : vector<32x512xf32>
    %c4 = arith.constant 4 : index
    %27 = memref.load %arg1[%c4] : memref<5xf32, #tpu.memory_space<smem>>
    %c4_12 = arith.constant 4 : index
    %c0_13 = arith.constant 0 : index
    %c0_14 = arith.constant 0 : index
    %28 = vector.load %arg2[%c4_12, %c0_13, %c0_14] : memref<5x32x512xbf16, #tpu.memory_space<vmem>>, vector<1x32x512xbf16>
    %29 = vector.shape_cast %28 : vector<1x32x512xbf16> to vector<32x512xbf16>
    %30 = arith.extf %29 : vector<32x512xbf16> to vector<32x512xf32>
    %31 = vector.broadcast %27 : f32 to vector<32x512xf32>
    %32 = arith.mulf %31, %30 : vector<32x512xf32>
    %33 = arith.addf %26, %32 : vector<32x512xf32>
    %cst = arith.constant 0.000000e+00 : f32
    %34 = vector.broadcast %cst : f32 to vector<1x512xf32>
    %c0_15 = arith.constant 0 : index
    %c0_16 = arith.constant 0 : index
    %c0_17 = arith.constant 0 : index
    %35 = vector.load %arg3[%c0_15, %c0_16, %c0_17] : memref<9x32x512xbf16, #tpu.memory_space<vmem>>, vector<1x32x512xbf16>
    %36 = vector.shape_cast %35 : vector<1x32x512xbf16> to vector<32x512xbf16>
    %37 = arith.extf %36 : vector<32x512xbf16> to vector<32x512xf32>
    %38 = arith.mulf %33, %37 : vector<32x512xf32>
    %cst_18 = arith.constant dense<0.000000e+00> : vector<512xf32>
    %39 = vector.multi_reduction <add>, %38, %cst_18 [0] : vector<32x512xf32> to vector<512xf32>
    %40 = vector.shape_cast %39 : vector<512xf32> to vector<1x512xf32>
    %cst_19 = arith.constant -1.000000e+01 : f32
    %cst_20 = arith.constant 1.000000e+01 : f32
    %41 = vector.broadcast %cst_19 : f32 to vector<1x512xf32>
    %42 = arith.maximumf %41, %40 : vector<1x512xf32>
    %43 = vector.broadcast %cst_20 : f32 to vector<1x512xf32>
    %44 = arith.minimumf %43, %42 : vector<1x512xf32>
    %cst_21 = arith.constant 1.000000e+00 : f32
    %45 = vector.broadcast %cst_21 : f32 to vector<1x512xf32>
    %46 = arith.mulf %45, %44 : vector<1x512xf32>
    %cst_22 = arith.constant 0.000000e+00 : f32
    %47 = vector.broadcast %cst_22 : f32 to vector<1x512xf32>
    %48 = arith.minimumf %46, %47 : vector<1x512xf32>
    %49 = math.absf %46 : vector<1x512xf32>
    %cst_23 = arith.constant 0.000000e+00 : f32
    %50 = vector.broadcast %cst_23 : f32 to vector<1x512xf32>
    %51 = arith.subf %50, %49 : vector<1x512xf32>
    %52 = math.exp %51 : vector<1x512xf32>
    %cst_24 = arith.constant 1.000000e+00 : f32
    %53 = vector.broadcast %cst_24 : f32 to vector<1x512xf32>
    %54 = arith.addf %53, %52 : vector<1x512xf32>
    %55 = math.log %54 : vector<1x512xf32>
    %56 = arith.subf %48, %55 : vector<1x512xf32>
    %57 = arith.subf %34, %56 : vector<1x512xf32>
    %c1_25 = arith.constant 1 : index
    %c0_26 = arith.constant 0 : index
    %c0_27 = arith.constant 0 : index
    %58 = vector.load %arg3[%c1_25, %c0_26, %c0_27] : memref<9x32x512xbf16, #tpu.memory_space<vmem>>, vector<1x32x512xbf16>
    %59 = vector.shape_cast %58 : vector<1x32x512xbf16> to vector<32x512xbf16>
    %60 = arith.extf %59 : vector<32x512xbf16> to vector<32x512xf32>
    %61 = arith.mulf %33, %60 : vector<32x512xf32>
    %cst_28 = arith.constant dense<0.000000e+00> : vector<512xf32>
    %62 = vector.multi_reduction <add>, %61, %cst_28 [0] : vector<32x512xf32> to vector<512xf32>
    %63 = vector.shape_cast %62 : vector<512xf32> to vector<1x512xf32>
    %cst_29 = arith.constant -1.000000e+01 : f32
    %cst_30 = arith.constant 1.000000e+01 : f32
    %64 = vector.broadcast %cst_29 : f32 to vector<1x512xf32>
    %65 = arith.maximumf %64, %63 : vector<1x512xf32>
    %66 = vector.broadcast %cst_30 : f32 to vector<1x512xf32>
    %67 = arith.minimumf %66, %65 : vector<1x512xf32>
    %cst_31 = arith.constant -1.000000e+00 : f32
    %68 = vector.broadcast %cst_31 : f32 to vector<1x512xf32>
    %69 = arith.mulf %68, %67 : vector<1x512xf32>
    %cst_32 = arith.constant 0.000000e+00 : f32
    %70 = vector.broadcast %cst_32 : f32 to vector<1x512xf32>
    %71 = arith.minimumf %69, %70 : vector<1x512xf32>
    %72 = math.absf %69 : vector<1x512xf32>
    %cst_33 = arith.constant 0.000000e+00 : f32
    %73 = vector.broadcast %cst_33 : f32 to vector<1x512xf32>
    %74 = arith.subf %73, %72 : vector<1x512xf32>
    %75 = math.exp %74 : vector<1x512xf32>
    %cst_34 = arith.constant 1.000000e+00 : f32
    %76 = vector.broadcast %cst_34 : f32 to vector<1x512xf32>
    %77 = arith.addf %76, %75 : vector<1x512xf32>
    %78 = math.log %77 : vector<1x512xf32>
    %79 = arith.subf %71, %78 : vector<1x512xf32>
    %80 = arith.subf %57, %79 : vector<1x512xf32>
    %c2_35 = arith.constant 2 : index
    %c0_36 = arith.constant 0 : index
    %c0_37 = arith.constant 0 : index
    %81 = vector.load %arg3[%c2_35, %c0_36, %c0_37] : memref<9x32x512xbf16, #tpu.memory_space<vmem>>, vector<1x32x512xbf16>
    %82 = vector.shape_cast %81 : vector<1x32x512xbf16> to vector<32x512xbf16>
    %83 = arith.extf %82 : vector<32x512xbf16> to vector<32x512xf32>
    %84 = arith.mulf %33, %83 : vector<32x512xf32>
    %cst_38 = arith.constant dense<0.000000e+00> : vector<512xf32>
    %85 = vector.multi_reduction <add>, %84, %cst_38 [0] : vector<32x512xf32> to vector<512xf32>
    %86 = vector.shape_cast %85 : vector<512xf32> to vector<1x512xf32>
    %cst_39 = arith.constant -1.000000e+01 : f32
    %cst_40 = arith.constant 1.000000e+01 : f32
    %87 = vector.broadcast %cst_39 : f32 to vector<1x512xf32>
    %88 = arith.maximumf %87, %86 : vector<1x512xf32>
    %89 = vector.broadcast %cst_40 : f32 to vector<1x512xf32>
    %90 = arith.minimumf %89, %88 : vector<1x512xf32>
    %cst_41 = arith.constant -1.000000e+00 : f32
    %91 = vector.broadcast %cst_41 : f32 to vector<1x512xf32>
    %92 = arith.mulf %91, %90 : vector<1x512xf32>
    %cst_42 = arith.constant 0.000000e+00 : f32
    %93 = vector.broadcast %cst_42 : f32 to vector<1x512xf32>
    %94 = arith.minimumf %92, %93 : vector<1x512xf32>
    %95 = math.absf %92 : vector<1x512xf32>
    %cst_43 = arith.constant 0.000000e+00 : f32
    %96 = vector.broadcast %cst_43 : f32 to vector<1x512xf32>
    %97 = arith.subf %96, %95 : vector<1x512xf32>
    %98 = math.exp %97 : vector<1x512xf32>
    %cst_44 = arith.constant 1.000000e+00 : f32
    %99 = vector.broadcast %cst_44 : f32 to vector<1x512xf32>
    %100 = arith.addf %99, %98 : vector<1x512xf32>
    %101 = math.log %100 : vector<1x512xf32>
    %102 = arith.subf %94, %101 : vector<1x512xf32>
    %103 = arith.subf %80, %102 : vector<1x512xf32>
    %c3_45 = arith.constant 3 : index
    %c0_46 = arith.constant 0 : index
    %c0_47 = arith.constant 0 : index
    %104 = vector.load %arg3[%c3_45, %c0_46, %c0_47] : memref<9x32x512xbf16, #tpu.memory_space<vmem>>, vector<1x32x512xbf16>
    %105 = vector.shape_cast %104 : vector<1x32x512xbf16> to vector<32x512xbf16>
    %106 = arith.extf %105 : vector<32x512xbf16> to vector<32x512xf32>
    %107 = arith.mulf %33, %106 : vector<32x512xf32>
    %cst_48 = arith.constant dense<0.000000e+00> : vector<512xf32>
    %108 = vector.multi_reduction <add>, %107, %cst_48 [0] : vector<32x512xf32> to vector<512xf32>
    %109 = vector.shape_cast %108 : vector<512xf32> to vector<1x512xf32>
    %cst_49 = arith.constant -1.000000e+01 : f32
    %cst_50 = arith.constant 1.000000e+01 : f32
    %110 = vector.broadcast %cst_49 : f32 to vector<1x512xf32>
    %111 = arith.maximumf %110, %109 : vector<1x512xf32>
    %112 = vector.broadcast %cst_50 : f32 to vector<1x512xf32>
    %113 = arith.minimumf %112, %111 : vector<1x512xf32>
    %cst_51 = arith.constant -1.000000e+00 : f32
    %114 = vector.broadcast %cst_51 : f32 to vector<1x512xf32>
    %115 = arith.mulf %114, %113 : vector<1x512xf32>
    %cst_52 = arith.constant 0.000000e+00 : f32
    %116 = vector.broadcast %cst_52 : f32 to vector<1x512xf32>
    %117 = arith.minimumf %115, %116 : vector<1x512xf32>
    %118 = math.absf %115 : vector<1x512xf32>
    %cst_53 = arith.constant 0.000000e+00 : f32
    %119 = vector.broadcast %cst_53 : f32 to vector<1x512xf32>
    %120 = arith.subf %119, %118 : vector<1x512xf32>
    %121 = math.exp %120 : vector<1x512xf32>
    %cst_54 = arith.constant 1.000000e+00 : f32
    %122 = vector.broadcast %cst_54 : f32 to vector<1x512xf32>
    %123 = arith.addf %122, %121 : vector<1x512xf32>
    %124 = math.log %123 : vector<1x512xf32>
    %125 = arith.subf %117, %124 : vector<1x512xf32>
    %126 = arith.subf %103, %125 : vector<1x512xf32>
    %c4_55 = arith.constant 4 : index
    %c0_56 = arith.constant 0 : index
    %c0_57 = arith.constant 0 : index
    %127 = vector.load %arg3[%c4_55, %c0_56, %c0_57] : memref<9x32x512xbf16, #tpu.memory_space<vmem>>, vector<1x32x512xbf16>
    %128 = vector.shape_cast %127 : vector<1x32x512xbf16> to vector<32x512xbf16>
    %129 = arith.extf %128 : vector<32x512xbf16> to vector<32x512xf32>
    %130 = arith.mulf %33, %129 : vector<32x512xf32>
    %cst_58 = arith.constant dense<0.000000e+00> : vector<512xf32>
    %131 = vector.multi_reduction <add>, %130, %cst_58 [0] : vector<32x512xf32> to vector<512xf32>
    %132 = vector.shape_cast %131 : vector<512xf32> to vector<1x512xf32>
    %cst_59 = arith.constant -1.000000e+01 : f32
    %cst_60 = arith.constant 1.000000e+01 : f32
    %133 = vector.broadcast %cst_59 : f32 to vector<1x512xf32>
    %134 = arith.maximumf %133, %132 : vector<1x512xf32>
    %135 = vector.broadcast %cst_60 : f32 to vector<1x512xf32>
    %136 = arith.minimumf %135, %134 : vector<1x512xf32>
    %cst_61 = arith.constant -1.000000e+00 : f32
    %137 = vector.broadcast %cst_61 : f32 to vector<1x512xf32>
    %138 = arith.mulf %137, %136 : vector<1x512xf32>
    %cst_62 = arith.constant 0.000000e+00 : f32
    %139 = vector.broadcast %cst_62 : f32 to vector<1x512xf32>
    %140 = arith.minimumf %138, %139 : vector<1x512xf32>
    %141 = math.absf %138 : vector<1x512xf32>
    %cst_63 = arith.constant 0.000000e+00 : f32
    %142 = vector.broadcast %cst_63 : f32 to vector<1x512xf32>
    %143 = arith.subf %142, %141 : vector<1x512xf32>
    %144 = math.exp %143 : vector<1x512xf32>
    %cst_64 = arith.constant 1.000000e+00 : f32
    %145 = vector.broadcast %cst_64 : f32 to vector<1x512xf32>
    %146 = arith.addf %145, %144 : vector<1x512xf32>
    %147 = math.log %146 : vector<1x512xf32>
    %148 = arith.subf %140, %147 : vector<1x512xf32>
    %149 = arith.subf %126, %148 : vector<1x512xf32>
    %c5 = arith.constant 5 : index
    %c0_65 = arith.constant 0 : index
    %c0_66 = arith.constant 0 : index
    %150 = vector.load %arg3[%c5, %c0_65, %c0_66] : memref<9x32x512xbf16, #tpu.memory_space<vmem>>, vector<1x32x512xbf16>
    %151 = vector.shape_cast %150 : vector<1x32x512xbf16> to vector<32x512xbf16>
    %152 = arith.extf %151 : vector<32x512xbf16> to vector<32x512xf32>
    %153 = arith.mulf %33, %152 : vector<32x512xf32>
    %cst_67 = arith.constant dense<0.000000e+00> : vector<512xf32>
    %154 = vector.multi_reduction <add>, %153, %cst_67 [0] : vector<32x512xf32> to vector<512xf32>
    %155 = vector.shape_cast %154 : vector<512xf32> to vector<1x512xf32>
    %cst_68 = arith.constant -1.000000e+01 : f32
    %cst_69 = arith.constant 1.000000e+01 : f32
    %156 = vector.broadcast %cst_68 : f32 to vector<1x512xf32>
    %157 = arith.maximumf %156, %155 : vector<1x512xf32>
    %158 = vector.broadcast %cst_69 : f32 to vector<1x512xf32>
    %159 = arith.minimumf %158, %157 : vector<1x512xf32>
    %cst_70 = arith.constant -1.000000e+00 : f32
    %160 = vector.broadcast %cst_70 : f32 to vector<1x512xf32>
    %161 = arith.mulf %160, %159 : vector<1x512xf32>
    %cst_71 = arith.constant 0.000000e+00 : f32
    %162 = vector.broadcast %cst_71 : f32 to vector<1x512xf32>
    %163 = arith.minimumf %161, %162 : vector<1x512xf32>
    %164 = math.absf %161 : vector<1x512xf32>
    %cst_72 = arith.constant 0.000000e+00 : f32
    %165 = vector.broadcast %cst_72 : f32 to vector<1x512xf32>
    %166 = arith.subf %165, %164 : vector<1x512xf32>
    %167 = math.exp %166 : vector<1x512xf32>
    %cst_73 = arith.constant 1.000000e+00 : f32
    %168 = vector.broadcast %cst_73 : f32 to vector<1x512xf32>
    %169 = arith.addf %168, %167 : vector<1x512xf32>
    %170 = math.log %169 : vector<1x512xf32>
    %171 = arith.subf %163, %170 : vector<1x512xf32>
    %172 = arith.subf %149, %171 : vector<1x512xf32>
    %c6 = arith.constant 6 : index
    %c0_74 = arith.constant 0 : index
    %c0_75 = arith.constant 0 : index
    %173 = vector.load %arg3[%c6, %c0_74, %c0_75] : memref<9x32x512xbf16, #tpu.memory_space<vmem>>, vector<1x32x512xbf16>
    %174 = vector.shape_cast %173 : vector<1x32x512xbf16> to vector<32x512xbf16>
    %175 = arith.extf %174 : vector<32x512xbf16> to vector<32x512xf32>
    %176 = arith.mulf %33, %175 : vector<32x512xf32>
    %cst_76 = arith.constant dense<0.000000e+00> : vector<512xf32>
    %177 = vector.multi_reduction <add>, %176, %cst_76 [0] : vector<32x512xf32> to vector<512xf32>
    %178 = vector.shape_cast %177 : vector<512xf32> to vector<1x512xf32>
    %cst_77 = arith.constant -1.000000e+01 : f32
    %cst_78 = arith.constant 1.000000e+01 : f32
    %179 = vector.broadcast %cst_77 : f32 to vector<1x512xf32>
    %180 = arith.maximumf %179, %178 : vector<1x512xf32>
    %181 = vector.broadcast %cst_78 : f32 to vector<1x512xf32>
    %182 = arith.minimumf %181, %180 : vector<1x512xf32>
    %cst_79 = arith.constant -1.000000e+00 : f32
    %183 = vector.broadcast %cst_79 : f32 to vector<1x512xf32>
    %184 = arith.mulf %183, %182 : vector<1x512xf32>
    %cst_80 = arith.constant 0.000000e+00 : f32
    %185 = vector.broadcast %cst_80 : f32 to vector<1x512xf32>
    %186 = arith.minimumf %184, %185 : vector<1x512xf32>
    %187 = math.absf %184 : vector<1x512xf32>
    %cst_81 = arith.constant 0.000000e+00 : f32
    %188 = vector.broadcast %cst_81 : f32 to vector<1x512xf32>
    %189 = arith.subf %188, %187 : vector<1x512xf32>
    %190 = math.exp %189 : vector<1x512xf32>
    %cst_82 = arith.constant 1.000000e+00 : f32
    %191 = vector.broadcast %cst_82 : f32 to vector<1x512xf32>
    %192 = arith.addf %191, %190 : vector<1x512xf32>
    %193 = math.log %192 : vector<1x512xf32>
    %194 = arith.subf %186, %193 : vector<1x512xf32>
    %195 = arith.subf %172, %194 : vector<1x512xf32>
    %c7 = arith.constant 7 : index
    %c0_83 = arith.constant 0 : index
    %c0_84 = arith.constant 0 : index
    %196 = vector.load %arg3[%c7, %c0_83, %c0_84] : memref<9x32x512xbf16, #tpu.memory_space<vmem>>, vector<1x32x512xbf16>
    %197 = vector.shape_cast %196 : vector<1x32x512xbf16> to vector<32x512xbf16>
    %198 = arith.extf %197 : vector<32x512xbf16> to vector<32x512xf32>
    %199 = arith.mulf %33, %198 : vector<32x512xf32>
    %cst_85 = arith.constant dense<0.000000e+00> : vector<512xf32>
    %200 = vector.multi_reduction <add>, %199, %cst_85 [0] : vector<32x512xf32> to vector<512xf32>
    %201 = vector.shape_cast %200 : vector<512xf32> to vector<1x512xf32>
    %cst_86 = arith.constant -1.000000e+01 : f32
    %cst_87 = arith.constant 1.000000e+01 : f32
    %202 = vector.broadcast %cst_86 : f32 to vector<1x512xf32>
    %203 = arith.maximumf %202, %201 : vector<1x512xf32>
    %204 = vector.broadcast %cst_87 : f32 to vector<1x512xf32>
    %205 = arith.minimumf %204, %203 : vector<1x512xf32>
    %cst_88 = arith.constant -1.000000e+00 : f32
    %206 = vector.broadcast %cst_88 : f32 to vector<1x512xf32>
    %207 = arith.mulf %206, %205 : vector<1x512xf32>
    %cst_89 = arith.constant 0.000000e+00 : f32
    %208 = vector.broadcast %cst_89 : f32 to vector<1x512xf32>
    %209 = arith.minimumf %207, %208 : vector<1x512xf32>
    %210 = math.absf %207 : vector<1x512xf32>
    %cst_90 = arith.constant 0.000000e+00 : f32
    %211 = vector.broadcast %cst_90 : f32 to vector<1x512xf32>
    %212 = arith.subf %211, %210 : vector<1x512xf32>
    %213 = math.exp %212 : vector<1x512xf32>
    %cst_91 = arith.constant 1.000000e+00 : f32
    %214 = vector.broadcast %cst_91 : f32 to vector<1x512xf32>
    %215 = arith.addf %214, %213 : vector<1x512xf32>
    %216 = math.log %215 : vector<1x512xf32>
    %217 = arith.subf %209, %216 : vector<1x512xf32>
    %218 = arith.subf %195, %217 : vector<1x512xf32>
    %c8 = arith.constant 8 : index
    %c0_92 = arith.constant 0 : index
    %c0_93 = arith.constant 0 : index
    %219 = vector.load %arg3[%c8, %c0_92, %c0_93] : memref<9x32x512xbf16, #tpu.memory_space<vmem>>, vector<1x32x512xbf16>
    %220 = vector.shape_cast %219 : vector<1x32x512xbf16> to vector<32x512xbf16>
    %221 = arith.extf %220 : vector<32x512xbf16> to vector<32x512xf32>
    %222 = arith.mulf %33, %221 : vector<32x512xf32>
    %cst_94 = arith.constant dense<0.000000e+00> : vector<512xf32>
    %223 = vector.multi_reduction <add>, %222, %cst_94 [0] : vector<32x512xf32> to vector<512xf32>
    %224 = vector.shape_cast %223 : vector<512xf32> to vector<1x512xf32>
    %cst_95 = arith.constant -1.000000e+01 : f32
    %cst_96 = arith.constant 1.000000e+01 : f32
    %225 = vector.broadcast %cst_95 : f32 to vector<1x512xf32>
    %226 = arith.maximumf %225, %224 : vector<1x512xf32>
    %227 = vector.broadcast %cst_96 : f32 to vector<1x512xf32>
    %228 = arith.minimumf %227, %226 : vector<1x512xf32>
    %cst_97 = arith.constant -1.000000e+00 : f32
    %229 = vector.broadcast %cst_97 : f32 to vector<1x512xf32>
    %230 = arith.mulf %229, %228 : vector<1x512xf32>
    %cst_98 = arith.constant 0.000000e+00 : f32
    %231 = vector.broadcast %cst_98 : f32 to vector<1x512xf32>
    %232 = arith.minimumf %230, %231 : vector<1x512xf32>
    %233 = math.absf %230 : vector<1x512xf32>
    %cst_99 = arith.constant 0.000000e+00 : f32
    %234 = vector.broadcast %cst_99 : f32 to vector<1x512xf32>
    %235 = arith.subf %234, %233 : vector<1x512xf32>
    %236 = math.exp %235 : vector<1x512xf32>
    %cst_100 = arith.constant 1.000000e+00 : f32
    %237 = vector.broadcast %cst_100 : f32 to vector<1x512xf32>
    %238 = arith.addf %237, %236 : vector<1x512xf32>
    %239 = math.log %238 : vector<1x512xf32>
    %240 = arith.subf %232, %239 : vector<1x512xf32>
    %241 = arith.subf %218, %240 : vector<1x512xf32>
    %c512_i32 = arith.constant 512 : i32
    %242 = arith.muli %arg0, %c512_i32 : i32
    %243 = tpu.iota {dimensions = array<i32: 1>} : vector<1x512xi32>
    %244 = vector.broadcast %242 : i32 to vector<1x512xi32>
    %245 = arith.addi %244, %243 : vector<1x512xi32>
    %c1024_i32 = arith.constant 1024 : i32
    %246 = vector.broadcast %c1024_i32 : i32 to vector<1x512xi32>
    %247 = arith.cmpi slt, %245, %246 : vector<1x512xi32>
    %cst_101 = arith.constant 0.000000e+00 : f32
    %248 = vector.broadcast %cst_101 : f32 to vector<1x512xf32>
    %249 = arith.select %247, %241, %248 : vector<1x512xi1>, vector<1x512xf32>
    %c0_102 = arith.constant 0 : index
    %c0_103 = arith.constant 0 : index
    %250 = vector.load %arg4[%c0_102, %c0_103] : memref<1x512xf32, #tpu.memory_space<vmem>>, vector<1x512xf32>
    tpu.vector_store %arg4[%c0_102, %c0_103], %249 {strides = array<i32>} : memref<1x512xf32, #tpu.memory_space<vmem>>, vector<1x512xf32>,
    return
  }
  func.func @transform_0(%arg0: i32) -> i32 {
    %c0_i32 = arith.constant 0 : i32
    %c0_i32_0 = arith.constant 0 : i32
    return %c0_i32 : i32
  }
  func.func @transform_1(%arg0: i32) -> (i32, i32, i32) {
    %c0_i32 = arith.constant 0 : i32
    %c0_i32_0 = arith.constant 0 : i32
    %c0_i32_1 = arith.constant 0 : i32
    return %c0_i32, %c0_i32_0, %arg0 : i32, i32, i32
  }
  func.func @transform_2(%arg0: i32) -> (i32, i32, i32) {
    %c0_i32 = arith.constant 0 : i32
    %c0_i32_0 = arith.constant 0 : i32
    %c0_i32_1 = arith.constant 0 : i32
    return %c0_i32, %c0_i32_0, %arg0 : i32, i32, i32
  }
  func.func @transform_3(%arg0: i32) -> (i32, i32) {
    %c0_i32 = arith.constant 0 : i32
    %c0_i32_0 = arith.constant 0 : i32
    return %c0_i32, %arg0 : i32, i32
  }
}

</mosaic_0001>

<bundles_post_ra>
// kernel: _lambda_.1
= control target key start
LH: loop header
LB: loop body
LE: loop exit
PB: predicated region body
PF: predicated region fallthrough
CT: control target
= control target key end

     0   :  { %8 = vsyncpa [#allocation3], 0  ;;  %s2424_s12 = smov 0   ;;  %s2426_s13 = smov 0   ;;  %s3481_s0 = inlined_call_operand.vmem [shape: f32[5], index: 0, kind: input, shape index: {}]   ;;  %s3482_s1 = inlined_call_operand.vmem [shape: bf16[5,32,1024], index: 1, kind: input, shape index: {}]   ;;  %s3483_s2 = inlined_call_operand.vmem [shape: bf16[9,32,1024], index: 2, kind: input, shape index: {}]   ;;  %s3484_s3 = inlined_call_operand.vmem [shape: f32[1,1024], index: 3, kind: output, shape index: {}]  }
   0x1   :  { %s2428_s14 = smov 0  }
   0x2 LB: > { %s2440_s15 = sadd.s32 4294967295, %s2401_s14   ;;  %s2443_s16 = sadd.s32 1, %s2401_s14   ;;  %s2401_s14 = sphi %s2428_s14, %s3650_s14   ;;  %s2397_s13 = sphi %s2426_s13, %s3649_s13   ;;  %s2393_s12 = sphi %s2424_s12, %s3648_s12  }
   0x3   : > { %s39_s17 = ssub.s32 %s2401_s14, %s2443_s16  ;;  %s42_s18 = sadd.s32 1, %s2397_s13 }
   0x4   : > { %p40_p0 = scmp.eq.s32.totalorder %s39_s17, 0  ;;  %p49_p1 = scmp.ne.s32.totalorder %s2397_s13, %s2393_s12 }
   0x5   : > { %p50_p2 = scmp.eq.s32.totalorder %s2401_s14, 0  ;;  %p2026_p3 = scmp.ge.s32.totalorder %s2401_s14, 1 }
   0x6   : > { %s2453_s19 = scalar_select %p40_p0, %s2397_s13, %s42_s18  }
   0x7   : > { %p2455_p4 = por %p50_p2, %p49_p1  ;;  %p118_p5 = scmp.lt.s32.totalorder %s2401_s14, 3 }
   0x8   : > { %p2189_p6 = scmp.eq.s32.totalorder %s2440_s15, 0  ;;  %s130_s24 = sshll.u32 %s3481_s0, 4  ;;  %s131_s24 = int_to_ptr.vmem [resolvable:$true] %s130_s24 }
   0x9   : > { %p2461_p7 = pnand %p2026_p3, %p118_p5  ;;  %s2403_s25 = smov [#allocation2]  }
   0xa   : > { %p2028_p10 = scmp.ge.s32.totalorder %s2401_s14, 2 }
   0xb   : > { %p2185_p8 = pneg %p2461_p7 }
   0xc   : > { %137 = sbr.rel (%p2028_p10) target bundleno = 137 (0x89), region = 20 }
   0xd   : > { %p2186_p9 = pnand %p2189_p6, %p2185_p8 }
   0xf   : > { %2188 = dma.vmem_to_smem (!%p2186_p9), %s131_s24, 16, %s2403_s25, [#allocation3]  }
  0x11   : > { %140 = sbr.rel (!%p2455_p4) target bundleno = 61 (0x3d), region = 24  ;;  %s142_s26 = sand.u32 (%p2455_p4), 1, %s2397_s13  }
  0x12   : > { %s2175_s27 = sshll.u32 (%p2455_p4), %s2401_s14, 4  ;;  %s2177_s28 = smul.u32 (%p2455_p4), 320, %s142_s26 }
  0x13   : > { %s2480_s4 = scalar_lea.vmem (%p2455_p4), %s3482_s1, %s2175_s27 }
  0x14   : > { %v160_v0 = vld [vmem:[%s2480_s4] sm:$0xff] (%p2455_p4)  ;;  %v162_v1 = vld [vmem:[%s2480_s4 + $0x8] sm:$0xff] (%p2455_p4)  ;;  %s2485_s5 = scalar_lea.vmem (%p2455_p4), [#allocation4], %s2177_s28 }
  0x15   : > { %v164_v2 = vld [vmem:[%s2480_s4 + $0x20] sm:$0xff] (%p2455_p4)  ;;  %161 = vst [vmem:[%s2485_s5] sm:$0xff] (%p2455_p4), %v160_v0  ;;  %v166_v3 = vld [vmem:[%s2480_s4 + $0x28] sm:$0xff] (%p2455_p4) }
  0x16   : > { %163 = vst [vmem:[%s2485_s5 + $0x8] sm:$0xff] %v162_v1  ;;  %v168_v4 = vld [vmem:[%s2480_s4 + $0x40] sm:$0xff]  ;;  %v170_v5 = vld [vmem:[%s2480_s4 + $0x48] sm:$0xff] }
  0x17   : > { %165 = vst [vmem:[%s2485_s5 + $0x10] sm:$0xff] %v164_v2  ;;  %v172_v6 = vld [vmem:[%s2480_s4 + $0x60] sm:$0xff]  ;;  %v174_v7 = vld [vmem:[%s2480_s4 + $0x68] sm:$0xff] }
  0x18   : > { %167 = vst [vmem:[%s2485_s5 + $0x18] sm:$0xff] %v166_v3  ;;  %v176_v8 = vld [vmem:[%s2480_s4 + $0x80] sm:$0xff]  ;;  %v178_v9 = vld [vmem:[%s2480_s4 + $0x88] sm:$0xff] }
  0x19   : > { %169 = vst [vmem:[%s2485_s5 + $0x20] sm:$0xff] %v168_v4  ;;  %v180_v10 = vld [vmem:[%s2480_s4 + $0xa0] sm:$0xff]  ;;  %v182_v11 = vld [vmem:[%s2480_s4 + $0xa8] sm:$0xff] }
  0x1a   : > { %171 = vst [vmem:[%s2485_s5 + $0x28] sm:$0xff] %v170_v5  ;;  %v184_v12 = vld [vmem:[%s2480_s4 + $0xc0] sm:$0xff]  ;;  %v186_v13 = vld [vmem:[%s2480_s4 + $0xc8] sm:$0xff] }
  0x1b   : > { %173 = vst [vmem:[%s2485_s5 + $0x30] sm:$0xff] %v172_v6  ;;  %v188_v14 = vld [vmem:[%s2480_s4 + $0xe0] sm:$0xff]  ;;  %v190_v15 = vld [vmem:[%s2480_s4 + $0xe8] sm:$0xff] }
  0x1c   : > { %175 = vst [vmem:[%s2485_s5 + $0x38] sm:$0xff] %v174_v7  ;;  %v192_v16 = vld [vmem:[%s2480_s4 + $0x100] sm:$0xff]  ;;  %v194_v17 = vld [vmem:[%s2480_s4 + $0x108] sm:$0xff] }
  0x1d   : > { %177 = vst [vmem:[%s2485_s5 + $0x40] sm:$0xff] %v176_v8  ;;  %v196_v18 = vld [vmem:[%s2480_s4 + $0x120] sm:$0xff]  ;;  %v198_v19 = vld [vmem:[%s2480_s4 + $0x128] sm:$0xff] }
  0x1e   : > { %179 = vst [vmem:[%s2485_s5 + $0x48] sm:$0xff] %v178_v9  ;;  %v200_v20 = vld [vmem:[%s2480_s4 + $0x140] sm:$0xff]  ;;  %v202_v21 = vld [vmem:[%s2480_s4 + $0x148] sm:$0xff] }
  0x1f   : > { %181 = vst [vmem:[%s2485_s5 + $0x50] sm:$0xff] %v180_v10  ;;  %v204_v22 = vld [vmem:[%s2480_s4 + $0x160] sm:$0xff]  ;;  %v206_v23 = vld [vmem:[%s2480_s4 + $0x168] sm:$0xff] }
  0x20   : > { %183 = vst [vmem:[%s2485_s5 + $0x58] sm:$0xff] %v182_v11  ;;  %v208_v24 = vld [vmem:[%s2480_s4 + $0x180] sm:$0xff]  ;;  %v210_v25 = vld [vmem:[%s2480_s4 + $0x188] sm:$0xff] }
  0x21   : > { %185 = vst [vmem:[%s2485_s5 + $0x60] sm:$0xff] %v184_v12  ;;  %v212_v26 = vld [vmem:[%s2480_s4 + $0x1a0] sm:$0xff]  ;;  %v214_v27 = vld [vmem:[%s2480_s4 + $0x1a8] sm:$0xff] }
  0x22   : > { %187 = vst [vmem:[%s2485_s5 + $0x68] sm:$0xff] %v186_v13  ;;  %v216_v28 = vld [vmem:[%s2480_s4 + $0x1c0] sm:$0xff]  ;;  %v218_v29 = vld [vmem:[%s2480_s4 + $0x1c8] sm:$0xff] }
  0x23   : > { %189 = vst [vmem:[%s2485_s5 + $0x70] sm:$0xff] %v188_v14  ;;  %v220_v30 = vld [vmem:[%s2480_s4 + $0x1e0] sm:$0xff]  ;;  %v222_v31 = vld [vmem:[%s2480_s4 + $0x1e8] sm:$0xff] }
  0x24   : > { %191 = vst [vmem:[%s2485_s5 + $0x78] sm:$0xff] %v190_v15  ;;  %v224_v32 = vld [vmem:[%s2480_s4 + $0x200] sm:$0xff]  ;;  %v226_v33 = vld [vmem:[%s2480_s4 + $0x208] sm:$0xff] }
  0x25   : > { %193 = vst [vmem:[%s2485_s5 + $0x80] sm:$0xff] %v192_v16  ;;  %v228_v34 = vld [vmem:[%s2480_s4 + $0x220] sm:$0xff]  ;;  %v230_v35 = vld [vmem:[%s2480_s4 + $0x228] sm:$0xff] }
  0x26   : > { %195 = vst [vmem:[%s2485_s5 + $0x88] sm:$0xff] %v194_v17  ;;  %v232_v36 = vld [vmem:[%s2480_s4 + $0x240] sm:$0xff]  ;;  %v234_v37 = vld [vmem:[%s2480_s4 + $0x248] sm:$0xff] }
  0x27   : > { %197 = vst [vmem:[%s2485_s5 + $0x90] sm:$0xff] %v196_v18  ;;  %v236_v38 = vld [vmem:[%s2480_s4 + $0x260] sm:$0xff]  ;;  %v238_v39 = vld [vmem:[%s2480_s4 + $0x268] sm:$0xff] }
  0x28   : > { %199 = vst [vmem:[%s2485_s5 + $0x98] sm:$0xff] %v198_v19 }
  0x29   : > { %201 = vst [vmem:[%s2485_s5 + $0xa0] sm:$0xff] %v200_v20 }
  0x2a   : > { %203 = vst [vmem:[%s2485_s5 + $0xa8] sm:$0xff] %v202_v21 }
  0x2b   : > { %205 = vst [vmem:[%s2485_s5 + $0xb0] sm:$0xff] %v204_v22 }
  0x2c   : > { %207 = vst [vmem:[%s2485_s5 + $0xb8] sm:$0xff] %v206_v23 }
  0x2d   : > { %209 = vst [vmem:[%s2485_s5 + $0xc0] sm:$0xff] %v208_v24 }
  0x2e   : > { %211 = vst [vmem:[%s2485_s5 + $0xc8] sm:$0xff] %v210_v25 }
  0x2f   : > { %213 = vst [vmem:[%s2485_s5 + $0xd0] sm:$0xff] %v212_v26 }
  0x30   : > { %215 = vst [vmem:[%s2485_s5 + $0xd8] sm:$0xff] %v214_v27 }
  0x31   : > { %217 = vst [vmem:[%s2485_s5 + $0xe0] sm:$0xff] %v216_v28 }
  0x32   : > { %219 = vst [vmem:[%s2485_s5 + $0xe8] sm:$0xff] %v218_v29 }
  0x33   : > { %221 = vst [vmem:[%s2485_s5 + $0xf0] sm:$0xff] %v220_v30 }
  0x34   : > { %223 = vst [vmem:[%s2485_s5 + $0xf8] sm:$0xff] %v222_v31 }
  0x35   : > { %225 = vst [vmem:[%s2485_s5 + $0x100] sm:$0xff] %v224_v32 }
  0x36   : > { %227 = vst [vmem:[%s2485_s5 + $0x108] sm:$0xff] %v226_v33 }
  0x37   : > { %229 = vst [vmem:[%s2485_s5 + $0x110] sm:$0xff] %v228_v34 }
  0x38   : > { %231 = vst [vmem:[%s2485_s5 + $0x118] sm:$0xff] %v230_v35 }
  0x39   : > { %233 = vst [vmem:[%s2485_s5 + $0x120] sm:$0xff] %v232_v36 }
  0x3a   : > { %235 = vst [vmem:[%s2485_s5 + $0x128] sm:$0xff] %v234_v37 }
  0x3b   : > { %237 = vst [vmem:[%s2485_s5 + $0x130] sm:$0xff] %v236_v38 }
  0x3c   : > { %239 = vst [vmem:[%s2485_s5 + $0x138] sm:$0xff] %v238_v39 }
  0x3d PF: > { %245 = sbr.rel (!%p2455_p4) target bundleno = 137 (0x89), region = 47  ;;  %s247_s6 = sand.u32 (%p2455_p4), 1, %s2397_s13  }
  0x3e   : > { %s2176_s7 = sshll.u32 (%p2455_p4), %s2401_s14, 4  ;;  %s2178_s8 = smul.u32 (%p2455_p4), 576, %s247_s6 }
  0x3f   : > { %s2571_s11 = scalar_lea.vmem (%p2455_p4), %s3483_s2, %s2176_s7 }
  0x40   : > { %v265_v40 = vld [vmem:[%s2571_s11] sm:$0xff] (%p2455_p4)  ;;  %v267_v41 = vld [vmem:[%s2571_s11 + $0x8] sm:$0xff] (%p2455_p4)  ;;  %s2576_s14 = scalar_lea.vmem (%p2455_p4), [#allocation5], %s2178_s8 }
  0x41   : > { %v269_v42 = vld [vmem:[%s2571_s11 + $0x20] sm:$0xff] (%p2455_p4)  ;;  %266 = vst [vmem:[%s2576_s14] sm:$0xff] (%p2455_p4), %v265_v40  ;;  %v271_v43 = vld [vmem:[%s2571_s11 + $0x28] sm:$0xff] (%p2455_p4) }
  0x42   : > { %268 = vst [vmem:[%s2576_s14 + $0x8] sm:$0xff] %v267_v41  ;;  %v273_v44 = vld [vmem:[%s2571_s11 + $0x40] sm:$0xff]  ;;  %v275_v45 = vld [vmem:[%s2571_s11 + $0x48] sm:$0xff] }
  0x43   : > { %270 = vst [vmem:[%s2576_s14 + $0x10] sm:$0xff] %v269_v42  ;;  %v277_v46 = vld [vmem:[%s2571_s11 + $0x60] sm:$0xff]  ;;  %v279_v47 = vld [vmem:[%s2571_s11 + $0x68] sm:$0xff] }
  0x44   : > { %272 = vst [vmem:[%s2576_s14 + $0x18] sm:$0xff] %v271_v43  ;;  %v281_v48 = vld [vmem:[%s2571_s11 + $0x80] sm:$0xff]  ;;  %v283_v49 = vld [vmem:[%s2571_s11 + $0x88] sm:$0xff] }
  0x45   : > { %274 = vst [vmem:[%s2576_s14 + $0x20] sm:$0xff] %v273_v44  ;;  %v285_v50 = vld [vmem:[%s2571_s11 + $0xa0] sm:$0xff]  ;;  %v287_v51 = vld [vmem:[%s2571_s11 + $0xa8] sm:$0xff] }
  0x46   : > { %276 = vst [vmem:[%s2576_s14 + $0x28] sm:$0xff] %v275_v45  ;;  %v289_v52 = vld [vmem:[%s2571_s11 + $0xc0] sm:$0xff]  ;;  %v291_v53 = vld [vmem:[%s2571_s11 + $0xc8] sm:$0xff] }
  0x47   : > { %278 = vst [vmem:[%s2576_s14 + $0x30] sm:$0xff] %v277_v46  ;;  %v293_v54 = vld [vmem:[%s2571_s11 + $0xe0] sm:$0xff]  ;;  %v295_v55 = vld [vmem:[%s2571_s11 + $0xe8] sm:$0xff] }
  0x48   : > { %280 = vst [vmem:[%s2576_s14 + $0x38] sm:$0xff] %v279_v47  ;;  %v297_v56 = vld [vmem:[%s2571_s11 + $0x100] sm:$0xff]  ;;  %v299_v57 = vld [vmem:[%s2571_s11 + $0x108] sm:$0xff] }
  0x49   : > { %282 = vst [vmem:[%s2576_s14 + $0x40] sm:$0xff] %v281_v48  ;;  %v301_v58 = vld [vmem:[%s2571_s11 + $0x120] sm:$0xff]  ;;  %v303_v59 = vld [vmem:[%s2571_s11 + $0x128] sm:$0xff] }
  0x4a   : > { %284 = vst [vmem:[%s2576_s14 + $0x48] sm:$0xff] %v283_v49  ;;  %v305_v60 = vld [vmem:[%s2571_s11 + $0x140] sm:$0xff]  ;;  %v307_v61 = vld [vmem:[%s2571_s11 + $0x148] sm:$0xff] }
  0x4b   : > { %286 = vst [vmem:[%s2576_s14 + $0x50] sm:$0xff] %v285_v50  ;;  %v309_v62 = vld [vmem:[%s2571_s11 + $0x160] sm:$0xff]  ;;  %v311_v63 = vld [vmem:[%s2571_s11 + $0x168] sm:$0xff] }
  0x4c   : > { %288 = vst [vmem:[%s2576_s14 + $0x58] sm:$0xff] %v287_v51  ;;  %v313_v0 = vld [vmem:[%s2571_s11 + $0x180] sm:$0xff]  ;;  %v315_v1 = vld [vmem:[%s2571_s11 + $0x188] sm:$0xff] }
  0x4d   : > { %290 = vst [vmem:[%s2576_s14 + $0x60] sm:$0xff] %v289_v52  ;;  %v317_v2 = vld [vmem:[%s2571_s11 + $0x1a0] sm:$0xff]  ;;  %v319_v3 = vld [vmem:[%s2571_s11 + $0x1a8] sm:$0xff] }
  0x4e   : > { %292 = vst [vmem:[%s2576_s14 + $0x68] sm:$0xff] %v291_v53  ;;  %v321_v4 = vld [vmem:[%s2571_s11 + $0x1c0] sm:$0xff]  ;;  %v323_v5 = vld [vmem:[%s2571_s11 + $0x1c8] sm:$0xff] }
  0x4f   : > { %294 = vst [vmem:[%s2576_s14 + $0x70] sm:$0xff] %v293_v54  ;;  %v325_v6 = vld [vmem:[%s2571_s11 + $0x1e0] sm:$0xff]  ;;  %v327_v7 = vld [vmem:[%s2571_s11 + $0x1e8] sm:$0xff] }
  0x50   : > { %296 = vst [vmem:[%s2576_s14 + $0x78] sm:$0xff] %v295_v55  ;;  %v329_v8 = vld [vmem:[%s2571_s11 + $0x200] sm:$0xff]  ;;  %v331_v9 = vld [vmem:[%s2571_s11 + $0x208] sm:$0xff] }
  0x51   : > { %298 = vst [vmem:[%s2576_s14 + $0x80] sm:$0xff] %v297_v56  ;;  %v333_v10 = vld [vmem:[%s2571_s11 + $0x220] sm:$0xff]  ;;  %v335_v11 = vld [vmem:[%s2571_s11 + $0x228] sm:$0xff] }
  0x52   : > { %300 = vst [vmem:[%s2576_s14 + $0x88] sm:$0xff] %v299_v57  ;;  %v337_v12 = vld [vmem:[%s2571_s11 + $0x240] sm:$0xff]  ;;  %v339_v13 = vld [vmem:[%s2571_s11 + $0x248] sm:$0xff] }
  0x53   : > { %302 = vst [vmem:[%s2576_s14 + $0x90] sm:$0xff] %v301_v58  ;;  %v341_v14 = vld [vmem:[%s2571_s11 + $0x260] sm:$0xff]  ;;  %v343_v15 = vld [vmem:[%s2571_s11 + $0x268] sm:$0xff] }
  0x54   : > { %304 = vst [vmem:[%s2576_s14 + $0x98] sm:$0xff] %v303_v59  ;;  %v345_v16 = vld [vmem:[%s2571_s11 + $0x280] sm:$0xff]  ;;  %v347_v17 = vld [vmem:[%s2571_s11 + $0x288] sm:$0xff] }
  0x55   : > { %306 = vst [vmem:[%s2576_s14 + $0xa0] sm:$0xff] %v305_v60  ;;  %v349_v18 = vld [vmem:[%s2571_s11 + $0x2a0] sm:$0xff]  ;;  %v351_v19 = vld [vmem:[%s2571_s11 + $0x2a8] sm:$0xff] }
  0x56   : > { %308 = vst [vmem:[%s2576_s14 + $0xa8] sm:$0xff] %v307_v61  ;;  %v353_v20 = vld [vmem:[%s2571_s11 + $0x2c0] sm:$0xff]  ;;  %v355_v21 = vld [vmem:[%s2571_s11 + $0x2c8] sm:$0xff] }
  0x57   : > { %310 = vst [vmem:[%s2576_s14 + $0xb0] sm:$0xff] %v309_v62  ;;  %v357_v22 = vld [vmem:[%s2571_s11 + $0x2e0] sm:$0xff]  ;;  %v359_v23 = vld [vmem:[%s2571_s11 + $0x2e8] sm:$0xff] }
  0x58   : > { %312 = vst [vmem:[%s2576_s14 + $0xb8] sm:$0xff] %v311_v63  ;;  %v361_v24 = vld [vmem:[%s2571_s11 + $0x300] sm:$0xff]  ;;  %v363_v25 = vld [vmem:[%s2571_s11 + $0x308] sm:$0xff] }
  0x59   : > { %314 = vst [vmem:[%s2576_s14 + $0xc0] sm:$0xff] %v313_v0  ;;  %v365_v26 = vld [vmem:[%s2571_s11 + $0x320] sm:$0xff]  ;;  %v367_v27 = vld [vmem:[%s2571_s11 + $0x328] sm:$0xff] }
  0x5a   : > { %316 = vst [vmem:[%s2576_s14 + $0xc8] sm:$0xff] %v315_v1  ;;  %v369_v28 = vld [vmem:[%s2571_s11 + $0x340] sm:$0xff]  ;;  %v371_v29 = vld [vmem:[%s2571_s11 + $0x348] sm:$0xff] }
  0x5b   : > { %318 = vst [vmem:[%s2576_s14 + $0xd0] sm:$0xff] %v317_v2  ;;  %v373_v30 = vld [vmem:[%s2571_s11 + $0x360] sm:$0xff]  ;;  %v375_v31 = vld [vmem:[%s2571_s11 + $0x368] sm:$0xff] }
  0x5c   : > { %320 = vst [vmem:[%s2576_s14 + $0xd8] sm:$0xff] %v319_v3  ;;  %v377_v32 = vld [vmem:[%s2571_s11 + $0x380] sm:$0xff]  ;;  %v379_v33 = vld [vmem:[%s2571_s11 + $0x388] sm:$0xff] }
  0x5d   : > { %322 = vst [vmem:[%s2576_s14 + $0xe0] sm:$0xff] %v321_v4  ;;  %v381_v34 = vld [vmem:[%s2571_s11 + $0x3a0] sm:$0xff]  ;;  %v383_v35 = vld [vmem:[%s2571_s11 + $0x3a8] sm:$0xff] }
  0x5e   : > { %324 = vst [vmem:[%s2576_s14 + $0xe8] sm:$0xff] %v323_v5  ;;  %v385_v36 = vld [vmem:[%s2571_s11 + $0x3c0] sm:$0xff]  ;;  %v387_v37 = vld [vmem:[%s2571_s11 + $0x3c8] sm:$0xff] }
  0x5f   : > { %326 = vst [vmem:[%s2576_s14 + $0xf0] sm:$0xff] %v325_v6  ;;  %v389_v38 = vld [vmem:[%s2571_s11 + $0x3e0] sm:$0xff]  ;;  %v391_v39 = vld [vmem:[%s2571_s11 + $0x3e8] sm:$0xff] }
  0x60   : > { %328 = vst [vmem:[%s2576_s14 + $0xf8] sm:$0xff] %v327_v7  ;;  %v393_v40 = vld [vmem:[%s2571_s11 + $0x400] sm:$0xff]  ;;  %v395_v41 = vld [vmem:[%s2571_s11 + $0x408] sm:$0xff] }
  0x61   : > { %330 = vst [vmem:[%s2576_s14 + $0x100] sm:$0xff] %v329_v8  ;;  %v397_v42 = vld [vmem:[%s2571_s11 + $0x420] sm:$0xff]  ;;  %v399_v43 = vld [vmem:[%s2571_s11 + $0x428] sm:$0xff] }
  0x62   : > { %332 = vst [vmem:[%s2576_s14 + $0x108] sm:$0xff] %v331_v9  ;;  %v401_v44 = vld [vmem:[%s2571_s11 + $0x440] sm:$0xff]  ;;  %v403_v45 = vld [vmem:[%s2571_s11 + $0x448] sm:$0xff] }
  0x63   : > { %334 = vst [vmem:[%s2576_s14 + $0x110] sm:$0xff] %v333_v10  ;;  %v405_v46 = vld [vmem:[%s2571_s11 + $0x460] sm:$0xff]  ;;  %v407_v47 = vld [vmem:[%s2571_s11 + $0x468] sm:$0xff] }
  0x64   : > { %336 = vst [vmem:[%s2576_s14 + $0x118] sm:$0xff] %v335_v11 }
  0x65   : > { %338 = vst [vmem:[%s2576_s14 + $0x120] sm:$0xff] %v337_v12 }
  0x66   : > { %340 = vst [vmem:[%s2576_s14 + $0x128] sm:$0xff] %v339_v13 }
  0x67   : > { %342 = vst [vmem:[%s2576_s14 + $0x130] sm:$0xff] %v341_v14 }
  0x68   : > { %344 = vst [vmem:[%s2576_s14 + $0x138] sm:$0xff] %v343_v15 }
  0x69   : > { %346 = vst [vmem:[%s2576_s14 + $0x140] sm:$0xff] %v345_v16 }
  0x6a   : > { %348 = vst [vmem:[%s2576_s14 + $0x148] sm:$0xff] %v347_v17 }
  0x6b   : > { %350 = vst [vmem:[%s2576_s14 + $0x150] sm:$0xff] %v349_v18 }
  0x6c   : > { %352 = vst [vmem:[%s2576_s14 + $0x158] sm:$0xff] %v351_v19 }
  0x6d   : > { %354 = vst [vmem:[%s2576_s14 + $0x160] sm:$0xff] %v353_v20 }
  0x6e   : > { %356 = vst [vmem:[%s2576_s14 + $0x168] sm:$0xff] %v355_v21 }
  0x6f   : > { %358 = vst [vmem:[%s2576_s14 + $0x170] sm:$0xff] %v357_v22 }
  0x70   : > { %360 = vst [vmem:[%s2576_s14 + $0x178] sm:$0xff] %v359_v23 }
  0x71   : > { %362 = vst [vmem:[%s2576_s14 + $0x180] sm:$0xff] %v361_v24 }
  0x72   : > { %364 = vst [vmem:[%s2576_s14 + $0x188] sm:$0xff] %v363_v25 }
  0x73   : > { %366 = vst [vmem:[%s2576_s14 + $0x190] sm:$0xff] %v365_v26 }
  0x74   : > { %368 = vst [vmem:[%s2576_s14 + $0x198] sm:$0xff] %v367_v27 }
  0x75   : > { %370 = vst [vmem:[%s2576_s14 + $0x1a0] sm:$0xff] %v369_v28 }
  0x76   : > { %372 = vst [vmem:[%s2576_s14 + $0x1a8] sm:$0xff] %v371_v29 }
  0x77   : > { %374 = vst [vmem:[%s2576_s14 + $0x1b0] sm:$0xff] %v373_v30 }
  0x78   : > { %376 = vst [vmem:[%s2576_s14 + $0x1b8] sm:$0xff] %v375_v31 }
  0x79   : > { %378 = vst [vmem:[%s2576_s14 + $0x1c0] sm:$0xff] %v377_v32 }
  0x7a   : > { %380 = vst [vmem:[%s2576_s14 + $0x1c8] sm:$0xff] %v379_v33 }
  0x7b   : > { %382 = vst [vmem:[%s2576_s14 + $0x1d0] sm:$0xff] %v381_v34 }
  0x7c   : > { %384 = vst [vmem:[%s2576_s14 + $0x1d8] sm:$0xff] %v383_v35 }
  0x7d   : > { %386 = vst [vmem:[%s2576_s14 + $0x1e0] sm:$0xff] %v385_v36 }
  0x7e   : > { %388 = vst [vmem:[%s2576_s14 + $0x1e8] sm:$0xff] %v387_v37 }
  0x7f   : > { %390 = vst [vmem:[%s2576_s14 + $0x1f0] sm:$0xff] %v389_v38 }
  0x80   : > { %392 = vst [vmem:[%s2576_s14 + $0x1f8] sm:$0xff] %v391_v39 }
  0x81   : > { %394 = vst [vmem:[%s2576_s14 + $0x200] sm:$0xff] %v393_v40 }
  0x82   : > { %396 = vst [vmem:[%s2576_s14 + $0x208] sm:$0xff] %v395_v41 }
  0x83   : > { %398 = vst [vmem:[%s2576_s14 + $0x210] sm:$0xff] %v397_v42 }
  0x84   : > { %400 = vst [vmem:[%s2576_s14 + $0x218] sm:$0xff] %v399_v43 }
  0x85   : > { %402 = vst [vmem:[%s2576_s14 + $0x220] sm:$0xff] %v401_v44 }
  0x86   : > { %404 = vst [vmem:[%s2576_s14 + $0x228] sm:$0xff] %v403_v45 }
  0x87   : > { %406 = vst [vmem:[%s2576_s14 + $0x230] sm:$0xff] %v405_v46 }
  0x88   : > { %408 = vst [vmem:[%s2576_s14 + $0x238] sm:$0xff] %v407_v47 }
  0x89 PF: > { %417 = sbr.rel (%p2461_p7) target bundleno = 482 (0x1e2), region = 70 }
  0x8e   : > { %2388 = dma.done.wait (%p2189_p6), [#allocation3], 16  }
  0x8f   : > { %2390 = vsyncadd (%p2189_p6), [#allocation3], 4294967280  ;;  %s425_s17 = sand.u32 1, %s2393_s12  }
  0x90   : > { %s2179_s18 = smul.u32 320, %s425_s17 }
  0x91   : > { %s2180_s20 = smul.u32 576, %s425_s17 }
  0x92   : > { %s2726_s22 = scalar_lea.vmem [#allocation4], %s2179_s18 }
  0x93   : > { %s2728_s23 = scalar_lea.vmem [#allocation5], %s2180_s20 }
  0x94   : > { %438 = sfence }
  0x95   : > { %s2730_s24 = sld [smem:[#allocation2]]  ;;  %v467_v48 = vld [vmem:[%s2726_s22] sm:$0xff]  ;;  %v468_v49 = vld [vmem:[%s2726_s22 + $0x8] sm:$0xff]  ;;  %v469_v50 = vld [vmem:[%s2726_s22 + $0x10] sm:$0xff]  ;;  %s2172_s27 = sshll.u32 %s2440_s15, 9  ;;  %vm1926_vm4 = vcmask 1040384  }
  0x96   : > { %v470_v51 = vld [vmem:[%s2726_s22 + $0x18] sm:$0xff]  ;;  %v471_v52 = vld [vmem:[%s2726_s22 + $0x20] sm:$0xff]  ;;  %v472_v53 = vld [vmem:[%s2726_s22 + $0x28] sm:$0xff]  ;;  %v475_v54 = vunpack.c.l.bf16 %v467_v48  ;;  %v476_v55 = vunpack.c.h.bf16 %v467_v48  ;;  %v477_v56 = vunpack.c.l.bf16 %v468_v49  ;;  %v478_v57 = vunpack.c.h.bf16 %v468_v49  ;;  %s2744_s12 = sld [smem:[#allocation2 + $0x1]]  ;;  %s2035_s28 = sshll.u32 %s2440_s15, 2 }
  0x97   : > { %v473_v58 = vld [vmem:[%s2726_s22 + $0x30] sm:$0xff]  ;;  %v474_v59 = vld [vmem:[%s2726_s22 + $0x38] sm:$0xff]  ;;  %v479_v60 = vunpack.c.l.bf16 %v469_v50  ;;  %v480_v61 = vunpack.c.h.bf16 %v469_v50  ;;  %v481_v62 = vunpack.c.l.bf16 %v470_v51  ;;  %v482_v63 = vunpack.c.h.bf16 %v470_v51  ;;  %v2037_v0 = vld [vmem:[%s2726_s22 + $0x40] sm:$0xff]  ;;  %s2757_s21 = sld [smem:[#allocation2 + $0x2]]  ;;  %p462_p11 = scmp.lt.s32.totalorder %s2035_s28, 7 }
  0x98   : > { %v483_v1 = vunpack.c.l.bf16 %v471_v52  ;;  %v484_v2 = vunpack.c.h.bf16 %v471_v52  ;;  %v485_v3 = vunpack.c.l.bf16 %v472_v53  ;;  %v486_v4 = vunpack.c.h.bf16 %v472_v53  ;;  %v2038_v5 = vld [vmem:[%s2726_s22 + $0x48] sm:$0xff]  ;;  %v2039_v6 = vld [vmem:[%s2726_s22 + $0x50] sm:$0xff]  ;;  %v2040_v7 = vld [vmem:[%s2726_s22 + $0x58] sm:$0xff]  ;;  %s2771_s25 = sld [smem:[#allocation2 + $0x3]] }
  0x99   : > { %v487_v8 = vunpack.c.l.bf16 %v473_v58  ;;  %v488_v9 = vunpack.c.h.bf16 %v473_v58  ;;  %v489_v10 = vunpack.c.l.bf16 %v474_v59  ;;  %v490_v11 = vunpack.c.h.bf16 %v474_v59  ;;  %v2041_v28 = vld [vmem:[%s2726_s22 + $0x60] sm:$0xff]  ;;  %v2042_v29 = vld [vmem:[%s2726_s22 + $0x68] sm:$0xff]  ;;  %v2043_v34 = vld [vmem:[%s2726_s22 + $0x70] sm:$0xff]  ;;  %s2790_s26 = sld [smem:[#allocation2 + $0x4]]  ;;  %s3652_s28 = smov (!%p462_p11, %s2035_s28), 7 }
  0x9a   : > { %v518_v12 = vunpack.c.l.bf16 %v2037_v0  ;;  %v519_v13 = vunpack.c.h.bf16 %v2037_v0  ;;  %v520_v14 = vunpack.c.l.bf16 %v2038_v5  ;;  %v521_v15 = vunpack.c.h.bf16 %v2038_v5  ;;  %v2044_v35 = vld [vmem:[%s2726_s22 + $0x78] sm:$0xff]  ;;  %v2752_v40 = vld [vmem:[%s2726_s22 + $0x80] sm:$0xff]  ;;  %s464_s30 = scalar_lea.vmem %s3484_s3, %s3652_s28 }
  0x9b   : > { %v491_v16 = vstv %s2730_s24  ;;  %v522_v17 = vunpack.c.l.bf16 %v2039_v6  ;;  %v523_v18 = vunpack.c.h.bf16 %v2039_v6  ;;  %v524_v19 = vunpack.c.l.bf16 %v2040_v7 }
  0x9c   : > { %v492_v20 = vmul.f32 %v491_v16, %v475_v54  ;;  %v493_v21 = vmul.f32 %v491_v16, %v476_v55  ;;  %v494_v22 = vmul.f32 %v491_v16, %v477_v56  ;;  %v495_v23 = vmul.f32 %v491_v16, %v478_v57 }
  0x9d   : > { %v496_v24 = vmul.f32 %v491_v16, %v479_v60  ;;  %v497_v25 = vmul.f32 %v491_v16, %v480_v61  ;;  %v498_v26 = vmul.f32 %v491_v16, %v481_v62  ;;  %v499_v27 = vmul.f32 %v491_v16, %v482_v63 }
  0x9e   : > { %v500_v30 = vmul.f32 %v491_v16, %v483_v1  ;;  %v501_v31 = vmul.f32 %v491_v16, %v484_v2  ;;  %v502_v32 = vmul.f32 %v491_v16, %v485_v3  ;;  %v503_v33 = vmul.f32 %v491_v16, %v486_v4 }
  0x9f   : > { %v504_v36 = vmul.f32 %v491_v16, %v487_v8  ;;  %v505_v37 = vmul.f32 %v491_v16, %v488_v9  ;;  %v506_v38 = vmul.f32 %v491_v16, %v489_v10  ;;  %v507_v39 = vmul.f32 %v491_v16, %v490_v11 }
  0xa0   : > { %v525_v41 = vunpack.c.h.bf16 %v2040_v7  ;;  %v526_v42 = vunpack.c.l.bf16 %v2041_v28  ;;  %v527_v43 = vunpack.c.h.bf16 %v2041_v28  ;;  %v528_v44 = vunpack.c.l.bf16 %v2042_v29  ;;  %v2050_v28 = vld [vmem:[%s2726_s22 + $0xa0] sm:$0xff] }
  0xa1   : > { %v529_v45 = vunpack.c.h.bf16 %v2042_v29  ;;  %v530_v46 = vunpack.c.l.bf16 %v2043_v34  ;;  %v531_v47 = vunpack.c.h.bf16 %v2043_v34  ;;  %v532_v48 = vunpack.c.l.bf16 %v2044_v35 }
  0xa2   : > { %v533_v49 = vunpack.c.h.bf16 %v2044_v35  ;;  %v534_v50 = vstv %s2744_s12  ;;  %v577_v51 = vunpack.c.l.bf16 %v2752_v40  ;;  %v578_v52 = vunpack.c.h.bf16 %v2752_v40 }
  0xa3   : > { %v535_v53 = vmul.f32 %v534_v50, %v518_v12  ;;  %v536_v54 = vmul.f32 %v534_v50, %v519_v13  ;;  %v537_v55 = vmul.f32 %v534_v50, %v520_v14  ;;  %v538_v56 = vmul.f32 %v534_v50, %v521_v15  ;;  %v2047_v13 = vld [vmem:[%s2726_s22 + $0x88] sm:$0xff]  ;;  %v2048_v14 = vld [vmem:[%s2726_s22 + $0x90] sm:$0xff] }
  0xa4   : > { %v539_v57 = vmul.f32 %v534_v50, %v522_v17  ;;  %v540_v58 = vmul.f32 %v534_v50, %v523_v18  ;;  %v541_v59 = vmul.f32 %v534_v50, %v524_v19  ;;  %v542_v60 = vmul.f32 %v534_v50, %v525_v41  ;;  %v2049_v19 = vld [vmem:[%s2726_s22 + $0x98] sm:$0xff] }
  0xa5   : > { %v543_v61 = vmul.f32 %v534_v50, %v526_v42  ;;  %v544_v62 = vmul.f32 %v534_v50, %v527_v43  ;;  %v545_v63 = vmul.f32 %v534_v50, %v528_v44  ;;  %v546_v0 = vmul.f32 %v534_v50, %v529_v45 }
  0xa6   : > { %v547_v1 = vmul.f32 %v534_v50, %v530_v46  ;;  %v548_v2 = vmul.f32 %v534_v50, %v531_v47  ;;  %v549_v3 = vmul.f32 %v534_v50, %v532_v48  ;;  %v550_v4 = vmul.f32 %v534_v50, %v533_v49 }
  0xa7   : > { %v551_v5 = vadd.f32 %v535_v53, %v492_v20  ;;  %v552_v6 = vadd.f32 %v536_v54, %v493_v21  ;;  %v553_v7 = vadd.f32 %v537_v55, %v494_v22  ;;  %v554_v8 = vadd.f32 %v538_v56, %v495_v23  ;;  %v2051_v23 = vld [vmem:[%s2726_s22 + $0xa8] sm:$0xff] }
  0xa8   : > { %v555_v9 = vadd.f32 %v539_v57, %v496_v24  ;;  %v556_v10 = vadd.f32 %v540_v58, %v497_v25  ;;  %v557_v11 = vadd.f32 %v541_v59, %v498_v26  ;;  %v558_v12 = vadd.f32 %v542_v60, %v499_v27  ;;  %v2052_v24 = vld [vmem:[%s2726_s22 + $0xb0] sm:$0xff]  ;;  %v2053_v25 = vld [vmem:[%s2726_s22 + $0xb8] sm:$0xff] }
  0xa9   : > { %v559_v15 = vadd.f32 %v543_v61, %v500_v30  ;;  %v560_v16 = vadd.f32 %v544_v62, %v501_v31  ;;  %v561_v17 = vadd.f32 %v545_v63, %v502_v32  ;;  %v562_v18 = vadd.f32 %v546_v0, %v503_v33 }
  0xaa   : > { %v563_v29 = vadd.f32 %v547_v1, %v504_v36  ;;  %v564_v20 = vadd.f32 %v548_v2, %v505_v37  ;;  %v565_v21 = vadd.f32 %v549_v3, %v506_v38  ;;  %v566_v22 = vadd.f32 %v550_v4, %v507_v39  ;;  %v2767_v37 = vld [vmem:[%s2726_s22 + $0xc0] sm:$0xff] }
  0xab   : > { %v579_v26 = vunpack.c.l.bf16 %v2047_v13  ;;  %v580_v34 = vunpack.c.h.bf16 %v2047_v13  ;;  %v581_v27 = vunpack.c.l.bf16 %v2048_v14  ;;  %v582_v35 = vunpack.c.h.bf16 %v2048_v14  ;;  %v2056_v13 = vld [vmem:[%s2726_s22 + $0xc8] sm:$0xff] }
  0xac   : > { %v583_v40 = vunpack.c.l.bf16 %v2049_v19  ;;  %v584_v30 = vunpack.c.h.bf16 %v2049_v19  ;;  %v585_v31 = vunpack.c.l.bf16 %v2050_v28  ;;  %v586_v32 = vunpack.c.h.bf16 %v2050_v28 }
  0xad   : > { %v587_v33 = vunpack.c.l.bf16 %v2051_v23  ;;  %v588_v41 = vunpack.c.h.bf16 %v2051_v23  ;;  %v589_v42 = vunpack.c.l.bf16 %v2052_v24  ;;  %v590_v36 = vunpack.c.h.bf16 %v2052_v24  ;;  %v2057_v24 = vld [vmem:[%s2726_s22 + $0xd0] sm:$0xff] }
  0xae   : > { %v591_v38 = vunpack.c.l.bf16 %v2053_v25  ;;  %v592_v39 = vunpack.c.h.bf16 %v2053_v25  ;;  %v593_v43 = vstv %s2757_s21  ;;  %v636_v44 = vunpack.c.l.bf16 %v2767_v37  ;;  %v2058_v25 = vld [vmem:[%s2726_s22 + $0xd8] sm:$0xff] }
  0xaf   : > { %v594_v45 = vmul.f32 %v593_v43, %v577_v51  ;;  %v595_v46 = vmul.f32 %v593_v43, %v578_v52  ;;  %v596_v47 = vmul.f32 %v593_v43, %v579_v26  ;;  %v597_v48 = vmul.f32 %v593_v43, %v580_v34  ;;  %v2060_v34 = vld [vmem:[%s2726_s22 + $0xe8] sm:$0xff] }
  0xb0   : > { %v598_v49 = vmul.f32 %v593_v43, %v581_v27  ;;  %v599_v50 = vmul.f32 %v593_v43, %v582_v35  ;;  %v600_v53 = vmul.f32 %v593_v43, %v583_v40  ;;  %v601_v54 = vmul.f32 %v593_v43, %v584_v30  ;;  %v2062_v27 = vld [vmem:[%s2726_s22 + $0xf8] sm:$0xff] }
  0xb1   : > { %v602_v55 = vmul.f32 %v593_v43, %v585_v31  ;;  %v603_v56 = vmul.f32 %v593_v43, %v586_v32  ;;  %v604_v57 = vmul.f32 %v593_v43, %v587_v33  ;;  %v605_v58 = vmul.f32 %v593_v43, %v588_v41 }
  0xb2   : > { %v606_v59 = vmul.f32 %v593_v43, %v589_v42  ;;  %v607_v60 = vmul.f32 %v593_v43, %v590_v36  ;;  %v608_v61 = vmul.f32 %v593_v43, %v591_v38  ;;  %v609_v62 = vmul.f32 %v593_v43, %v592_v39 }
  0xb3   : > { %v610_v51 = vadd.f32 %v594_v45, %v551_v5  ;;  %v611_v52 = vadd.f32 %v595_v46, %v552_v6  ;;  %v612_v63 = vadd.f32 %v596_v47, %v553_v7  ;;  %v613_v0 = vadd.f32 %v597_v48, %v554_v8  ;;  %v2059_v8 = vld [vmem:[%s2726_s22 + $0xe0] sm:$0xff] }
  0xb4   : > { %v614_v1 = vadd.f32 %v598_v49, %v555_v9  ;;  %v615_v2 = vadd.f32 %v599_v50, %v556_v10  ;;  %v616_v3 = vadd.f32 %v600_v53, %v557_v11  ;;  %v617_v4 = vadd.f32 %v601_v54, %v558_v12  ;;  %v2061_v9 = vld [vmem:[%s2726_s22 + $0xf0] sm:$0xff] }
  0xb5   : > { %v618_v14 = vadd.f32 %v602_v55, %v559_v15  ;;  %v619_v19 = vadd.f32 %v603_v56, %v560_v16  ;;  %v620_v28 = vadd.f32 %v604_v57, %v561_v17  ;;  %v621_v23 = vadd.f32 %v605_v58, %v562_v18 }
  0xb6   : > { %v622_v26 = vadd.f32 %v606_v59, %v563_v29  ;;  %v623_v5 = vadd.f32 %v607_v60, %v564_v20  ;;  %v624_v6 = vadd.f32 %v608_v61, %v565_v21  ;;  %v625_v7 = vadd.f32 %v609_v62, %v566_v22  ;;  %v2064_v62 = vld [vmem:[%s2726_s22 + $0x100] sm:$0xff] }
  0xb7   : > { %v637_v10 = vunpack.c.h.bf16 %v2767_v37  ;;  %v638_v11 = vunpack.c.l.bf16 %v2056_v13  ;;  %v639_v12 = vunpack.c.h.bf16 %v2056_v13  ;;  %v640_v35 = vunpack.c.l.bf16 %v2057_v24 }
  0xb8   : > { %v641_v15 = vunpack.c.h.bf16 %v2057_v24  ;;  %v642_v16 = vunpack.c.l.bf16 %v2058_v25  ;;  %v643_v17 = vunpack.c.h.bf16 %v2058_v25  ;;  %v644_v18 = vunpack.c.l.bf16 %v2059_v8 }
  0xb9   : > { %v645_v40 = vunpack.c.h.bf16 %v2059_v8  ;;  %v646_v30 = vunpack.c.l.bf16 %v2060_v34  ;;  %v647_v29 = vunpack.c.h.bf16 %v2060_v34  ;;  %v648_v20 = vunpack.c.l.bf16 %v2061_v9  ;;  %v2067_v8 = vld [vmem:[%s2726_s22 + $0x118] sm:$0xff] }
  0xba   : > { %v649_v21 = vunpack.c.h.bf16 %v2061_v9  ;;  %v650_v22 = vunpack.c.l.bf16 %v2062_v27  ;;  %v651_v31 = vunpack.c.h.bf16 %v2062_v27  ;;  %v652_v32 = vstv %s2771_s25  ;;  %v2069_v27 = vld [vmem:[%s2726_s22 + $0x128] sm:$0xff] }
  0xbb   : > { %v653_v33 = vmul.f32 %v652_v32, %v636_v44  ;;  %v654_v41 = vmul.f32 %v652_v32, %v637_v10  ;;  %v655_v42 = vmul.f32 %v652_v32, %v638_v11  ;;  %v656_v36 = vmul.f32 %v652_v32, %v639_v12  ;;  %v2071_v10 = vld [vmem:[%s2726_s22 + $0x138] sm:$0xff] }
  0xbc   : > { %v657_v37 = vmul.f32 %v652_v32, %v640_v35  ;;  %v658_v38 = vmul.f32 %v652_v32, %v641_v15  ;;  %v659_v39 = vmul.f32 %v652_v32, %v642_v16  ;;  %v660_v43 = vmul.f32 %v652_v32, %v643_v17  ;;  %v2801_v15 = vld [vmem:[%s2728_s23] sm:$0xff] }
  0xbd   : > { %v661_v45 = vmul.f32 %v652_v32, %v644_v18  ;;  %v662_v46 = vmul.f32 %v652_v32, %v645_v40  ;;  %v663_v47 = vmul.f32 %v652_v32, %v646_v30  ;;  %v664_v48 = vmul.f32 %v652_v32, %v647_v29 }
  0xbe   : > { %v665_v49 = vmul.f32 %v652_v32, %v648_v20  ;;  %v666_v50 = vmul.f32 %v652_v32, %v649_v21  ;;  %v667_v53 = vmul.f32 %v652_v32, %v650_v22  ;;  %v668_v54 = vmul.f32 %v652_v32, %v651_v31 }
  0xbf   : > { %v2782_v55 = vadd.f32 %v653_v33, %v610_v51  ;;  %v2784_v44 = vadd.f32 %v654_v41, %v611_v52  ;;  %v2786_v56 = vadd.f32 %v655_v42, %v612_v63  ;;  %v2788_v57 = vadd.f32 %v656_v36, %v613_v0  ;;  %v2065_v51 = vld [vmem:[%s2726_s22 + $0x108] sm:$0xff]  ;;  %v2066_v63 = vld [vmem:[%s2726_s22 + $0x110] sm:$0xff] }
  0xc0   : > { %v673_v58 = vadd.f32 %v657_v37, %v614_v1  ;;  %v674_v59 = vadd.f32 %v658_v38, %v615_v2  ;;  %v675_v60 = vadd.f32 %v659_v39, %v616_v3  ;;  %v676_v61 = vadd.f32 %v660_v43, %v617_v4  ;;  %v2068_v2 = vld [vmem:[%s2726_s22 + $0x120] sm:$0xff]  ;;  %v2070_v3 = vld [vmem:[%s2726_s22 + $0x130] sm:$0xff] }
  0xc1   : > { %v677_v13 = vadd.f32 %v661_v45, %v618_v14  ;;  %v678_v24 = vadd.f32 %v662_v46, %v619_v19  ;;  %v679_v52 = vadd.f32 %v663_v47, %v620_v28  ;;  %v680_v25 = vadd.f32 %v664_v48, %v621_v23 }
  0xc2   : > { %v681_v0 = vadd.f32 %v665_v49, %v622_v26  ;;  %v682_v34 = vadd.f32 %v666_v50, %v623_v5  ;;  %v683_v1 = vadd.f32 %v667_v53, %v624_v6  ;;  %v684_v9 = vadd.f32 %v668_v54, %v625_v7  ;;  %v2804_v26 = vld [vmem:[%s2728_s23 + $0x8] sm:$0xff] }
  0xc3   : > { %v695_v4 = vunpack.c.l.bf16 %v2064_v62  ;;  %v696_v11 = vunpack.c.h.bf16 %v2064_v62  ;;  %v697_v12 = vunpack.c.l.bf16 %v2065_v51  ;;  %v698_v14 = vunpack.c.h.bf16 %v2065_v51 }
  0xc4   : > { %v699_v19 = vunpack.c.l.bf16 %v2066_v63  ;;  %v700_v28 = vunpack.c.h.bf16 %v2066_v63  ;;  %v701_v23 = vunpack.c.l.bf16 %v2067_v8  ;;  %v702_v35 = vunpack.c.h.bf16 %v2067_v8 }
  0xc5   : > { %v703_v5 = vunpack.c.l.bf16 %v2068_v2  ;;  %v704_v6 = vunpack.c.h.bf16 %v2068_v2  ;;  %v705_v7 = vunpack.c.l.bf16 %v2069_v27  ;;  %v706_v16 = vunpack.c.h.bf16 %v2069_v27 }
  0xc6   : > { %v707_v17 = vunpack.c.l.bf16 %v2070_v3  ;;  %v708_v18 = vunpack.c.h.bf16 %v2070_v3  ;;  %v709_v40 = vunpack.c.l.bf16 %v2071_v10  ;;  %v710_v30 = vunpack.c.h.bf16 %v2071_v10  ;;  %v747_v3 = vld [vmem:[%s2728_s23 + $0x18] sm:$0xff] }
  0xc7   : > { %v711_v29 = vstv %s2790_s26  ;;  %v752_v20 = vunpack.c.l.bf16 %v2801_v15  ;;  %v753_v21 = vunpack.c.h.bf16 %v2801_v15  ;;  %v754_v22 = vunpack.c.l.bf16 %v2804_v26 }
  0xc8   : > { %v712_v31 = vmul.f32 %v711_v29, %v695_v4  ;;  %v713_v32 = vmul.f32 %v711_v29, %v696_v11  ;;  %v714_v33 = vmul.f32 %v711_v29, %v697_v12  ;;  %v715_v41 = vmul.f32 %v711_v29, %v698_v14  ;;  %v749_v4 = vld [vmem:[%s2728_s23 + $0x28] sm:$0xff]  ;;  %v750_v12 = vld [vmem:[%s2728_s23 + $0x30] sm:$0xff]  ;;  %v751_v14 = vld [vmem:[%s2728_s23 + $0x38] sm:$0xff] }
  0xc9   : > { %v716_v42 = vmul.f32 %v711_v29, %v699_v19  ;;  %v717_v36 = vmul.f32 %v711_v29, %v700_v28  ;;  %v718_v37 = vmul.f32 %v711_v29, %v701_v23  ;;  %v719_v38 = vmul.f32 %v711_v29, %v702_v35 }
  0xca   : > { %v720_v39 = vmul.f32 %v711_v29, %v703_v5  ;;  %v721_v43 = vmul.f32 %v711_v29, %v704_v6  ;;  %v722_v45 = vmul.f32 %v711_v29, %v705_v7  ;;  %v723_v46 = vmul.f32 %v711_v29, %v706_v16 }
  0xcb   : > { %v724_v47 = vmul.f32 %v711_v29, %v707_v17  ;;  %v725_v48 = vmul.f32 %v711_v29, %v708_v18  ;;  %v726_v49 = vmul.f32 %v711_v29, %v709_v40  ;;  %v727_v50 = vmul.f32 %v711_v29, %v710_v30 }
  0xcc   : > { %v2811_v53 = vadd.f32 %v712_v31, %v2782_v55  ;;  %v2814_v54 = vadd.f32 %v713_v32, %v2784_v44  ;;  %v2817_v62 = vadd.f32 %v714_v33, %v2786_v56  ;;  %v2820_v51 = vadd.f32 %v715_v41, %v2788_v57  ;;  %v746_v55 = vld [vmem:[%s2728_s23 + $0x10] sm:$0xff] }
  0xcd   : > { %v2822_v63 = vadd.f32 %v716_v42, %v673_v58  ;;  %v2824_v8 = vadd.f32 %v717_v36, %v674_v59  ;;  %v2826_v2 = vadd.f32 %v718_v37, %v675_v60  ;;  %v2828_v27 = vadd.f32 %v719_v38, %v676_v61  ;;  %v748_v58 = vld [vmem:[%s2728_s23 + $0x20] sm:$0xff] }
  0xce   : > { %3539 = vst [vmem:[#allocation7_spill] sm:$0xff] %v2811_v53  ;;  %v2832_v44 = vadd.f32 %v720_v39, %v677_v13  ;;  %v2834_v10 = vadd.f32 %v721_v43, %v678_v24  ;;  %v2836_v56 = vadd.f32 %v722_v45, %v679_v52  ;;  %v2838_v57 = vadd.f32 %v723_v46, %v680_v25 }
  0xcf   : > { %3540 = vst [vmem:[#allocation8_spill] sm:$0xff] %v2820_v51  ;;  %v2842_v11 = vadd.f32 %v724_v47, %v681_v0  ;;  %v2844_v59 = vadd.f32 %v725_v48, %v682_v34  ;;  %v2846_v60 = vadd.f32 %v726_v49, %v683_v1  ;;  %v2848_v61 = vadd.f32 %v727_v50, %v684_v9  ;;  %v2076_v50 = vld [vmem:[%s2728_s23 + $0x40] sm:$0xff] }
  0xd0   : > { %3541 = vst [vmem:[#allocation9_spill] sm:$0xff] %v2822_v63  ;;  %v755_v13 = vunpack.c.h.bf16 %v2804_v26  ;;  %v756_v24 = vunpack.c.l.bf16 %v746_v55  ;;  %v757_v19 = vunpack.c.h.bf16 %v746_v55  ;;  %v758_v52 = vunpack.c.l.bf16 %v747_v3 }
  0xd1   : > { %3542 = vst [vmem:[#allocation10_spill] sm:$0xff] %v2824_v8  ;;  %v759_v28 = vunpack.c.h.bf16 %v747_v3  ;;  %v760_v25 = vunpack.c.l.bf16 %v748_v58  ;;  %v761_v23 = vunpack.c.h.bf16 %v748_v58  ;;  %v762_v35 = vunpack.c.l.bf16 %v749_v4 }
  0xd2   : > { %3543 = vst [vmem:[#allocation11_spill] sm:$0xff] %v2826_v2  ;;  %v763_v15 = vunpack.c.h.bf16 %v749_v4  ;;  %v764_v0 = vunpack.c.l.bf16 %v750_v12  ;;  %v765_v5 = vunpack.c.h.bf16 %v750_v12  ;;  %v766_v34 = vunpack.c.l.bf16 %v751_v14  ;;  %v2077_v4 = vld [vmem:[%s2728_s23 + $0x48] sm:$0xff]  ;;  %v2078_v12 = vld [vmem:[%s2728_s23 + $0x50] sm:$0xff] }
  0xd3   : > { %3544 = vst [vmem:[#allocation12_spill] sm:$0xff] %v2828_v27  ;;  %v767_v6 = vunpack.c.h.bf16 %v751_v14  ;;  %v768_v1 = vmul.f32 %v752_v20, %v2811_v53  ;;  %v769_v9 = vmul.f32 %v753_v21, %v2814_v54  ;;  %v770_v7 = vmul.f32 %v754_v22, %v2817_v62  ;;  %v2079_v14 = vld [vmem:[%s2728_s23 + $0x58] sm:$0xff] }
  0xd4   : > { %3545 = vst [vmem:[#allocation13_spill] sm:$0xff] %v2832_v44  ;;  %v771_v26 = vmul.f32 %v755_v13, %v2820_v51  ;;  %v772_v16 = vmul.f32 %v756_v24, %v2822_v63  ;;  %v773_v17 = vmul.f32 %v757_v19, %v2824_v8  ;;  %v774_v18 = vmul.f32 %v758_v52, %v2826_v2 }
  0xd5   : > { %3546 = vst [vmem:[#allocation14_spill] sm:$0xff] %v2834_v10  ;;  %v775_v40 = vmul.f32 %v759_v28, %v2828_v27  ;;  %v776_v30 = vmul.f32 %v760_v25, %v2832_v44  ;;  %v777_v29 = vmul.f32 %v761_v23, %v2834_v10  ;;  %v778_v20 = vmul.f32 %v762_v35, %v2836_v56  ;;  %v2080_v25 = vld [vmem:[%s2728_s23 + $0x60] sm:$0xff]  ;;  %v2081_v23 = vld [vmem:[%s2728_s23 + $0x68] sm:$0xff] }
  0xd6   : > { %3547 = vst [vmem:[#allocation15_spill] sm:$0xff] %v2838_v57  ;;  %v779_v21 = vmul.f32 %v763_v15, %v2838_v57  ;;  %v780_v22 = vmul.f32 %v764_v0, %v2842_v11  ;;  %v781_v31 = vmul.f32 %v765_v5, %v2844_v59  ;;  %v782_v32 = vmul.f32 %v766_v34, %v2846_v60 }
  0xd7   : > { %v784_v33 = vadd.f32 %v772_v16, %v768_v1  ;;  %v793_v41 = vadd.f32 %v773_v17, %v769_v9  ;;  %v802_v42 = vadd.f32 %v774_v18, %v770_v7  ;;  %v783_v36 = vmul.f32 %v767_v6, %v2848_v61  ;;  %v2082_v16 = vld [vmem:[%s2728_s23 + $0x70] sm:$0xff]  ;;  %v2083_v17 = vld [vmem:[%s2728_s23 + $0x78] sm:$0xff] }
  0xd8   : > { %v811_v37 = vadd.f32 %v775_v40, %v771_v26  ;;  %v877_v24 = vunpack.c.l.bf16 %v2076_v50  ;;  %v878_v35 = vunpack.c.h.bf16 %v2076_v50  ;;  %v879_v15 = vunpack.c.l.bf16 %v2077_v4 }
  0xd9   : > { %v785_v38 = vadd.f32 %v784_v33, %v776_v30  ;;  %v794_v39 = vadd.f32 %v793_v41, %v777_v29  ;;  %v803_v43 = vadd.f32 %v802_v42, %v778_v20  ;;  %v881_v0 = vunpack.c.l.bf16 %v2078_v12 }
  0xda   : > { %v812_v45 = vadd.f32 %v811_v37, %v779_v21  ;;  %v882_v5 = vunpack.c.h.bf16 %v2078_v12  ;;  %v883_v34 = vunpack.c.l.bf16 %v2079_v14  ;;  %v880_v9 = vunpack.c.h.bf16 %v2077_v4 }
  0xdb   : > { %v786_v46 = vadd.f32 %v785_v38, %v780_v22  ;;  %v795_v47 = vadd.f32 %v794_v39, %v781_v31  ;;  %v804_v48 = vadd.f32 %v803_v43, %v782_v32  ;;  %v884_v7 = vunpack.c.h.bf16 %v2079_v14 }
  0xdc   : > { %v813_v49 = vadd.f32 %v812_v45, %v783_v36  ;;  %v885_v18 = vunpack.c.l.bf16 %v2080_v25  ;;  %v886_v40 = vunpack.c.h.bf16 %v2080_v25  ;;  %v887_v30 = vunpack.c.l.bf16 %v2081_v23 }
  0xdd   : > { %v787_v55 = vrot.slane %v786_v46, 4  ;;  %v796_v3 = vrot.slane %v795_v47, 4  ;;  %v805_v58 = vrot.slane %v804_v48, 4  ;;  %v889_v20 = vunpack.c.l.bf16 %v2082_v16 }
  0xde   : > { %v814_v13 = vrot.slane %v813_v49, 4  ;;  %v893_v21 = vmul.f32 %v877_v24, %v2811_v53  ;;  %v894_v22 = vmul.f32 %v878_v35, %v2814_v54  ;;  %v895_v31 = vmul.f32 %v879_v15, %v2817_v62 }
  0xdf   : > { %v788_v19 = vadd.f32 %v787_v55, %v786_v46  ;;  %v797_v52 = vadd.f32 %v796_v3, %v795_v47  ;;  %v806_v28 = vadd.f32 %v805_v58, %v804_v48  ;;  %v897_v32 = vmul.f32 %v881_v0, %v2822_v63 }
  0xe0   : > { %v815_v1 = vadd.f32 %v814_v13, %v813_v49  ;;  %v898_v33 = vmul.f32 %v882_v5, %v2824_v8  ;;  %v899_v41 = vmul.f32 %v883_v34, %v2826_v2  ;;  %v890_v37 = vunpack.c.h.bf16 %v2082_v16 }
  0xe1   : > { %v789_v6 = vrot.slane %v788_v19, 2  ;;  %v798_v26 = vrot.slane %v797_v52, 2  ;;  %v807_v29 = vrot.slane %v806_v28, 2  ;;  %v891_v38 = vunpack.c.l.bf16 %v2083_v17 }
  0xe2   : > { %v816_v36 = vrot.slane %v815_v1, 2  ;;  %v901_v43 = vmul.f32 %v885_v18, %v2832_v44  ;;  %v902_v45 = vmul.f32 %v886_v40, %v2834_v10  ;;  %v903_v46 = vmul.f32 %v887_v30, %v2836_v56 }
  0xe3   : > { %v790_v42 = vadd.f32 %v789_v6, %v788_v19  ;;  %v799_v39 = vadd.f32 %v798_v26, %v797_v52  ;;  %v808_v47 = vadd.f32 %v807_v29, %v806_v28  ;;  %v888_v48 = vunpack.c.h.bf16 %v2081_v23 }
  0xe4   : > { %v896_v49 = vmul.f32 %v880_v9, %v2820_v51  ;;  %v900_v50 = vmul.f32 %v884_v7, %v2828_v27  ;;  %v905_v55 = vmul.f32 %v889_v20, %v2842_v11  ;;  %v909_v3 = vadd.f32 %v897_v32, %v893_v21 }
  0xe5   : > { %v918_v58 = vadd.f32 %v898_v33, %v894_v22  ;;  %v927_v4 = vadd.f32 %v899_v41, %v895_v31  ;;  %v791_v12 = vrot.slane %v790_v42, 1  ;;  %v817_v14 = vadd.f32 %v816_v36, %v815_v1 }
  0xe6   : > { %v906_v13 = vmul.f32 %v890_v37, %v2844_v59  ;;  %v907_v24 = vmul.f32 %v891_v38, %v2846_v60  ;;  %v800_v19 = vrot.slane %v799_v39, 1  ;;  %v910_v52 = vadd.f32 %v909_v3, %v901_v43 }
  0xe7   : > { %v919_v25 = vadd.f32 %v918_v58, %v902_v45  ;;  %v928_v28 = vadd.f32 %v927_v4, %v903_v46  ;;  %v892_v23 = vunpack.c.h.bf16 %v2083_v17  ;;  %v809_v35 = vrot.slane %v808_v47, 1 }
  0xe8   : > { %v904_v15 = vmul.f32 %v888_v48, %v2838_v57  ;;  %v911_v0 = vadd.f32 %v910_v52, %v905_v55  ;;  %v936_v5 = vadd.f32 %v900_v50, %v896_v49  ;;  %v2892_v34 = vadd.f32 %v791_v12, %v790_v42 }
  0xe9   : > { %v818_v6 = vrot.slane %v817_v14, 1  ;;  %v920_v9 = vadd.f32 %v919_v25, %v906_v13  ;;  %v929_v7 = vadd.f32 %v928_v28, %v907_v24  ;;  %v2894_v1 = vadd.f32 %v800_v19, %v799_v39  ;;  %v2088_v24 = vld [vmem:[%s2728_s23 + $0x80] sm:$0xff]  ;;  %v2089_v19 = vld [vmem:[%s2728_s23 + $0x88] sm:$0xff] }
  0xea   : > { %v2896_v26 = vadd.f32 %v809_v35, %v808_v47  ;;  %v908_v16 = vmul.f32 %v892_v23, %v2848_v61  ;;  %v912_v18 = vrot.slane %v911_v0, 4  ;;  %v937_v40 = vadd.f32 %v936_v5, %v904_v15  ;;  %v2090_v23 = vld [vmem:[%s2728_s23 + $0x90] sm:$0xff]  ;;  %v2091_v35 = vld [vmem:[%s2728_s23 + $0x98] sm:$0xff] }
  0xeb   : > { %v2899_v30 = vadd.f32 %v818_v6, %v817_v14  ;;  %v2072_v17 = vclamps-f32 %v2892_v34, 10.0  ;;  %v921_v29 = vrot.slane %v920_v9, 4  ;;  %v930_v20 = vrot.slane %v929_v7, 4  ;;  %v2092_v6 = vld [vmem:[%s2728_s23 + $0xa0] sm:$0xff] }
  0xec   : > { %v2073_v21 = vclamps-f32 %v2894_v1, 10.0  ;;  %v2074_v22 = vclamps-f32 %v2896_v26, 10.0  ;;  %v913_v31 = vadd.f32 %v912_v18, %v911_v0  ;;  %v938_v32 = vadd.f32 %v937_v40, %v908_v16  ;;  %v2094_v40 = vld [vmem:[%s2728_s23 + $0xb0] sm:$0xff]  ;;  %v2105_v26 = vld [vmem:[%s2728_s23 + $0xe8] sm:$0xff] }
  0xed   : > { %v3485_v33 = vclamps-f32 %v2899_v30, 10.0  ;;  %v832_v41 = vand.u32 2147483647, %v2072_v17  ;;  %v922_v42 = vadd.f32 %v921_v29, %v920_v9  ;;  %v931_v36 = vadd.f32 %v930_v20, %v929_v7  ;;  %v2093_v9 = vld [vmem:[%s2728_s23 + $0xa8] sm:$0xff]  ;;  %v2095_v29 = vld [vmem:[%s2728_s23 + $0xb8] sm:$0xff] }
  0xee   : > { %v833_v37 = vand.u32 2147483647, %v2073_v21  ;;  %v834_v38 = vand.u32 2147483647, %v2074_v22  ;;  %v914_v39 = vrot.slane %v913_v31, 2  ;;  %v939_v43 = vrot.slane %v938_v32, 4 }
  0xef   : > { %v835_v45 = vand.u32 2147483647, %v3485_v33  ;;  %v836_v46 = vsub.f32 0.0, %v832_v41  ;;  %v923_v47 = vrot.slane %v922_v42, 2  ;;  %v932_v48 = vrot.slane %v931_v36, 2 }
  0xf0   : > { %v837_v49 = vsub.f32 0.0, %v833_v37  ;;  %v838_v50 = vsub.f32 0.0, %v834_v38  ;;  %v915_v55 = vadd.f32 %v914_v39, %v913_v31  ;;  %v940_v3 = vadd.f32 %v939_v43, %v938_v32 }
  0xf1   : > { %v839_v58 = vsub.f32 0.0, %v835_v45  ;;  %v840_v4 = vmul.f32 1.442695, %v836_v46  ;;  %v924_v12 = vadd.f32 %v923_v47, %v922_v42  ;;  %v933_v14 = vadd.f32 %v932_v48, %v931_v36 }
  0xf2   : > { %v842_v13 = vmul.f32 1.442695, %v837_v49  ;;  %v2915_v52 = vmul.f32 1.442695, %v838_v50  ;;  %v916_v25 = vrot.slane %v915_v55, 1  ;;  %v941_v28 = vrot.slane %v940_v3, 2 }
  0xf3   : > { %2216 = vpow2.f32 %v840_v4  ;;  %v846_v15 = vmul.f32 1.442695, %v839_v58  ;;  %v925_v0 = vrot.slane %v924_v12, 1  ;;  %v934_v5 = vrot.slane %v933_v14, 1 }
  0xf4   : > { %2218 = vpow2.f32 %v842_v13  ;;  %v1006_v7 = vunpack.c.l.bf16 %v2088_v24  ;;  %v1007_v16 = vunpack.c.h.bf16 %v2088_v24  ;;  %v1008_v18 = vunpack.c.l.bf16 %v2089_v19 }
  0xf5   : > { %v1009_v20 = vunpack.c.h.bf16 %v2089_v19  ;;  %v1010_v31 = vunpack.c.l.bf16 %v2090_v23  ;;  %v1011_v32 = vunpack.c.h.bf16 %v2090_v23  ;;  %v1012_v41 = vunpack.c.l.bf16 %v2091_v35 }
  0xf6   : > { %v917_v42 = vadd.f32 %v916_v25, %v915_v55  ;;  %v942_v36 = vadd.f32 %v941_v28, %v940_v3  ;;  %v1013_v37 = vunpack.c.h.bf16 %v2091_v35  ;;  %v1014_v38 = vunpack.c.l.bf16 %v2092_v6 }
  0xf7   : > { %v926_v39 = vadd.f32 %v925_v0, %v924_v12  ;;  %v935_v43 = vadd.f32 %v934_v5, %v933_v14  ;;  %v1015_v45 = vunpack.c.h.bf16 %v2092_v6  ;;  %v1016_v46 = vunpack.c.l.bf16 %v2093_v9 }
  0xf8   : > { %v1017_v47 = vunpack.c.h.bf16 %v2093_v9  ;;  %v1018_v48 = vunpack.c.l.bf16 %v2094_v40  ;;  %v1019_v49 = vunpack.c.h.bf16 %v2094_v40  ;;  %v1020_v50 = vunpack.c.l.bf16 %v2095_v29 }
  0xf9   : > { %v2217_v58 = vpop.eup %2216  ;;  %v1022_v4 = vmul.f32 %v1006_v7, %v2811_v53  ;;  %v1023_v13 = vmul.f32 %v1007_v16, %v2814_v54  ;;  %v1024_v24 = vmul.f32 %v1008_v18, %v2817_v62  ;;  %v1026_v55 = vmul.f32 %v1010_v31, %v2822_v63 }
  0xfa   : > { %v2219_v3 = vpop.eup %2218  ;;  %v1021_v19 = vunpack.c.h.bf16 %v2095_v29  ;;  %v1025_v12 = vmul.f32 %v1009_v20, %v2820_v51  ;;  %v1027_v14 = vmul.f32 %v1011_v32, %v2824_v8  ;;  %v1028_v25 = vmul.f32 %v1012_v41, %v2826_v2 }
  0xfb   : > { %v1029_v28 = vmul.f32 %v1013_v37, %v2828_v27  ;;  %v1030_v23 = vmul.f32 %v1014_v38, %v2832_v44  ;;  %v1031_v35 = vmul.f32 %v1015_v45, %v2834_v10  ;;  %v1032_v0 = vmul.f32 %v1016_v46, %v2836_v56 }
  0xfc   : > { %v943_v5 = vrot.slane %v942_v36, 1  ;;  %v2084_v6 = vclamps-f32 %v917_v42, 10.0  ;;  %v1033_v9 = vmul.f32 %v1017_v47, %v2838_v57  ;;  %v1034_v7 = vmul.f32 %v1018_v48, %v2842_v11 }
  0xfd   : > { %v1035_v16 = vmul.f32 %v1019_v49, %v2844_v59  ;;  %v1038_v18 = vadd.f32 %v1026_v55, %v1022_v4  ;;  %v1047_v40 = vadd.f32 %v1027_v14, %v1023_v13  ;;  %v1056_v29 = vadd.f32 %v1028_v25, %v1024_v24 }
  0xfe   : > { %v2085_v20 = vclamps-f32 %v926_v39, 10.0  ;;  %v1036_v31 = vmul.f32 %v1020_v50, %v2846_v60  ;;  %v1037_v32 = vmul.f32 %v1021_v19, %v2848_v61  ;;  %v1065_v41 = vadd.f32 %v1029_v28, %v1025_v12 }
  0xff   : > { %v2086_v37 = vclamps-f32 %v935_v43, 10.0  ;;  %v1039_v38 = vadd.f32 %v1038_v18, %v1030_v23  ;;  %v1048_v45 = vadd.f32 %v1047_v40, %v1031_v35  ;;  %v1057_v46 = vadd.f32 %v1056_v29, %v1032_v0 }
 0x100   : > { %2220 = vpow2.f32 %v2915_v52  ;;  %v1066_v42 = vadd.f32 %v1065_v41, %v1033_v9  ;;  %v944_v47 = vadd.f32 %v943_v5, %v942_v36  ;;  %v2940_v4 = vmul.f32 -1.0, %v2084_v6 }
 0x101   : > { %2222 = vpow2.f32 %v846_v15  ;;  %v1040_v48 = vadd.f32 %v1039_v38, %v1034_v7  ;;  %v1049_v49 = vadd.f32 %v1048_v45, %v1035_v16  ;;  %v2942_v13 = vmul.f32 -1.0, %v2085_v20 }
 0x102   : > { %v1058_v39 = vadd.f32 %v1057_v46, %v1036_v31  ;;  %v1067_v50 = vadd.f32 %v1066_v42, %v1037_v32  ;;  %v2944_v24 = vmul.f32 -1.0, %v2086_v37  ;;  %v2087_v28 = vclamps-f32 %v944_v47, 10.0  ;;  %v2101_v47 = vld [vmem:[%s2728_s23 + $0xc8] sm:$0xff] }
 0x103   : > { %3548 = vst [vmem:[#allocation16_spill] sm:$0xff] %v2942_v13  ;;  %v1041_v55 = vrot.slane %v1040_v48, 4  ;;  %v1050_v43 = vrot.slane %v1049_v49, 4  ;;  %v961_v15 = vand.u32 2147483647, %v2940_v4  ;;  %v848_v35 = vadd.f32 1.0, %v2217_v58 }
 0x104   : > { %3549 = vst [vmem:[#allocation17_spill] sm:$0xff] %v2944_v24  ;;  %v1059_v19 = vrot.slane %v1058_v39, 4  ;;  %v1068_v12 = vrot.slane %v1067_v50, 4  ;;  %v962_v36 = vand.u32 2147483647, %v2942_v13  ;;  %v849_v9 = vadd.f32 1.0, %v2219_v3 }
 0x105   : > { %v1042_v14 = vadd.f32 %v1041_v55, %v1040_v48  ;;  %v1051_v25 = vadd.f32 %v1050_v43, %v1049_v49  ;;  %v963_v0 = vand.u32 2147483647, %v2944_v24  ;;  %v2949_v29 = vmul.f32 -1.0, %v2087_v28  ;;  %v2100_v3 = vld [vmem:[%s2728_s23 + $0xc0] sm:$0xff]  ;;  %v2102_v48 = vld [vmem:[%s2728_s23 + $0xd0] sm:$0xff]  ;;  %v2103_v49 = vld [vmem:[%s2728_s23 + $0xd8] sm:$0xff] }
 0x106   : > { %v2221_v52 = vpop.eup %2220  ;;  %v1060_v5 = vadd.f32 %v1059_v19, %v1058_v39  ;;  %v1069_v6 = vadd.f32 %v1068_v12, %v1067_v50  ;;  %v965_v20 = vsub.f32 0.0, %v961_v15  ;;  %v966_v31 = vsub.f32 0.0, %v962_v36  ;;  %v2104_v55 = vld [vmem:[%s2728_s23 + $0xe0] sm:$0xff]  ;;  %v2107_v28 = vld [vmem:[%s2728_s23 + $0xf8] sm:$0xff] }
 0x107   : > { %v2223_v23 = vpop.eup %2222  ;;  %v1043_v7 = vrot.slane %v1042_v14, 2  ;;  %v1052_v16 = vrot.slane %v1051_v25, 2  ;;  %v850_v18 = vadd.f32 1.0, %v2221_v52  ;;  %3550 = vst [vmem:[#allocation18_spill] sm:$0xff] %v2949_v29  ;;  %2224 = vlog2.f32 %v848_v35  ;;  %v2106_v52 = vld [vmem:[%s2728_s23 + $0xf0] sm:$0xff] }
 0x108   : > { %v851_v40 = vadd.f32 1.0, %v2223_v23  ;;  %v967_v32 = vsub.f32 0.0, %v963_v0  ;;  %v1061_v58 = vrot.slane %v1060_v5, 2  ;;  %v1070_v41 = vrot.slane %v1069_v6, 2 }
 0x109   : > { %2226 = vlog2.f32 %v849_v9  ;;  %v1044_v37 = vadd.f32 %v1043_v7, %v1042_v14  ;;  %v1053_v38 = vadd.f32 %v1052_v16, %v1051_v25  ;;  %v2954_v45 = vmin.f32 %v2072_v17, 0.0 }
 0x10a   : > { %v2958_v46 = vmin.f32 %v2073_v21, 0.0  ;;  %v2962_v42 = vmin.f32 %v2074_v22, 0.0  ;;  %2228 = vlog2.f32 %v850_v18  ;;  %v969_v39 = vmul.f32 1.442695, %v965_v20 }
 0x10b   : > { %2230 = vlog2.f32 %v851_v40  ;;  %v2968_v17 = vmul.f32 1.442695, %v966_v31  ;;  %v2970_v50 = vmul.f32 1.442695, %v967_v32  ;;  %v1062_v1 = vadd.f32 %v1061_v58, %v1060_v5 }
 0x10c   : > { %3551 = vst [vmem:[#allocation19_spill] sm:$0xff] %v2958_v46  ;;  %v1071_v21 = vadd.f32 %v1070_v41, %v1069_v6  ;;  %v1135_v22 = vunpack.c.l.bf16 %v2100_v3  ;;  %v1045_v43 = vrot.slane %v1044_v37, 1  ;;  %v1054_v19 = vrot.slane %v1053_v38, 1 }
 0x10d   : > { %3552 = vst [vmem:[#allocation20_spill] sm:$0xff] %v2962_v42  ;;  %v1136_v12 = vunpack.c.h.bf16 %v2100_v3  ;;  %v1137_v14 = vunpack.c.l.bf16 %v2101_v47  ;;  %v2974_v25 = vpop.eup %2224  ;;  %v1138_v15 = vunpack.c.h.bf16 %v2101_v47  ;;  %v1139_v36 = vunpack.c.l.bf16 %v2102_v48 }
 0x10e   : > { %v1140_v23 = vunpack.c.h.bf16 %v2102_v48  ;;  %v1141_v35 = vunpack.c.l.bf16 %v2103_v49  ;;  %v1142_v9 = vunpack.c.h.bf16 %v2103_v49  ;;  %v1143_v5 = vunpack.c.l.bf16 %v2104_v55 }
 0x10f   : > { %v2978_v0 = vpop.eup %2226  ;;  %v1144_v6 = vunpack.c.h.bf16 %v2104_v55  ;;  %v1145_v7 = vunpack.c.l.bf16 %v2105_v26  ;;  %v1063_v18 = vrot.slane %v1062_v1, 1  ;;  %v1072_v40 = vrot.slane %v1071_v21, 1 }
 0x110   : > { %v2980_v16 = vpop.eup %2228  ;;  %v1146_v20 = vunpack.c.h.bf16 %v2105_v26  ;;  %v1147_v31 = vunpack.c.l.bf16 %v2106_v52  ;;  %v1046_v58 = vadd.f32 %v1045_v43, %v1044_v37  ;;  %v1055_v41 = vadd.f32 %v1054_v19, %v1053_v38 }
 0x111   : > { %v2982_v32 = vpop.eup %2230  ;;  %v1148_v3 = vunpack.c.h.bf16 %v2106_v52  ;;  %v1149_v47 = vunpack.c.l.bf16 %v2107_v28  ;;  %v1151_v48 = vmul.f32 %v1135_v22, %v2811_v53  ;;  %v1152_v34 = vmul.f32 %v1136_v12, %v2814_v54 }
 0x112   : > { %v1155_v49 = vmul.f32 %v1139_v36, %v2822_v63  ;;  %v1156_v55 = vmul.f32 %v1140_v23, %v2824_v8  ;;  %v1153_v33 = vmul.f32 %v1137_v14, %v2817_v62  ;;  %v1154_v42 = vmul.f32 %v1138_v15, %v2820_v51 }
 0x113   : > { %v1157_v26 = vmul.f32 %v1141_v35, %v2826_v2  ;;  %v1158_v46 = vmul.f32 %v1142_v9, %v2828_v27  ;;  %v1064_v37 = vadd.f32 %v1063_v18, %v1062_v1  ;;  %v1073_v38 = vadd.f32 %v1072_v40, %v1071_v21 }
 0x114   : > { %v1159_v43 = vmul.f32 %v1143_v5, %v2832_v44  ;;  %v1160_v22 = vmul.f32 %v1144_v6, %v2834_v10  ;;  %v2096_v19 = vclamps-f32 %v1046_v58, 10.0  ;;  %v1150_v12 = vunpack.c.h.bf16 %v2107_v28 }
 0x115   : > { %v1161_v52 = vmul.f32 %v1145_v7, %v2836_v56  ;;  %v1162_v36 = vmul.f32 %v1146_v20, %v2838_v57  ;;  %v1163_v14 = vmul.f32 %v1147_v31, %v2842_v11  ;;  %v1164_v15 = vmul.f32 %v1148_v3, %v2844_v59 }
 0x116   : > { %v1167_v23 = vadd.f32 %v1155_v49, %v1151_v48  ;;  %v1176_v35 = vadd.f32 %v1156_v55, %v1152_v34  ;;  %v2097_v2 = vclamps-f32 %v1055_v41, 10.0  ;;  %v1165_v1 = vmul.f32 %v1149_v47, %v2846_v60 }
 0x117   : > { %v1185_v21 = vadd.f32 %v1157_v26, %v1153_v33  ;;  %v1194_v9 = vadd.f32 %v1158_v46, %v1154_v42  ;;  %v2098_v5 = vclamps-f32 %v1064_v37, 10.0  ;;  %v2099_v18 = vclamps-f32 %v1073_v38, 10.0  ;;  %v2118_v37 = vld [vmem:[%s2728_s23 + $0x130] sm:$0xff] }
 0x118   : > { %v1168_v6 = vadd.f32 %v1167_v23, %v1159_v43  ;;  %v1177_v40 = vadd.f32 %v1176_v35, %v1160_v22  ;;  %2232 = vpow2.f32 %v969_v39  ;;  %v1166_v28 = vmul.f32 %v1150_v12, %v2848_v61 }
 0x119   : > { %v1186_v7 = vadd.f32 %v1185_v21, %v1161_v52  ;;  %v1195_v20 = vadd.f32 %v1194_v9, %v1162_v36  ;;  %v3553_v31 = vclamps-f32 %v2899_v30, 10.0  ;;  %2234 = vpow2.f32 %v2968_v17 }
 0x11a   : > { %v1169_v34 = vadd.f32 %v1168_v6, %v1163_v14  ;;  %v1178_v41 = vadd.f32 %v1177_v40, %v1164_v15  ;;  %2236 = vpow2.f32 %v2970_v50  ;;  %v3006_v33 = vmul.f32 -1.0, %v2096_v19 }
 0x11b   : > { %v3002_v58 = vmin.f32 %v3553_v31, 0.0  ;;  %v3008_v46 = vmul.f32 -1.0, %v2097_v2  ;;  %v1187_v42 = vadd.f32 %v1186_v7, %v1165_v1  ;;  %v3010_v39 = vmul.f32 -1.0, %v2098_v5 }
 0x11c   : > { %3554 = vst [vmem:[#allocation21_spill] sm:$0xff] %v3006_v33  ;;  %v3012_v3 = vmul.f32 -1.0, %v2099_v18  ;;  %v1170_v47 = vrot.slane %v1169_v34, 4  ;;  %v1179_v48 = vrot.slane %v1178_v41, 4  ;;  %v3558_v49 = vand.u32 2147483647, %v2949_v29 }
 0x11d   : > { %3555 = vst [vmem:[#allocation22_spill] sm:$0xff] %v3008_v46  ;;  %v1188_v55 = vrot.slane %v1187_v42, 4  ;;  %v1196_v26 = vadd.f32 %v1195_v20, %v1166_v28  ;;  %v853_v22 = vmul.f32 0.6931472, %v2974_v25  ;;  %v3021_v19 = vmul.f32 0.6931472, %v2978_v0 }
 0x11e   : > { %3556 = vst [vmem:[#allocation23_spill] sm:$0xff] %v3010_v39  ;;  %v968_v17 = vsub.f32 0.0, %v3558_v49  ;;  %v1171_v2 = vadd.f32 %v1170_v47, %v1169_v34  ;;  %v1180_v38 = vadd.f32 %v1179_v48, %v1178_v41  ;;  %v2233_v43 = vpop.eup %2232  ;;  %v1090_v12 = vand.u32 2147483647, %v3006_v33  ;;  %v3559_v48 = vld [vmem:[#allocation19_spill] sm:$0xff]  ;;  %v3560_v49 = vld [vmem:[#allocation20_spill] sm:$0xff] }
 0x11f   : > { %3557 = vst [vmem:[#allocation24_spill] sm:$0xff] %v3012_v3  ;;  %v2235_v52 = vpop.eup %2234  ;;  %v1091_v36 = vand.u32 2147483647, %v3008_v46  ;;  %v1092_v14 = vand.u32 2147483647, %v3010_v39  ;;  %v1189_v21 = vadd.f32 %v1188_v55, %v1187_v42  ;;  %v1197_v9 = vrot.slane %v1196_v26, 4 }
 0x120   : > { %v1093_v15 = vand.u32 2147483647, %v3012_v3  ;;  %v2237_v23 = vpop.eup %2236  ;;  %v975_v35 = vmul.f32 1.442695, %v968_v17  ;;  %v1172_v1 = vrot.slane %v1171_v2, 2  ;;  %v977_v0 = vadd.f32 1.0, %v2233_v43 }
 0x121   : > { %v3028_v5 = vmul.f32 0.6931472, %v2980_v16  ;;  %v1181_v18 = vrot.slane %v1180_v38, 2  ;;  %v3032_v6 = vmul.f32 0.6931472, %v2982_v32  ;;  %v860_v40 = vsub.f32 %v2954_v45, %v853_v22  ;;  %v2112_v55 = vld [vmem:[%s2728_s23 + $0x100] sm:$0xff] }
 0x122   : > { %v978_v28 = vadd.f32 1.0, %v2235_v52  ;;  %v1094_v7 = vsub.f32 0.0, %v1090_v12  ;;  %v979_v20 = vadd.f32 1.0, %v2237_v23  ;;  %v1095_v31 = vsub.f32 0.0, %v1091_v36  ;;  %v2114_v12 = vld [vmem:[%s2728_s23 + $0x110] sm:$0xff]  ;;  %v2115_v52 = vld [vmem:[%s2728_s23 + $0x118] sm:$0xff] }
 0x123   : > { %v1096_v34 = vsub.f32 0.0, %v1092_v14  ;;  %v1097_v41 = vsub.f32 0.0, %v1093_v15  ;;  %2238 = vpow2.f32 %v975_v35  ;;  %v1173_v16 = vadd.f32 %v1172_v1, %v1171_v2  ;;  %v2116_v1 = vld [vmem:[%s2728_s23 + $0x120] sm:$0xff] }
 0x124   : > { %v1190_v42 = vrot.slane %v1189_v21, 2  ;;  %v1198_v47 = vadd.f32 %v1197_v9, %v1196_v26  ;;  %2240 = vlog2.f32 %v977_v0  ;;  %v1182_v45 = vadd.f32 %v1181_v18, %v1180_v38  ;;  %v2113_v26 = vld [vmem:[%s2728_s23 + $0x108] sm:$0xff] }
 0x125   : > { %v3042_v22 = vsub.f32 0.0, %v860_v40  ;;  %2242 = vlog2.f32 %v978_v28  ;;  %v3044_v2 = vmul.f32 1.442695, %v1094_v7  ;;  %v3049_v36 = vmul.f32 1.442695, %v1095_v31  ;;  %v2117_v9 = vld [vmem:[%s2728_s23 + $0x128] sm:$0xff] }
 0x126   : > { %2244 = vlog2.f32 %v979_v20  ;;  %v3051_v38 = vmul.f32 1.442695, %v1096_v34  ;;  %v3053_v14 = vmul.f32 1.442695, %v1097_v41  ;;  %v1174_v15 = vrot.slane %v1173_v16, 1  ;;  %v2119_v20 = vld [vmem:[%s2728_s23 + $0x138] sm:$0xff] }
 0x127   : > { %3561 = vst [vmem:[#allocation19_spill] sm:$0xff] %v3042_v22  ;;  %v1191_v23 = vadd.f32 %v1190_v42, %v1189_v21  ;;  %v1199_v35 = vrot.slane %v1198_v47, 2  ;;  %v1264_v0 = vunpack.c.l.bf16 %v2112_v55  ;;  %v1183_v18 = vrot.slane %v1182_v45, 1 }
 0x128   : > { %v1265_v40 = vunpack.c.h.bf16 %v2112_v55  ;;  %v1266_v28 = vunpack.c.l.bf16 %v2113_v26  ;;  %v1267_v7 = vunpack.c.h.bf16 %v2113_v26  ;;  %v1268_v50 = vunpack.c.l.bf16 %v2114_v12 }
 0x129   : > { %v2239_v25 = vpop.eup %2238  ;;  %v1269_v31 = vunpack.c.h.bf16 %v2114_v12  ;;  %v1270_v43 = vunpack.c.l.bf16 %v2115_v52  ;;  %v1271_v34 = vunpack.c.h.bf16 %v2115_v52  ;;  %v1272_v41 = vunpack.c.l.bf16 %v2116_v1 }
 0x12a   : > { %v3059_v30 = vpop.eup %2240  ;;  %v1273_v17 = vunpack.c.h.bf16 %v2116_v1  ;;  %v1274_v21 = vunpack.c.l.bf16 %v2117_v9  ;;  %v1275_v42 = vunpack.c.h.bf16 %v2117_v9  ;;  %v1175_v3 = vadd.f32 %v1174_v15, %v1173_v16 }
 0x12b   : > { %v3061_v32 = vpop.eup %2242  ;;  %v1192_v39 = vrot.slane %v1191_v23, 1  ;;  %v1200_v55 = vadd.f32 %v1199_v35, %v1198_v47  ;;  %v1276_v46 = vunpack.c.l.bf16 %v2118_v37  ;;  %v1184_v33 = vadd.f32 %v1183_v18, %v1182_v45  ;;  %v3562_v47 = vld [vmem:[#allocation11_spill] sm:$0xff] }
 0x12c   : > { %v3063_v26 = vpop.eup %2244  ;;  %v1277_v29 = vunpack.c.h.bf16 %v2118_v37  ;;  %v1278_v22 = vunpack.c.l.bf16 %v2119_v20  ;;  %v1279_v12 = vunpack.c.h.bf16 %v2119_v20  ;;  %v1280_v52 = vmul.f32 %v1264_v0, %v2811_v53 }
 0x12d   : > { %v1281_v24 = vmul.f32 %v1265_v40, %v2814_v54  ;;  %v1282_v1 = vmul.f32 %v1266_v28, %v2817_v62  ;;  %v1284_v9 = vmul.f32 %v1268_v50, %v2822_v63  ;;  %v1283_v13 = vmul.f32 %v1267_v7, %v2820_v51 }
 0x12e   : > { %v1285_v16 = vmul.f32 %v1269_v31, %v2824_v8  ;;  %v1286_v15 = vmul.f32 %v1270_v43, %v3562_v47  ;;  %v1287_v35 = vmul.f32 %v1271_v34, %v2828_v27  ;;  %v1193_v45 = vadd.f32 %v1192_v39, %v1191_v23 }
 0x12f   : > { %v1201_v37 = vrot.slane %v1200_v55, 1  ;;  %v2108_v18 = vclamps-f32 %v1175_v3, 10.0  ;;  %v1288_v20 = vmul.f32 %v1272_v41, %v2832_v44  ;;  %v2109_v0 = vclamps-f32 %v1184_v33, 10.0 }
 0x130   : > { %v1289_v40 = vmul.f32 %v1273_v17, %v2834_v10  ;;  %v1290_v28 = vmul.f32 %v1274_v21, %v2836_v56  ;;  %v1291_v50 = vmul.f32 %v1275_v42, %v2838_v57  ;;  %v1292_v7 = vmul.f32 %v1276_v46, %v2842_v11 }
 0x131   : > { %v1293_v31 = vmul.f32 %v1277_v29, %v2844_v59  ;;  %v1294_v43 = vmul.f32 %v1278_v22, %v2846_v60  ;;  %v1296_v47 = vadd.f32 %v1284_v9, %v1280_v52  ;;  %v1295_v39 = vmul.f32 %v1279_v12, %v2848_v61 }
 0x132   : > { %v1305_v23 = vadd.f32 %v1285_v16, %v1281_v24  ;;  %v1314_v3 = vadd.f32 %v1286_v15, %v1282_v1  ;;  %v1323_v34 = vadd.f32 %v1287_v35, %v1283_v13  ;;  %2246 = vpow2.f32 %v3044_v2 }
 0x133   : > { %v1202_v33 = vadd.f32 %v1201_v37, %v1200_v55  ;;  %v2110_v17 = vclamps-f32 %v1193_v45, 10.0  ;;  %v1297_v41 = vadd.f32 %v1296_v47, %v1288_v20  ;;  %2248 = vpow2.f32 %v3049_v36 }
 0x134   : > { %v1306_v21 = vadd.f32 %v1305_v23, %v1289_v40  ;;  %v1315_v42 = vadd.f32 %v1314_v3, %v1290_v28  ;;  %v1324_v46 = vadd.f32 %v1323_v34, %v1291_v50  ;;  %v980_v57 = vadd.f32 1.0, %v2239_v25 }
 0x135   : > { %2250 = vpow2.f32 %v3051_v38  ;;  %v3084_v29 = vmul.f32 -1.0, %v2108_v18  ;;  %v1298_v22 = vadd.f32 %v1297_v41, %v1292_v7  ;;  %v3086_v12 = vmul.f32 -1.0, %v2109_v0 }
 0x136   : > { %v1307_v24 = vadd.f32 %v1306_v21, %v1293_v31  ;;  %v1316_v13 = vadd.f32 %v1315_v42, %v1294_v43  ;;  %v1325_v52 = vadd.f32 %v1324_v46, %v1295_v39  ;;  %2252 = vpow2.f32 %v3053_v14 }
 0x137   : > { %v2111_v2 = vclamps-f32 %v1202_v33, 10.0  ;;  %v3089_v55 = vmul.f32 -1.0, %v2110_v17  ;;  %v1299_v36 = vrot.slane %v1298_v22, 4  ;;  %v3564_v1 = vsub.f32 %v3559_v48, %v3021_v19 }
 0x138   : > { %v1308_v38 = vrot.slane %v1307_v24, 4  ;;  %v1317_v9 = vrot.slane %v1316_v13, 4  ;;  %v1326_v16 = vrot.slane %v1325_v52, 4  ;;  %v2247_v47 = vpop.eup %2246  ;;  %v3565_v15 = vsub.f32 %v3560_v49, %v3028_v5 }
 0x139   : > { %3563 = vst [vmem:[#allocation20_spill] sm:$0xff] %v3089_v55  ;;  %v3094_v25 = vsub.f32 0.0, %v3564_v1  ;;  %2254 = vlog2.f32 %v980_v57  ;;  %v1219_v14 = vand.u32 2147483647, %v3084_v29  ;;  %v1300_v45 = vadd.f32 %v1299_v36, %v1298_v22  ;;  %v2249_v37 = vpop.eup %2248 }
 0x13a   : > { %v3099_v35 = vsub.f32 0.0, %v3565_v15  ;;  %v982_v18 = vmul.f32 0.6931472, %v3059_v30  ;;  %v1220_v19 = vand.u32 2147483647, %v3086_v12  ;;  %v1309_v48 = vadd.f32 %v1308_v38, %v1307_v24 }
 0x13b   : > { %v1318_v20 = vadd.f32 %v1317_v9, %v1316_v13  ;;  %v2251_v0 = vpop.eup %2250  ;;  %v3104_v40 = vmul.f32 -1.0, %v2111_v2  ;;  %v1221_v28 = vand.u32 2147483647, %v3089_v55  ;;  %v1301_v50 = vrot.slane %v1300_v45, 2  ;;  %v3596_v55 = vld [vmem:[#allocation11_spill] sm:$0xff] }
 0x13c   : > { %3566 = vst [vmem:[#allocation25_spill] sm:$0xff] %v3099_v35  ;;  %v1327_v5 = vadd.f32 %v1326_v16, %v1325_v52  ;;  %v984_v49 = vmul.f32 0.6931472, %v3061_v32  ;;  %v986_v57 = vmul.f32 0.6931472, %v3063_v26  ;;  %v1310_v7 = vrot.slane %v1309_v48, 2  ;;  %v2253_v43 = vpop.eup %2252 }
 0x13d   : > { %3567 = vst [vmem:[#allocation26_spill] sm:$0xff] %v3104_v40  ;;  %v1319_v31 = vrot.slane %v1318_v20, 2  ;;  %v1106_v39 = vadd.f32 1.0, %v2247_v47  ;;  %v1223_v30 = vsub.f32 0.0, %v1219_v14  ;;  %v1302_v23 = vadd.f32 %v1301_v50, %v1300_v45  ;;  %v3598_v35 = vld [vmem:[#allocation13_spill] sm:$0xff] }
 0x13e   : > { %v1328_v3 = vrot.slane %v1327_v5, 2  ;;  %v1107_v34 = vadd.f32 1.0, %v2249_v37  ;;  %v1224_v33 = vsub.f32 0.0, %v1220_v19  ;;  %v1311_v17 = vadd.f32 %v1310_v7, %v1309_v48  ;;  %v2124_v48 = vld [vmem:[%s2728_s23 + $0x140] sm:$0xff] }
 0x13f   : > { %v1320_v41 = vadd.f32 %v1319_v31, %v1318_v20  ;;  %v2255_v21 = vpop.eup %2254  ;;  %v1108_v42 = vadd.f32 1.0, %v2251_v0  ;;  %v1222_v46 = vand.u32 2147483647, %v3104_v40  ;;  %v1225_v22 = vsub.f32 0.0, %v1221_v28  ;;  %v3571_v20 = vld [vmem:[#allocation16_spill] sm:$0xff]  ;;  %v3573_v0 = vld [vmem:[#allocation17_spill] sm:$0xff] }
 0x140   : > { %v1303_v24 = vrot.slane %v1302_v23, 1  ;;  %v1109_v32 = vadd.f32 1.0, %v2253_v43  ;;  %v1312_v13 = vrot.slane %v1311_v17, 1  ;;  %v1329_v52 = vadd.f32 %v1328_v3, %v1327_v5  ;;  %v3576_v5 = vld [vmem:[#allocation19_spill] sm:$0xff]  ;;  %v2125_v31 = vld [vmem:[%s2728_s23 + $0x148] sm:$0xff]  ;;  %v2126_v43 = vld [vmem:[%s2728_s23 + $0x150] sm:$0xff] }
 0x141   : > { %v1321_v26 = vrot.slane %v1320_v41, 1  ;;  %v3568_v2 = vmin.f32 %v2940_v4, 0.0  ;;  %2256 = vlog2.f32 %v1106_v39  ;;  %v1227_v1 = vmul.f32 1.442695, %v1223_v30  ;;  %v2127_v30 = vld [vmem:[%s2728_s23 + $0x158] sm:$0xff] }
 0x142   : > { %v1304_v38 = vadd.f32 %v1303_v24, %v1302_v23  ;;  %v3569_v9 = vsub.f32 %v3002_v58, %v3032_v6  ;;  %2258 = vlog2.f32 %v1107_v34  ;;  %v1229_v47 = vmul.f32 1.442695, %v1224_v33 }
 0x143   : > { %v3112_v36 = vsub.f32 %v3568_v2, %v982_v18  ;;  %v1313_v15 = vadd.f32 %v1312_v13, %v1311_v17  ;;  %2260 = vlog2.f32 %v1108_v42  ;;  %v1226_v14 = vsub.f32 0.0, %v1222_v46  ;;  %v2129_v46 = vld [vmem:[%s2728_s23 + $0x168] sm:$0xff]  ;;  %v2130_v13 = vld [vmem:[%s2728_s23 + $0x170] sm:$0xff] }
 0x144   : > { %v3117_v16 = vsub.f32 0.0, %v3569_v9  ;;  %v1231_v4 = vmul.f32 1.442695, %v1225_v22  ;;  %v1322_v45 = vadd.f32 %v1321_v26, %v1320_v41  ;;  %v3119_v37 = vmul.f32 0.6931472, %v2255_v21 }
 0x145   : > { %2262 = vlog2.f32 %v1109_v32  ;;  %v1330_v18 = vrot.slane %v1329_v52, 1  ;;  %v2120_v19 = vclamps-f32 %v1304_v38, 10.0  ;;  %v3572_v58 = vmin.f32 %v3571_v20, 0.0 }
 0x146   : > { %3570 = vst [vmem:[#allocation27_spill] sm:$0xff] %v3117_v16  ;;  %v3574_v28 = vmin.f32 %v3573_v0, 0.0  ;;  %2264 = vpow2.f32 %v1227_v1  ;;  %v2121_v39 = vclamps-f32 %v1313_v15, 10.0  ;;  %v1393_v23 = vunpack.c.l.bf16 %v2124_v48 }
 0x147   : > { %v3124_v6 = vsub.f32 %v3572_v58, %v984_v49  ;;  %2266 = vpow2.f32 %v1229_v47  ;;  %v1397_v3 = vunpack.c.l.bf16 %v2126_v43  ;;  %v3135_v34 = vpop.eup %2256  ;;  %v1233_v49 = vmul.f32 1.442695, %v1226_v14 }
 0x148   : > { %v3128_v50 = vsub.f32 %v3574_v28, %v986_v57  ;;  %2268 = vpow2.f32 %v1231_v4  ;;  %v2122_v33 = vclamps-f32 %v1322_v45, 10.0  ;;  %v2128_v57 = vld [vmem:[%s2728_s23 + $0x160] sm:$0xff]  ;;  %v1394_v17 = vunpack.c.h.bf16 %v2124_v48  ;;  %v3138_v41 = vpop.eup %2258  ;;  %v2131_v28 = vld [vmem:[%s2728_s23 + $0x178] sm:$0xff] }
 0x149   : > { %v1331_v21 = vadd.f32 %v1330_v18, %v1329_v52  ;;  %v3140_v42 = vmul.f32 -1.0, %v2120_v19  ;;  %v1395_v22 = vunpack.c.l.bf16 %v2125_v31  ;;  %v1401_v24 = vunpack.c.l.bf16 %v2128_v57  ;;  %v3143_v32 = vpop.eup %2260 }
 0x14a   : > { %3575 = vst [vmem:[#allocation16_spill] sm:$0xff] %v3128_v50  ;;  %v1396_v26 = vunpack.c.h.bf16 %v2125_v31  ;;  %v1398_v2 = vunpack.c.h.bf16 %v2126_v43  ;;  %v1399_v1 = vunpack.c.l.bf16 %v2127_v30  ;;  %v1400_v38 = vunpack.c.h.bf16 %v2127_v30 }
 0x14b   : > { %3577 = vst [vmem:[#allocation17_spill] sm:$0xff] %v3140_v42  ;;  %v3146_v9 = vpop.eup %2262  ;;  %v3148_v47 = vmul.f32 -1.0, %v2121_v39  ;;  %v1405_v15 = vunpack.c.l.bf16 %v2130_v13  ;;  %v1409_v52 = vmul.f32 %v1393_v23, %v2811_v53  ;;  %v1413_v14 = vmul.f32 %v1397_v3, %v2822_v63 }
 0x14c   : > { %v2265_v4 = vpop.eup %2264  ;;  %v3152_v45 = vmul.f32 -1.0, %v2122_v33  ;;  %v1402_v18 = vunpack.c.h.bf16 %v2128_v57  ;;  %v1403_v19 = vunpack.c.l.bf16 %v2129_v46  ;;  %v1404_v48 = vunpack.c.h.bf16 %v2129_v46  ;;  %v3580_v33 = vld [vmem:[#allocation11_spill] sm:$0xff] }
 0x14d   : > { %3578 = vst [vmem:[#allocation19_spill] sm:$0xff] %v3148_v47  ;;  %v2267_v20 = vpop.eup %2266  ;;  %v2123_v58 = vclamps-f32 %v1331_v21, 10.0  ;;  %v1348_v0 = vand.u32 2147483647, %v3140_v42  ;;  %v1410_v31 = vmul.f32 %v1394_v17, %v2814_v54  ;;  %v1417_v43 = vmul.f32 %v1401_v24, %v2832_v44 }
 0x14e   : > { %3579 = vst [vmem:[#allocation28_spill] sm:$0xff] %v3152_v45  ;;  %v2269_v39 = vpop.eup %2268  ;;  %v1411_v30 = vmul.f32 %v1395_v22, %v2817_v62  ;;  %v1412_v23 = vmul.f32 %v1396_v26, %v2820_v51  ;;  %v1414_v3 = vmul.f32 %v1398_v2, %v2824_v8  ;;  %v1415_v57 = vmul.f32 %v1399_v1, %v3580_v33 }
 0x14f   : > { %v1349_v46 = vand.u32 2147483647, %v3148_v47  ;;  %v1416_v21 = vmul.f32 %v1400_v38, %v2828_v27  ;;  %v1421_v7 = vmul.f32 %v1405_v15, %v2842_v11  ;;  %v1425_v42 = vadd.f32 %v1413_v14, %v1409_v52  ;;  %v3582_v27 = vld [vmem:[#allocation15_spill] sm:$0xff]  ;;  %v3583_v14 = vld [vmem:[#allocation18_spill] sm:$0xff] }
 0x150   : > { %2270 = vpow2.f32 %v1233_v49  ;;  %v1350_v17 = vand.u32 2147483647, %v3152_v45  ;;  %v1406_v24 = vunpack.c.h.bf16 %v2130_v13  ;;  %v1407_v44 = vunpack.c.l.bf16 %v2131_v28 }
 0x151   : > { %v3166_v63 = vmul.f32 -1.0, %v2123_v58  ;;  %v1352_v22 = vsub.f32 0.0, %v1348_v0  ;;  %v1408_v26 = vunpack.c.h.bf16 %v2131_v28  ;;  %v1426_v51 = vadd.f32 %v1425_v42, %v1417_v43  ;;  %v2143_v58 = vld [vmem:[%s2728_s23 + $0x1b8] sm:$0xff] }
 0x152   : > { %v1418_v2 = vmul.f32 %v1402_v18, %v2834_v10  ;;  %v1419_v1 = vmul.f32 %v1403_v19, %v2836_v56  ;;  %v1434_v47 = vadd.f32 %v1414_v3, %v1410_v31  ;;  %v1443_v33 = vadd.f32 %v1415_v57, %v1411_v30  ;;  %v3586_v18 = vld [vmem:[#allocation21_spill] sm:$0xff] }
 0x153   : > { %3581 = vst [vmem:[#allocation29_spill] sm:$0xff] %v3166_v63  ;;  %v1353_v38 = vsub.f32 0.0, %v1349_v46  ;;  %v1420_v15 = vmul.f32 %v1404_v48, %v3582_v27  ;;  %v1427_v52 = vadd.f32 %v1426_v51, %v1421_v7  ;;  %v1452_v49 = vadd.f32 %v1416_v21, %v1412_v23  ;;  %v3587_v46 = vld [vmem:[#allocation22_spill] sm:$0xff] }
 0x154   : > { %v3584_v13 = vmin.f32 %v3583_v14, 0.0  ;;  %v1235_v42 = vadd.f32 1.0, %v2265_v4  ;;  %v1354_v0 = vsub.f32 0.0, %v1350_v17  ;;  %v1086_v28 = vmin.f32 %v3586_v18, 0.0  ;;  %v3588_v17 = vld [vmem:[#allocation23_spill] sm:$0xff] }
 0x155   : > { %v1351_v19 = vand.u32 2147483647, %v3166_v63  ;;  %v1356_v31 = vmul.f32 1.442695, %v1352_v22  ;;  %v1422_v43 = vmul.f32 %v1406_v24, %v2844_v59  ;;  %v1423_v51 = vmul.f32 %v1407_v44, %v2846_v60  ;;  %v3595_v63 = vld [vmem:[#allocation8_spill] sm:$0xff] }
 0x156   : > { %v3174_v45 = vsub.f32 %v3584_v13, %v3119_v37  ;;  %v2271_v48 = vpop.eup %2270  ;;  %v1428_v7 = vrot.slane %v1427_v52, 4  ;;  %v1435_v30 = vadd.f32 %v1434_v47, %v1418_v2  ;;  %v1444_v23 = vadd.f32 %v1443_v33, %v1419_v1 }
 0x157   : > { %v1111_v37 = vmul.f32 0.6931472, %v3135_v34  ;;  %v1358_v3 = vmul.f32 1.442695, %v1353_v38  ;;  %v1424_v57 = vmul.f32 %v1408_v26, %v2848_v61  ;;  %v1453_v4 = vadd.f32 %v1452_v49, %v1420_v15  ;;  %v3589_v38 = vld [vmem:[#allocation24_spill] sm:$0xff] }
 0x158   : > { %3585 = vst [vmem:[#allocation18_spill] sm:$0xff] %v3174_v45  ;;  %v1087_v21 = vmin.f32 %v3587_v46, 0.0  ;;  %v1088_v14 = vmin.f32 %v3588_v17, 0.0  ;;  %2272 = vlog2.f32 %v1235_v42  ;;  %v1360_v22 = vmul.f32 1.442695, %v1354_v0  ;;  %v2138_v46 = vld [vmem:[%s2728_s23 + $0x190] sm:$0xff] }
 0x159   : > { %v1113_v24 = vmul.f32 0.6931472, %v3138_v41  ;;  %v1115_v13 = vmul.f32 0.6931472, %v3143_v32  ;;  %v1236_v44 = vadd.f32 1.0, %v2267_v20  ;;  %v1355_v18 = vsub.f32 0.0, %v1351_v19 }
 0x15a   : > { %2274 = vpow2.f32 %v1356_v31  ;;  %v1429_v47 = vadd.f32 %v1428_v7, %v1427_v52  ;;  %v1436_v33 = vadd.f32 %v1435_v30, %v1422_v43  ;;  %v1445_v34 = vadd.f32 %v1444_v23, %v1423_v51  ;;  %v3597_v45 = vld [vmem:[#allocation12_spill] sm:$0xff] }
 0x15b   : > { %v1118_v2 = vsub.f32 %v1086_v28, %v1111_v37  ;;  %v1237_v1 = vadd.f32 1.0, %v2269_v39  ;;  %2276 = vpow2.f32 %v1358_v3  ;;  %v1454_v26 = vadd.f32 %v1453_v4, %v1424_v57  ;;  %v2136_v37 = vld [vmem:[%s2728_s23 + $0x180] sm:$0xff]  ;;  %v2137_v3 = vld [vmem:[%s2728_s23 + $0x188] sm:$0xff] }
 0x15c   : > { %v1089_v15 = vmin.f32 %v3589_v38, 0.0  ;;  %v1117_v49 = vmul.f32 0.6931472, %v3146_v9  ;;  %v1238_v42 = vadd.f32 1.0, %v2271_v48  ;;  %2278 = vpow2.f32 %v1360_v22 }
 0x15d   : > { %v3194_v20 = vsub.f32 %v1087_v21, %v1113_v24  ;;  %v1362_v52 = vmul.f32 1.442695, %v1355_v18  ;;  %2280 = vlog2.f32 %v1236_v44  ;;  %v1430_v0 = vrot.slane %v1429_v47, 2  ;;  %v2139_v21 = vld [vmem:[%s2728_s23 + $0x198] sm:$0xff]  ;;  %v2140_v18 = vld [vmem:[%s2728_s23 + $0x1a0] sm:$0xff] }
 0x15e   : > { %v2273_v39 = vpop.eup %2272  ;;  %v1437_v28 = vrot.slane %v1436_v33, 4  ;;  %v1446_v19 = vrot.slane %v1445_v34, 4  ;;  %v3196_v31 = vsub.f32 %v1088_v14, %v1115_v13  ;;  %v3591_v9 = vsub.f32 %v3576_v5, %v3112_v36 }
 0x15f   : > { %2282 = vlog2.f32 %v1237_v1  ;;  %v1455_v48 = vrot.slane %v1454_v26, 4  ;;  %v3203_v7 = vsub.f32 %v1089_v15, %v1117_v49  ;;  %v3211_v4 = vmul.f32 0.6931472, %v2273_v39 }
 0x160   : > { %3590 = vst [vmem:[#allocation21_spill] sm:$0xff] %v3196_v31  ;;  %v3201_v43 = vsub.f32 %v3591_v9, %v1118_v2  ;;  %v2275_v51 = vpop.eup %2274  ;;  %2284 = vlog2.f32 %v1238_v42  ;;  %v1431_v14 = vadd.f32 %v1430_v0, %v1429_v47  ;;  %v1438_v22 = vadd.f32 %v1437_v28, %v1436_v33  ;;  %v2141_v42 = vld [vmem:[%s2728_s23 + $0x1a8] sm:$0xff] }
 0x161   : > { %3593 = vst [vmem:[#allocation23_spill] sm:$0xff] %v3203_v7  ;;  %v2277_v57 = vpop.eup %2276  ;;  %2286 = vpow2.f32 %v1362_v52  ;;  %v1447_v24 = vadd.f32 %v1446_v19, %v1445_v34  ;;  %v1522_v13 = vunpack.c.l.bf16 %v2136_v37  ;;  %v1456_v44 = vadd.f32 %v1455_v48, %v1454_v26  ;;  %v2142_v19 = vld [vmem:[%s2728_s23 + $0x1b0] sm:$0xff] }
 0x162   : > { %3592 = vst [vmem:[#allocation22_spill] sm:$0xff] %v3201_v43  ;;  %v2279_v17 = vpop.eup %2278  ;;  %v1523_v2 = vunpack.c.h.bf16 %v2136_v37  ;;  %v1524_v1 = vunpack.c.l.bf16 %v2137_v3  ;;  %v1525_v38 = vunpack.c.h.bf16 %v2137_v3  ;;  %v1364_v49 = vadd.f32 1.0, %v2275_v51 }
 0x163   : > { %v2281_v15 = vpop.eup %2280  ;;  %v1526_v39 = vunpack.c.l.bf16 %v2138_v46  ;;  %v1527_v9 = vunpack.c.h.bf16 %v2138_v46  ;;  %v1528_v5 = vunpack.c.l.bf16 %v2139_v21  ;;  %v1365_v36 = vadd.f32 1.0, %v2277_v57 }
 0x164   : > { %v1366_v32 = vadd.f32 1.0, %v2279_v17  ;;  %v1529_v47 = vunpack.c.h.bf16 %v2139_v21  ;;  %v1530_v33 = vunpack.c.l.bf16 %v2140_v18  ;;  %v1432_v0 = vrot.slane %v1431_v14, 1  ;;  %v3594_v21 = vld [vmem:[#allocation9_spill] sm:$0xff] }
 0x165   : > { %v2283_v52 = vpop.eup %2282  ;;  %v1439_v26 = vrot.slane %v1438_v22, 2  ;;  %v1448_v28 = vrot.slane %v1447_v24, 2  ;;  %v1531_v48 = vunpack.c.h.bf16 %v2140_v18  ;;  %v1457_v3 = vrot.slane %v1456_v44, 2 }
 0x166   : > { %v2285_v34 = vpop.eup %2284  ;;  %v1532_v41 = vunpack.c.l.bf16 %v2141_v42  ;;  %v1533_v51 = vunpack.c.h.bf16 %v2141_v42  ;;  %v1534_v23 = vunpack.c.l.bf16 %v2142_v19  ;;  %v1538_v46 = vmul.f32 %v1522_v13, %v2811_v53 }
 0x167   : > { %v2287_v37 = vpop.eup %2286  ;;  %v1539_v30 = vmul.f32 %v1523_v2, %v2814_v54  ;;  %v1540_v57 = vmul.f32 %v1524_v1, %v2817_v62  ;;  %v1542_v17 = vmul.f32 %v1526_v39, %v3594_v21  ;;  %v1541_v43 = vmul.f32 %v1525_v38, %v3595_v63 }
 0x168   : > { %v1543_v40 = vmul.f32 %v1527_v9, %v2824_v8  ;;  %v1544_v18 = vmul.f32 %v1528_v5, %v3596_v55  ;;  %v1545_v16 = vmul.f32 %v1529_v47, %v3597_v45  ;;  %v1433_v7 = vadd.f32 %v1432_v0, %v1431_v14 }
 0x169   : > { %v1440_v42 = vadd.f32 %v1439_v26, %v1438_v22  ;;  %v1449_v50 = vadd.f32 %v1448_v28, %v1447_v24  ;;  %v1546_v31 = vmul.f32 %v1530_v33, %v3598_v35  ;;  %v1535_v13 = vunpack.c.h.bf16 %v2142_v19 }
 0x16a   : > { %v1536_v53 = vunpack.c.l.bf16 %v2143_v58  ;;  %v1547_v2 = vmul.f32 %v1531_v48, %v2834_v10  ;;  %v1548_v1 = vmul.f32 %v1532_v41, %v2836_v56  ;;  %v1537_v39 = vunpack.c.h.bf16 %v2143_v58 }
 0x16b   : > { %v1549_v38 = vmul.f32 %v1533_v51, %v3582_v27  ;;  %v1550_v9 = vmul.f32 %v1534_v23, %v2842_v11  ;;  %v1554_v8 = vadd.f32 %v1542_v17, %v1538_v46  ;;  %v1458_v5 = vadd.f32 %v1457_v3, %v1456_v44  ;;  %v3605_v3 = vld [vmem:[#allocation21_spill] sm:$0xff] }
 0x16c   : > { %v1563_v55 = vadd.f32 %v1543_v40, %v1539_v30  ;;  %v1572_v47 = vadd.f32 %v1544_v18, %v1540_v57  ;;  %v1581_v14 = vadd.f32 %v1545_v16, %v1541_v43  ;;  %v1441_v22 = vrot.slane %v1440_v42, 1  ;;  %v3607_v57 = vld [vmem:[#allocation16_spill] sm:$0xff] }
 0x16d   : > { %v1450_v24 = vrot.slane %v1449_v50, 1  ;;  %v2132_v0 = vclamps-f32 %v1433_v7, 10.0  ;;  %v1555_v33 = vadd.f32 %v1554_v8, %v1546_v31  ;;  %v1551_v26 = vmul.f32 %v1535_v13, %v2844_v59 }
 0x16e   : > { %v1552_v28 = vmul.f32 %v1536_v53, %v2846_v60  ;;  %v1564_v19 = vadd.f32 %v1563_v55, %v1547_v2  ;;  %v1573_v41 = vadd.f32 %v1572_v47, %v1548_v1  ;;  %v1367_v58 = vadd.f32 1.0, %v2287_v37  ;;  %v3610_v2 = vld [vmem:[#allocation23_spill] sm:$0xff] }
 0x16f   : > { %v1553_v48 = vmul.f32 %v1537_v39, %v2848_v61  ;;  %v1556_v51 = vadd.f32 %v1555_v33, %v1550_v9  ;;  %v1582_v23 = vadd.f32 %v1581_v14, %v1549_v38  ;;  %v1242_v46 = vmul.f32 0.6931472, %v2281_v15  ;;  %v3621_v33 = vld [vmem:[#allocation22_spill] sm:$0xff] }
 0x170   : > { %v1244_v44 = vmul.f32 0.6931472, %v2283_v52  ;;  %2288 = vlog2.f32 %v1364_v49  ;;  %v1459_v40 = vrot.slane %v1458_v5, 1  ;;  %v1442_v16 = vadd.f32 %v1441_v22, %v1440_v42  ;;  %v3618_v22 = vld [vmem:[#allocation26_spill] sm:$0xff] }
 0x171   : > { %2290 = vlog2.f32 %v1365_v36  ;;  %v1451_v43 = vadd.f32 %v1450_v24, %v1449_v50  ;;  %v3235_v7 = vmul.f32 -1.0, %v2132_v0  ;;  %v1557_v8 = vrot.slane %v1556_v51, 4 }
 0x172   : > { %2292 = vlog2.f32 %v1366_v32  ;;  %v1565_v31 = vadd.f32 %v1564_v19, %v1551_v26  ;;  %v1574_v53 = vadd.f32 %v1573_v41, %v1552_v28  ;;  %v1246_v55 = vmul.f32 0.6931472, %v2285_v34  ;;  %v3606_v34 = vld [vmem:[#allocation25_spill] sm:$0xff] }
 0x173   : > { %3599 = vst [vmem:[#allocation24_spill] sm:$0xff] %v3235_v7  ;;  %v3600_v30 = vmin.f32 %v3084_v29, 0.0  ;;  %2294 = vlog2.f32 %v1367_v58  ;;  %v1583_v15 = vadd.f32 %v1582_v23, %v1553_v48  ;;  %v3601_v36 = vsub.f32 %v3094_v25, %v3124_v6  ;;  %v3611_v25 = vld [vmem:[#allocation27_spill] sm:$0xff]  ;;  %v3612_v6 = vld [vmem:[#allocation18_spill] sm:$0xff]  ;;  %v3622_v58 = vld [vmem:[#allocation17_spill] sm:$0xff] }
 0x174   : > { %v3603_v50 = vmin.f32 %v3086_v12, 0.0  ;;  %v1460_v52 = vadd.f32 %v1459_v40, %v1458_v5  ;;  %v3608_v17 = vsub.f32 %v3606_v34, %v3607_v57  ;;  %v2134_v18 = vclamps-f32 %v1451_v43, 10.0  ;;  %v3615_v5 = vld [vmem:[#allocation20_spill] sm:$0xff]  ;;  %v3625_v57 = vld [vmem:[#allocation29_spill] sm:$0xff]  ;;  %v2155_v34 = vld [vmem:[%s2728_s23 + $0x1f8] sm:$0xff] }
 0x175   : > { %v3240_v37 = vsub.f32 %v3600_v30, %v3211_v4  ;;  %v3246_v49 = vsub.f32 %v3601_v36, %v3194_v20  ;;  %v2133_v4 = vclamps-f32 %v1442_v16, 10.0  ;;  %v1477_v42 = vand.u32 2147483647, %v3235_v7 }
 0x176   : > { %v3250_v32 = vsub.f32 %v3603_v50, %v1242_v46  ;;  %v3256_v29 = vsub.f32 %v3608_v17, %v3605_v3  ;;  %v2289_v13 = vpop.eup %2288  ;;  %v3613_v20 = vsub.f32 %v3611_v25, %v3612_v6  ;;  %v1558_v12 = vadd.f32 %v1557_v8, %v1556_v51  ;;  %v3623_v51 = vld [vmem:[#allocation19_spill] sm:$0xff]  ;;  %v2151_v6 = vld [vmem:[%s2728_s23 + $0x1d8] sm:$0xff] }
 0x177   : > { %3602 = vst [vmem:[#allocation9_spill] sm:$0xff] %v3246_v49  ;;  %v1566_v39 = vrot.slane %v1565_v31, 4  ;;  %v1575_v38 = vrot.slane %v1574_v53, 4  ;;  %v2291_v9 = vpop.eup %2290  ;;  %v3616_v47 = vmin.f32 %v3615_v5, 0.0  ;;  %v3619_v24 = vmin.f32 %v3618_v22, 0.0  ;;  %v2152_v22 = vld [vmem:[%s2728_s23 + $0x1e0] sm:$0xff] }
 0x178   : > { %3604 = vst [vmem:[#allocation8_spill] sm:$0xff] %v3250_v32  ;;  %v3263_v1 = vsub.f32 %v3613_v20, %v3610_v2  ;;  %v1584_v28 = vrot.slane %v1583_v15, 4  ;;  %v2293_v19 = vpop.eup %2292  ;;  %v1344_v48 = vmin.f32 %v3622_v58, 0.0  ;;  %v2135_v46 = vclamps-f32 %v1460_v52, 10.0  ;;  %v3627_v32 = vld [vmem:[#allocation10_spill] sm:$0xff]  ;;  %v3628_v49 = vld [vmem:[#allocation11_spill] sm:$0xff] }
 0x179   : > { %3609 = vst [vmem:[#allocation12_spill] sm:$0xff] %v3256_v29  ;;  %v3267_v14 = vsub.f32 %v3616_v47, %v1244_v44  ;;  %v3271_v0 = vsub.f32 %v3619_v24, %v1246_v55  ;;  %v2295_v44 = vpop.eup %2294  ;;  %v1369_v40 = vmul.f32 0.6931472, %v2289_v13  ;;  %v3279_v16 = vmul.f32 -1.0, %v2133_v4  ;;  %v3624_v55 = vld [vmem:[#allocation28_spill] sm:$0xff]  ;;  %v2148_v4 = vld [vmem:[%s2728_s23 + $0x1c0] sm:$0xff] }
 0x17a   : > { %3614 = vst [vmem:[#allocation21_spill] sm:$0xff] %v3263_v1  ;;  %v3281_v43 = vmul.f32 -1.0, %v2134_v18  ;;  %v1481_v8 = vsub.f32 0.0, %v1477_v42  ;;  %v1559_v36 = vrot.slane %v1558_v12, 2  ;;  %v1567_v50 = vadd.f32 %v1566_v39, %v1565_v31  ;;  %v2149_v18 = vld [vmem:[%s2728_s23 + $0x1c8] sm:$0xff]  ;;  %v2150_v13 = vld [vmem:[%s2728_s23 + $0x1d0] sm:$0xff] }
 0x17b   : > { %3617 = vst [vmem:[#allocation25_spill] sm:$0xff] %v3267_v14  ;;  %v1576_v3 = vadd.f32 %v1575_v38, %v1574_v53  ;;  %v3287_v52 = vmul.f32 0.6931472, %v2291_v9  ;;  %v1585_v2 = vadd.f32 %v1584_v28, %v1583_v15  ;;  %v3294_v25 = vmul.f32 0.6931472, %v2293_v19  ;;  %v2153_v24 = vld [vmem:[%s2728_s23 + $0x1e8] sm:$0xff] }
 0x17c   : > { %3620 = vst [vmem:[#allocation16_spill] sm:$0xff] %v3271_v0  ;;  %v3296_v31 = vmul.f32 0.6931472, %v2295_v44  ;;  %v3298_v53 = vmul.f32 -1.0, %v2135_v46  ;;  %v3301_v20 = vsub.f32 %v1344_v48, %v1369_v40  ;;  %v1485_v38 = vmul.f32 1.442695, %v1481_v8 }
 0x17d   : > { %v1560_v9 = vadd.f32 %v1559_v36, %v1558_v12  ;;  %v1568_v5 = vrot.slane %v1567_v50, 2  ;;  %v1577_v47 = vrot.slane %v1576_v3, 2  ;;  %v1651_v28 = vunpack.c.l.bf16 %v2148_v4  ;;  %v2154_v42 = vld [vmem:[%s2728_s23 + $0x1f0] sm:$0xff]  ;;  %v3626_v14 = vld [vmem:[#allocation7_spill] sm:$0xff] }
 0x17e   : > { %v1586_v19 = vrot.slane %v1585_v2, 2  ;;  %v1652_v58 = vunpack.c.h.bf16 %v2148_v4  ;;  %v1653_v46 = vunpack.c.l.bf16 %v2149_v18  ;;  %v1654_v44 = vunpack.c.h.bf16 %v2149_v18 }
 0x17f   : > { %v1655_v41 = vunpack.c.l.bf16 %v2150_v13  ;;  %v1656_v48 = vunpack.c.h.bf16 %v2150_v13  ;;  %v1657_v40 = vunpack.c.l.bf16 %v2151_v6  ;;  %v1658_v17 = vunpack.c.h.bf16 %v2151_v6 }
 0x180   : > { %v1659_v26 = vunpack.c.l.bf16 %v2152_v22  ;;  %v1660_v30 = vunpack.c.h.bf16 %v2152_v22  ;;  %v1661_v39 = vunpack.c.l.bf16 %v2153_v24  ;;  %v1662_v8 = vunpack.c.h.bf16 %v2153_v24 }
 0x181   : > { %v1561_v12 = vrot.slane %v1560_v9, 1  ;;  %v1569_v36 = vadd.f32 %v1568_v5, %v1567_v50  ;;  %v1578_v15 = vadd.f32 %v1577_v47, %v1576_v3  ;;  %v1663_v23 = vunpack.c.l.bf16 %v2154_v42 }
 0x182   : > { %v1587_v0 = vadd.f32 %v1586_v19, %v1585_v2  ;;  %v1664_v1 = vunpack.c.h.bf16 %v2154_v42  ;;  %v1665_v7 = vunpack.c.l.bf16 %v2155_v34  ;;  %v1666_v4 = vunpack.c.h.bf16 %v2155_v34 }
 0x183   : > { %v1667_v18 = vmul.f32 %v1651_v28, %v3626_v14  ;;  %v1668_v29 = vmul.f32 %v1652_v58, %v2814_v54  ;;  %v1669_v13 = vmul.f32 %v1653_v46, %v2817_v62  ;;  %v1671_v6 = vmul.f32 %v1655_v41, %v3594_v21 }
 0x184   : > { %v1670_v22 = vmul.f32 %v1654_v44, %v3595_v63  ;;  %v1672_v24 = vmul.f32 %v1656_v48, %v3627_v32  ;;  %v1673_v50 = vmul.f32 %v1657_v40, %v3628_v49  ;;  %v1674_v3 = vmul.f32 %v1658_v17, %v3597_v45 }
 0x185   : > { %v1562_v2 = vadd.f32 %v1561_v12, %v1560_v9  ;;  %v1570_v42 = vrot.slane %v1569_v36, 1  ;;  %v1579_v5 = vrot.slane %v1578_v15, 1  ;;  %v1675_v34 = vmul.f32 %v1659_v26, %v3598_v35 }
 0x186   : > { %v1588_v47 = vrot.slane %v1587_v0, 1  ;;  %v1676_v28 = vmul.f32 %v1660_v30, %v2834_v10  ;;  %v1677_v19 = vmul.f32 %v1661_v39, %v2836_v56  ;;  %v1678_v41 = vmul.f32 %v1662_v8, %v3582_v27 }
 0x187   : > { %v1679_v58 = vmul.f32 %v1663_v23, %v2842_v11  ;;  %v1680_v46 = vmul.f32 %v1664_v1, %v2844_v59  ;;  %v1681_v44 = vmul.f32 %v1665_v7, %v2846_v60  ;;  %v1683_v48 = vadd.f32 %v1671_v6, %v1667_v18 }
 0x188   : > { %v1682_v17 = vmul.f32 %v1666_v4, %v2848_v61  ;;  %v1692_v9 = vadd.f32 %v1672_v24, %v1668_v29  ;;  %v1701_v40 = vadd.f32 %v1673_v50, %v1669_v13  ;;  %v1710_v12 = vadd.f32 %v1674_v3, %v1670_v22 }
 0x189   : > { %v1480_v26 = vand.u32 2147483647, %v3298_v53  ;;  %v1571_v35 = vadd.f32 %v1570_v42, %v1569_v36  ;;  %v1580_v30 = vadd.f32 %v1579_v5, %v1578_v15  ;;  %v1684_v10 = vadd.f32 %v1683_v48, %v1675_v34 }
 0x18a   : > { %2296 = vpow2.f32 %v1485_v38  ;;  %v1693_v39 = vadd.f32 %v1692_v9, %v1676_v28  ;;  %v1702_v8 = vadd.f32 %v1701_v40, %v1677_v19  ;;  %v1711_v27 = vadd.f32 %v1710_v12, %v1678_v41 }
 0x18b   : > { %v3629_v1 = vmin.f32 %v3623_v51, 0.0  ;;  %v3630_v7 = vand.u32 2147483647, %v3279_v16  ;;  %v1589_v4 = vadd.f32 %v1588_v47, %v1587_v0  ;;  %v1685_v29 = vadd.f32 %v1684_v10, %v1679_v58 }
 0x18c   : > { %v2144_v13 = vclamps-f32 %v1562_v2, 10.0  ;;  %v1694_v6 = vadd.f32 %v1693_v39, %v1680_v46  ;;  %v1703_v22 = vadd.f32 %v1702_v8, %v1681_v44  ;;  %v1712_v24 = vadd.f32 %v1711_v27, %v1682_v17 }
 0x18d   : > { %v1377_v23 = vsub.f32 %v3629_v1, %v3287_v52  ;;  %v1482_v18 = vsub.f32 0.0, %v3630_v7  ;;  %v3631_v15 = vand.u32 2147483647, %v3281_v43  ;;  %v2145_v38 = vclamps-f32 %v1571_v35, 10.0 }
 0x18e   : > { %v2146_v50 = vclamps-f32 %v1580_v30, 10.0  ;;  %v1686_v3 = vrot.slane %v1685_v29, 4  ;;  %v1484_v42 = vsub.f32 0.0, %v1480_v26  ;;  %v1695_v5 = vrot.slane %v1694_v6, 4 }
 0x18f   : > { %v1483_v36 = vsub.f32 0.0, %v3631_v15  ;;  %v1704_v34 = vrot.slane %v1703_v22, 4  ;;  %v1713_v51 = vrot.slane %v1712_v24, 4  ;;  %v3632_v52 = vmin.f32 %v3624_v55, 0.0 }
 0x190   : > { %v3633_v10 = vsub.f32 %v3621_v33, %v3240_v37  ;;  %v1487_v27 = vmul.f32 1.442695, %v1482_v18  ;;  %v1687_v2 = vadd.f32 %v1686_v3, %v1685_v29  ;;  %v2297_v47 = vpop.eup %2296  ;;  %v2147_v35 = vclamps-f32 %v1589_v4, 10.0  ;;  %v3638_v3 = vld [vmem:[#allocation12_spill] sm:$0xff] }
 0x191   : > { %v1378_v28 = vsub.f32 %v3632_v52, %v3294_v25  ;;  %v3342_v19 = vmul.f32 -1.0, %v2144_v13  ;;  %v1696_v41 = vadd.f32 %v1695_v5, %v1694_v6  ;;  %v1705_v58 = vadd.f32 %v1704_v34, %v1703_v22  ;;  %v3635_v22 = vld [vmem:[#allocation9_spill] sm:$0xff]  ;;  %v2161_v52 = vld [vmem:[%s2728_s23 + $0x208] sm:$0xff] }
 0x192   : > { %v3340_v0 = vsub.f32 %v3633_v10, %v3301_v20  ;;  %v3344_v46 = vmul.f32 -1.0, %v2145_v38  ;;  %v3346_v44 = vmul.f32 -1.0, %v2146_v50  ;;  %v1688_v55 = vrot.slane %v1687_v2, 2  ;;  %v2162_v10 = vld [vmem:[%s2728_s23 + $0x210] sm:$0xff] }
 0x193   : > { %v1714_v25 = vadd.f32 %v1713_v51, %v1712_v24  ;;  %v1489_v48 = vmul.f32 1.442695, %v1483_v36  ;;  %v1491_v17 = vmul.f32 1.442695, %v1484_v42  ;;  %v1697_v9 = vrot.slane %v1696_v41, 2  ;;  %v3636_v24 = vld [vmem:[#allocation8_spill] sm:$0xff] }
 0x194   : > { %v1706_v37 = vrot.slane %v1705_v58, 2  ;;  %2298 = vpow2.f32 %v1487_v27  ;;  %v1493_v33 = vadd.f32 1.0, %v2297_v47  ;;  %v1689_v20 = vadd.f32 %v1688_v55, %v1687_v2  ;;  %v3639_v42 = vld [vmem:[#allocation25_spill] sm:$0xff]  ;;  %v2160_v51 = vld [vmem:[%s2728_s23 + $0x200] sm:$0xff] }
 0x195   : > { %v1715_v40 = vrot.slane %v1714_v25, 2  ;;  %v3348_v12 = vmul.f32 -1.0, %v2147_v35  ;;  %v1606_v26 = vand.u32 2147483647, %v3342_v19  ;;  %v1698_v30 = vadd.f32 %v1697_v9, %v1696_v41 }
 0x196   : > { %v1707_v39 = vadd.f32 %v1706_v37, %v1705_v58  ;;  %v1607_v8 = vand.u32 2147483647, %v3344_v46  ;;  %v1608_v1 = vand.u32 2147483647, %v3346_v44  ;;  %v1690_v7 = vrot.slane %v1689_v20, 1 }
 0x197   : > { %v1716_v18 = vadd.f32 %v1715_v40, %v1714_v25  ;;  %v3634_v4 = vmin.f32 %v3625_v57, 0.0  ;;  %2300 = vpow2.f32 %v1489_v48  ;;  %v1699_v13 = vrot.slane %v1698_v30, 1  ;;  %v2164_v25 = vld [vmem:[%s2728_s23 + $0x220] sm:$0xff]  ;;  %v2165_v48 = vld [vmem:[%s2728_s23 + $0x228] sm:$0xff] }
 0x198   : > { %v1708_v6 = vrot.slane %v1707_v39, 1  ;;  %v3637_v15 = vsub.f32 %v3635_v22, %v3636_v24  ;;  %2302 = vpow2.f32 %v1491_v17  ;;  %v1691_v38 = vadd.f32 %v1690_v7, %v1689_v20 }
 0x199   : > { %v3356_v29 = vsub.f32 %v3634_v4, %v3296_v31  ;;  %v1717_v50 = vrot.slane %v1716_v18, 1  ;;  %v3640_v5 = vsub.f32 %v3638_v3, %v3639_v42  ;;  %2304 = vlog2.f32 %v1493_v33 }
 0x19a   : > { %v3361_v36 = vsub.f32 %v3637_v15, %v1377_v23  ;;  %v1700_v57 = vadd.f32 %v1699_v13, %v1698_v30  ;;  %v1709_v31 = vadd.f32 %v1708_v6, %v1707_v39  ;;  %v3371_v27 = vpop.eup %2298  ;;  %v1609_v23 = vand.u32 2147483647, %v3348_v12  ;;  %v2166_v30 = vld [vmem:[%s2728_s23 + $0x230] sm:$0xff] }
 0x19b   : > { %v3366_v34 = vsub.f32 %v3640_v5, %v1378_v28  ;;  %v1610_v2 = vsub.f32 0.0, %v1606_v26  ;;  %v3374_v47 = vsub.f32 0.0, %v1607_v8  ;;  %v3376_v35 = vsub.f32 0.0, %v1608_v1  ;;  %v2163_v28 = vld [vmem:[%s2728_s23 + $0x218] sm:$0xff] }
 0x19c   : > { %v1718_v41 = vadd.f32 %v1717_v50, %v1716_v18  ;;  %v2156_v58 = vclamps-f32 %v1691_v38, 10.0  ;;  %v2157_v55 = vclamps-f32 %v1700_v57, 10.0  ;;  %v1780_v17 = vunpack.c.l.bf16 %v2160_v51  ;;  %v2167_v26 = vld [vmem:[%s2728_s23 + $0x238] sm:$0xff] }
 0x19d   : > { %v2158_v9 = vclamps-f32 %v1709_v31, 10.0  ;;  %v1781_v37 = vunpack.c.h.bf16 %v2160_v51  ;;  %v1782_v33 = vunpack.c.l.bf16 %v2161_v52  ;;  %v1783_v20 = vunpack.c.h.bf16 %v2161_v52  ;;  %v3381_v40 = vpop.eup %2300 }
 0x19e   : > { %v1784_v39 = vunpack.c.l.bf16 %v2162_v10  ;;  %v1785_v8 = vunpack.c.h.bf16 %v2162_v10  ;;  %v1786_v7 = vunpack.c.l.bf16 %v2163_v28  ;;  %v1787_v1 = vunpack.c.h.bf16 %v2163_v28  ;;  %v3385_v4 = vpop.eup %2302 }
 0x19f   : > { %v1788_v18 = vunpack.c.l.bf16 %v2164_v25  ;;  %v1789_v13 = vunpack.c.h.bf16 %v2164_v25  ;;  %v1790_v6 = vunpack.c.l.bf16 %v2165_v48  ;;  %v1791_v22 = vunpack.c.h.bf16 %v2165_v48  ;;  %v3387_v24 = vpop.eup %2304 }
 0x1a0   : > { %v2159_v15 = vclamps-f32 %v1718_v41, 10.0  ;;  %v3389_v38 = vmul.f32 -1.0, %v2156_v58  ;;  %v3391_v50 = vmul.f32 -1.0, %v2157_v55  ;;  %v1792_v3 = vunpack.c.l.bf16 %v2166_v30 }
 0x1a1   : > { %v3393_v42 = vmul.f32 -1.0, %v2158_v9  ;;  %v1793_v5 = vunpack.c.h.bf16 %v2166_v30  ;;  %v1794_v57 = vunpack.c.l.bf16 %v2167_v26  ;;  %v1795_v31 = vunpack.c.h.bf16 %v2167_v26 }
 0x1a2   : > { %v1796_v51 = vmul.f32 %v1780_v17, %v3626_v14  ;;  %v1797_v52 = vmul.f32 %v1781_v37, %v2814_v54  ;;  %v1798_v10 = vmul.f32 %v1782_v33, %v2817_v62  ;;  %v1800_v28 = vmul.f32 %v1784_v39, %v3594_v21  ;;  %v3641_v17 = vld [vmem:[#allocation13_spill] sm:$0xff]  ;;  %v3642_v37 = vld [vmem:[#allocation14_spill] sm:$0xff]  ;;  %v3643_v33 = vld [vmem:[#allocation15_spill] sm:$0xff] }
 0x1a3   : > { %v1799_v41 = vmul.f32 %v1783_v20, %v3595_v63  ;;  %v1801_v58 = vmul.f32 %v1785_v8, %v3627_v32  ;;  %v1802_v55 = vmul.f32 %v1786_v7, %v3628_v49  ;;  %v1803_v25 = vmul.f32 %v1787_v1, %v3597_v45 }
 0x1a4   : > { %v3403_v48 = vmul.f32 -1.0, %v2159_v15  ;;  %v1735_v9 = vand.u32 2147483647, %v3389_v38  ;;  %v1736_v14 = vand.u32 2147483647, %v3391_v50  ;;  %v1804_v54 = vmul.f32 %v1788_v18, %v3641_v17 }
 0x1a5   : > { %v1737_v62 = vand.u32 2147483647, %v3393_v42  ;;  %v1805_v21 = vmul.f32 %v1789_v13, %v3642_v37  ;;  %v1806_v63 = vmul.f32 %v1790_v6, %v2836_v56  ;;  %v1807_v32 = vmul.f32 %v1791_v22, %v3643_v33 }
 0x1a6   : > { %v1808_v49 = vmul.f32 %v1792_v3, %v2842_v11  ;;  %v1809_v45 = vmul.f32 %v1793_v5, %v2844_v59  ;;  %v1810_v20 = vmul.f32 %v1794_v57, %v2846_v60  ;;  %v1812_v30 = vadd.f32 %v1800_v28, %v1796_v51 }
 0x1a7   : > { %v1811_v26 = vmul.f32 %v1795_v31, %v2848_v61  ;;  %v1821_v39 = vadd.f32 %v1801_v58, %v1797_v52  ;;  %v1830_v8 = vadd.f32 %v1802_v55, %v1798_v10  ;;  %v1839_v7 = vadd.f32 %v1803_v25, %v1799_v41  ;;  %v3644_v58 = vld [vmem:[#allocation24_spill] sm:$0xff] }
 0x1a8   : > { %v1613_v1 = vsub.f32 0.0, %v1609_v23  ;;  %v1614_v18 = vmul.f32 1.442695, %v1610_v2  ;;  %v1738_v13 = vand.u32 2147483647, %v3403_v48  ;;  %v1813_v15 = vadd.f32 %v1812_v30, %v1804_v54 }
 0x1a9   : > { %v1739_v56 = vsub.f32 0.0, %v1735_v9  ;;  %v1822_v6 = vadd.f32 %v1821_v39, %v1805_v21  ;;  %v1831_v22 = vadd.f32 %v1830_v8, %v1806_v63  ;;  %v1840_v17 = vadd.f32 %v1839_v7, %v1807_v32 }
 0x1aa   : > { %v1616_v11 = vmul.f32 1.442695, %v3374_v47  ;;  %v1618_v59 = vmul.f32 1.442695, %v3376_v35  ;;  %v1740_v60 = vsub.f32 0.0, %v1736_v14  ;;  %v1814_v3 = vadd.f32 %v1813_v15, %v1808_v49 }
 0x1ab   : > { %v1741_v5 = vsub.f32 0.0, %v1737_v62  ;;  %v1823_v61 = vadd.f32 %v1822_v6, %v1809_v45  ;;  %v1832_v57 = vadd.f32 %v1831_v22, %v1810_v20  ;;  %v1841_v31 = vadd.f32 %v1840_v17, %v1811_v26 }
 0x1ac   : > { %2306 = vpow2.f32 %v1614_v18  ;;  %v1620_v23 = vmul.f32 1.442695, %v1613_v1  ;;  %v1742_v2 = vsub.f32 0.0, %v1738_v13  ;;  %v1815_v51 = vrot.slane %v1814_v3, 4 }
 0x1ad   : > { %v1743_v52 = vmul.f32 1.442695, %v1739_v56  ;;  %v1824_v10 = vrot.slane %v1823_v61, 4  ;;  %v1833_v28 = vrot.slane %v1832_v57, 4  ;;  %v1842_v41 = vrot.slane %v1841_v31, 4 }
 0x1ae   : > { %v1473_v55 = vmin.f32 %v3644_v58, 0.0  ;;  %2308 = vpow2.f32 %v1616_v11  ;;  %v1745_v47 = vmul.f32 1.442695, %v1740_v60  ;;  %v1816_v25 = vadd.f32 %v1815_v51, %v1814_v3 }
 0x1af   : > { %2310 = vpow2.f32 %v1618_v59  ;;  %v1747_v35 = vmul.f32 1.442695, %v1741_v5  ;;  %v1825_v9 = vadd.f32 %v1824_v10, %v1823_v61  ;;  %v1834_v14 = vadd.f32 %v1833_v28, %v1832_v57 }
 0x1b0   : > { %2312 = vpow2.f32 %v1620_v23  ;;  %v1749_v54 = vmul.f32 1.442695, %v1742_v2  ;;  %v1817_v62 = vrot.slane %v1816_v25, 2  ;;  %v1843_v37 = vadd.f32 %v1842_v41, %v1841_v31 }
 0x1b1   : > { %v1494_v21 = vadd.f32 1.0, %v3371_v27  ;;  %2314 = vpow2.f32 %v1743_v52  ;;  %v1826_v63 = vrot.slane %v1825_v9, 2  ;;  %v1835_v33 = vrot.slane %v1834_v14, 2 }
 0x1b2   : > { %v2307_v32 = vpop.eup %2306  ;;  %v1495_v49 = vadd.f32 1.0, %v3381_v40  ;;  %2316 = vpow2.f32 %v1745_v47  ;;  %v1818_v45 = vadd.f32 %v1817_v62, %v1816_v25  ;;  %v1844_v20 = vrot.slane %v1843_v37, 2 }
 0x1b3   : > { %v1496_v30 = vadd.f32 1.0, %v3385_v4  ;;  %2318 = vpow2.f32 %v1747_v35  ;;  %v1827_v26 = vadd.f32 %v1826_v63, %v1825_v9  ;;  %v1836_v39 = vadd.f32 %v1835_v33, %v1834_v14 }
 0x1b4   : > { %v2309_v8 = vpop.eup %2308  ;;  %v1474_v7 = vmin.f32 %v3279_v16, 0.0  ;;  %2320 = vpow2.f32 %v1749_v54  ;;  %v1819_v1 = vrot.slane %v1818_v45, 1  ;;  %v1845_v27 = vadd.f32 %v1844_v20, %v1843_v37 }
 0x1b5   : > { %v2311_v18 = vpop.eup %2310  ;;  %2322 = vlog2.f32 %v1494_v21  ;;  %v1622_v13 = vadd.f32 1.0, %v2307_v32  ;;  %v1828_v15 = vrot.slane %v1827_v26, 1  ;;  %v1837_v56 = vrot.slane %v1836_v39, 1 }
 0x1b6   : > { %v2313_v40 = vpop.eup %2312  ;;  %v1475_v6 = vmin.f32 %v3281_v43, 0.0  ;;  %2324 = vlog2.f32 %v1495_v49  ;;  %v1820_v22 = vadd.f32 %v1819_v1, %v1818_v45  ;;  %v1846_v4 = vrot.slane %v1845_v27, 1 }
 0x1b7   : > { %v2315_v17 = vpop.eup %2314  ;;  %2326 = vlog2.f32 %v1496_v30  ;;  %v1623_v11 = vadd.f32 1.0, %v2309_v8  ;;  %v1829_v59 = vadd.f32 %v1828_v15, %v1827_v26  ;;  %v1838_v60 = vadd.f32 %v1837_v56, %v1836_v39 }
 0x1b8   : > { %v2317_v3 = vpop.eup %2316  ;;  %v1476_v5 = vmin.f32 %v3298_v53, 0.0  ;;  %v1624_v61 = vadd.f32 1.0, %v2311_v18  ;;  %v1847_v57 = vadd.f32 %v1846_v4, %v1845_v27  ;;  %v2168_v31 = vclamps-f32 %v1820_v22, 10.0 }
 0x1b9   : > { %v2319_v23 = vpop.eup %2318  ;;  %v1625_v2 = vadd.f32 1.0, %v2313_v40  ;;  %2328 = vlog2.f32 %v1622_v13  ;;  %v2169_v51 = vclamps-f32 %v1829_v59, 10.0  ;;  %v2170_v52 = vclamps-f32 %v1838_v60, 10.0  ;;  %v3645_v60 = vld [vmem:[#allocation21_spill] sm:$0xff] }
 0x1ba   : > { %v2321_v10 = vpop.eup %2320  ;;  %v1498_v28 = vmul.f32 0.6931472, %v3387_v24  ;;  %v1751_v41 = vadd.f32 1.0, %v2315_v17  ;;  %v2171_v47 = vclamps-f32 %v1847_v57, 10.0  ;;  %v3427_v25 = vmul.f32 -1.0, %v2168_v31 }
 0x1bb   : > { %v2323_v35 = vpop.eup %2322  ;;  %2330 = vlog2.f32 %v1623_v11  ;;  %v1752_v9 = vadd.f32 1.0, %v2317_v3  ;;  %v3429_v14 = vmul.f32 -1.0, %v2169_v51  ;;  %v3431_v53 = vmul.f32 -1.0, %v2170_v52  ;;  %v3646_v3 = vld [vmem:[#allocation16_spill] sm:$0xff] }
 0x1bc   : > { %v2325_v54 = vpop.eup %2324  ;;  %2332 = vlog2.f32 %v1624_v61  ;;  %v1753_v62 = vadd.f32 1.0, %v2319_v23  ;;  %v3433_v37 = vmul.f32 -1.0, %v2171_v47  ;;  %v1864_v21 = vand.u32 2147483647, %v3427_v25 }
 0x1bd   : > { %v2327_v63 = vpop.eup %2326  ;;  %2334 = vlog2.f32 %v1625_v2  ;;  %v1754_v24 = vadd.f32 1.0, %v2321_v10  ;;  %v1865_v33 = vand.u32 2147483647, %v3429_v14  ;;  %v1866_v32 = vand.u32 2147483647, %v3431_v53 }
 0x1be   : > { %v1500_v49 = vmul.f32 0.6931472, %v2323_v35  ;;  %2336 = vlog2.f32 %v1751_v41  ;;  %v1867_v45 = vand.u32 2147483647, %v3433_v37  ;;  %v1868_v20 = vsub.f32 0.0, %v1864_v21 }
 0x1bf   : > { %v2329_v30 = vpop.eup %2328  ;;  %v1502_v26 = vmul.f32 0.6931472, %v2325_v54  ;;  %2338 = vlog2.f32 %v1752_v9  ;;  %v1869_v39 = vsub.f32 0.0, %v1865_v33  ;;  %v1870_v8 = vsub.f32 0.0, %v1866_v32 }
 0x1c0   : > { %v1504_v1 = vmul.f32 0.6931472, %v2327_v63  ;;  %2340 = vlog2.f32 %v1753_v62  ;;  %v1871_v27 = vsub.f32 0.0, %v1867_v45  ;;  %v1872_v18 = vmul.f32 1.442695, %v1868_v20 }
 0x1c1   : > { %v2331_v13 = vpop.eup %2330  ;;  %v1505_v15 = vsub.f32 %v1473_v55, %v1498_v28  ;;  %2342 = vlog2.f32 %v1754_v24  ;;  %v1874_v56 = vmul.f32 1.442695, %v1869_v39  ;;  %v1876_v40 = vmul.f32 1.442695, %v1870_v8 }
 0x1c2   : > { %v2333_v22 = vpop.eup %2332  ;;  %v1602_v4 = vmin.f32 %v3342_v19, 0.0  ;;  %v1627_v17 = vmul.f32 0.6931472, %v2329_v30  ;;  %2344 = vpow2.f32 %v1872_v18  ;;  %v1878_v11 = vmul.f32 1.442695, %v1871_v27 }
 0x1c3   : > { %v2335_v59 = vpop.eup %2334  ;;  %v3647_v61 = vsub.f32 %v3645_v60, %v3646_v3  ;;  %v1506_v31 = vsub.f32 %v1474_v7, %v1500_v49  ;;  %v1507_v58 = vsub.f32 %v1475_v6, %v1502_v26  ;;  %2346 = vpow2.f32 %v1874_v56 }
 0x1c4   : > { %v2337_v55 = vpop.eup %2336  ;;  %v1508_v23 = vsub.f32 %v1476_v5, %v1504_v1  ;;  %v1603_v19 = vmin.f32 %v3344_v46, 0.0  ;;  %v1629_v2 = vmul.f32 0.6931472, %v2331_v13  ;;  %2348 = vpow2.f32 %v1876_v40 }
 0x1c5   : > { %v1383_v57 = vsub.f32 %v3647_v61, %v3356_v29  ;;  %v2339_v51 = vpop.eup %2338  ;;  %v1509_v52 = vsub.f32 %v3340_v0, %v1505_v15  ;;  %v1604_v10 = vmin.f32 %v3346_v44, 0.0  ;;  %v1631_v28 = vmul.f32 0.6931472, %v2333_v22 }
 0x1c6   : > { %2350 = vpow2.f32 %v1878_v11  ;;  %v2341_v29 = vpop.eup %2340  ;;  %v1605_v16 = vmin.f32 %v3348_v12, 0.0  ;;  %v1633_v7 = vmul.f32 0.6931472, %v2335_v59  ;;  %v1634_v43 = vsub.f32 %v1602_v4, %v1627_v17 }
 0x1c7   : > { %v1901_v6 = vlaneseq  ;;  %v2343_v41 = vpop.eup %2342  ;;  %v1510_v5 = vsub.f32 %v3361_v36, %v1506_v31  ;;  %v1511_v46 = vsub.f32 %v3366_v34, %v1507_v58  ;;  %v1512_v35 = vsub.f32 %v1383_v57, %v1508_v23 }
 0x1c8   : > { %v2345_v47 = vpop.eup %2344  ;;  %v1635_v9 = vsub.f32 %v1603_v19, %v1629_v2  ;;  %v1636_v0 = vsub.f32 %v1604_v10, %v1631_v28  ;;  %v1731_v44 = vmin.f32 %v3389_v38, 0.0  ;;  %v1756_v62 = vmul.f32 0.6931472, %v2337_v55 }
 0x1c9   : > { %v2347_v54 = vpop.eup %2346  ;;  %v1880_v21 = vadd.f32 1.0, %v2345_v47  ;;  %v1637_v12 = vsub.f32 %v1605_v16, %v1633_v7  ;;  %v1638_v24 = vsub.f32 %v1509_v52, %v1634_v43  ;;  %v1902_v32 = vand.u32 127, %v1901_v6 }
 0x1ca   : > { %v2349_v63 = vpop.eup %2348  ;;  %v1881_v33 = vadd.f32 1.0, %v2347_v54  ;;  %v1732_v36 = vmin.f32 %v3391_v50, 0.0  ;;  %v1758_v45 = vmul.f32 0.6931472, %v2339_v51  ;;  %v1733_v20 = vmin.f32 %v3393_v42, 0.0 }
 0x1cb   : > { %v1882_v34 = vadd.f32 1.0, %v2349_v63  ;;  %2352 = vlog2.f32 %v1880_v21  ;;  %v1760_v30 = vmul.f32 0.6931472, %v2341_v29  ;;  %v1734_v38 = vmin.f32 %v3403_v48, 0.0 }
 0x1cc   : > { %v2351_v49 = vpop.eup %2350  ;;  %2354 = vlog2.f32 %v1881_v33  ;;  %v1762_v39 = vmul.f32 0.6931472, %v2343_v41  ;;  %v1763_v8 = vsub.f32 %v1731_v44, %v1756_v62  ;;  %v1903_v1 = vadd.s32 128, %v1902_v32 }
 0x1cd   : > { %v1883_v26 = vadd.f32 1.0, %v2351_v49  ;;  %2356 = vlog2.f32 %v1882_v34  ;;  %v1639_v27 = vsub.f32 %v1510_v5, %v1635_v9  ;;  %v1764_v18 = vsub.f32 %v1732_v36, %v1758_v45 }
 0x1ce   : > { %v1904_v50 = vadd.s32 256, %v1902_v32  ;;  %v1906_v13 = vstv %s2172_s27  ;;  %v1640_v15 = vsub.f32 %v1511_v46, %v1636_v0  ;;  %v1765_v56 = vsub.f32 %v1733_v20, %v1760_v30 }
 0x1cf   : > { %2358 = vlog2.f32 %v1883_v26  ;;  %v1860_v42 = vmin.f32 %v3427_v25, 0.0  ;;  %v1905_v40 = vadd.s32 384, %v1902_v32  ;;  %v1641_v4 = vsub.f32 %v1512_v35, %v1637_v12 }
 0x1d0   : > { %v1766_v17 = vsub.f32 %v1734_v38, %v1762_v39  ;;  %v1767_v11 = vsub.f32 %v1638_v24, %v1763_v8  ;;  %v1861_v48 = vmin.f32 %v3429_v14, 0.0  ;;  %v1862_v60 = vmin.f32 %v3431_v53, 0.0 }
 0x1d1   : > { %v2353_v22 = vpop.eup %2352  ;;  %v1907_v61 = vadd.s32 %v1906_v13, %v1902_v32  ;;  %v1908_v57 = vadd.s32 %v1906_v13, %v1903_v1  ;;  %v1768_v58 = vsub.f32 %v1639_v27, %v1764_v18  ;;  %v1863_v55 = vmin.f32 %v3433_v37, 0.0 }
 0x1d2   : > { %v2355_v59 = vpop.eup %2354  ;;  %v1885_v3 = vmul.f32 0.6931472, %v2353_v22  ;;  %v1909_v25 = vadd.s32 %v1906_v13, %v1904_v50  ;;  %v1769_v2 = vsub.f32 %v1640_v15, %v1765_v56  ;;  %v1910_v10 = vadd.s32 %v1906_v13, %v1905_v40 }
 0x1d3   : > { %v2357_v31 = vpop.eup %2356  ;;  %v1887_v23 = vmul.f32 0.6931472, %v2355_v59  ;;  %v1770_v14 = vsub.f32 %v1641_v4, %v1766_v17  ;;  %vm1911_vm0 = vcmp.lt.s32.totalorder %v1907_v61, 1024  ;;  %vm1912_vm1 = vcmp.lt.s32.totalorder %v1908_v57, 1024 }
 0x1d4   : > { %v1889_v51 = vmul.f32 0.6931472, %v2357_v31  ;;  %v1892_v52 = vsub.f32 %v1860_v42, %v1885_v3  ;;  %vm1913_vm2 = vcmp.lt.s32.totalorder %v1909_v25, 1024  ;;  %vm1914_vm3 = vcmp.lt.s32.totalorder %v1910_v10, 1024 }
 0x1d5   : > { %v2359_v19 = vpop.eup %2358  ;;  %v1893_v29 = vsub.f32 %v1861_v48, %v1887_v23  ;;  %vm1928_vm5 = vcmask 1042434   ;;  %vm1930_vm6 = vcmask 1041408   ;;  %vm1935_vm7 = vcmp.lt.s32.totalorder %v1901_v6, 512 }
 0x1d6   : > { %v1891_v28 = vmul.f32 0.6931472, %v2359_v19  ;;  %v1894_v16 = vsub.f32 %v1862_v60, %v1889_v51  ;;  %v1896_v53 = vsub.f32 %v1767_v11, %v1892_v52 }
 0x1d7   : > { %v1897_v43 = vsub.f32 %v1768_v58, %v1893_v29 }
 0x1d8   : > { %v1895_v7 = vsub.f32 %v1863_v55, %v1891_v28  ;;  %v1898_v41 = vsub.f32 %v1769_v2, %v1894_v16  ;;  %v1915_v47 = vsel %vm1911_vm0, %v1896_v53, 0.0 }
 0x1d9   : > { %v1916_v5 = vsel %vm1912_vm1, %v1897_v43, 0.0 }
 0x1da   : > { %v1899_v37 = vsub.f32 %v1770_v14, %v1895_v7  ;;  %v1917_v46 = vsel %vm1913_vm2, %v1898_v41, 0.0  ;;  %v1923_v35 = vrot.slane %v1916_v5, 7 }
 0x1db   : > { %v1924_v54 = vrot.slane %v1917_v46, 6 }
 0x1dc   : > { %v1918_v9 = vsel %vm1914_vm3, %v1899_v37, 0.0  ;;  %v1927_v44 = vsel %vm1926_vm4, %v1915_v47, %v1923_v35 }
 0x1dd   : > { %v1925_v0 = vrot.slane %v1918_v9, 5 }
 0x1df   : > { %v1929_v62 = vsel %vm1928_vm5, %v1924_v54, %v1925_v0 }
 0x1e0   : > { %v1931_v21 = vsel %vm1930_vm6, %v1927_v44, %v1929_v62 }
 0x1e1   : > { %1937 = vst.msk [vmem:[%s464_s30] sm:$0xf] %vm1935_vm7, %v1931_v21 }
 0x1e2 PF: > { %p11_p12 = scmp.ge.s32.totalorder %s2443_s16, 4   ;;  %s3648_s12 = smov %s2397_s13 }
 0x1e3   : > { %s3649_s13 = smov %s2453_s19  ;;  %s3650_s14 = smov %s2443_s16 }
 0x1e4   :  { %13 = sbr.rel (!%p11_p12) target bundleno = 2 (0x2), region = 138 }
 0x1e9   :  { %1958 = vsyncpa [#allocation3], 1 }
 0x1ea   :  { %1960 = vsyncpa [#allocation3 + $0x1], 1 }

</bundles_post_ra>
